<compile_context>
chip_gen: v6e
topology: v6e:2x2x1
jax: 0.10.0
libtpu: 0.0.40
codegen_flags: <defaults>
</compile_context>

<pallas_src>
import functools

import jax
import jax.numpy as jnp
from jax.experimental import pallas as pl
from jax.experimental.pallas import tpu as pltpu

CLIP_MAX = 3.0
LN_EPS = 1e-5
HIDDEN = 256


def _round_up(x, m):
    return ((x + m - 1) // m) * m


def _layernorm(h, w, b):
    """Single-pass LayerNorm (f32): two XLU reductions, no (h-mu) recompute."""
    inv_n = 1.0 / h.shape[-1]
    s1 = jnp.sum(h, axis=-1, keepdims=True)
    s2 = jnp.sum(h * h, axis=-1, keepdims=True)
    mu = s1 * inv_n
    var = jnp.maximum(s2 * inv_n - mu * mu, 0.0)
    return (h - mu) * jax.lax.rsqrt(var + LN_EPS) * w + b


def _tdm_critic_kernel(
    x_ref, a_ref,                       # (TB, obs+goal), (TB, act)
    ln1wx_ref, ln1bx_ref,               # (1, obs+goal)
    ln1wa_ref, ln1ba_ref,               # (1, act)
    w1x_ref, w1a_ref, b1_ref,           # (obs+goal, 256) bf16, (act, 256) bf16, (1, 256) f32
    ln2w_ref, ln2b_ref,                 # (1, 256)
    w2_ref, b2_ref,                     # (256, 256) bf16, (1, 256)
    ln3w_ref, ln3b_ref,                 # (1, 256)
    w3_ref, b3_ref,                     # (256, 256) bf16, (1, 256)
    wq_ref, bq_ref,                     # (256, out_dim) bf16, (1, out_dim)
    out_ref,                            # (TB, out_dim) f32
    *, inv_max_action: float, d_in: float,
):
    x = x_ref[...].astype(jnp.float32)
    a = a_ref[...].astype(jnp.float32) * inv_max_action   # actions / max_action

    # ---- LayerNorm over the logical concat [x, a] (no physical concat needed) ----
    inv_n = 1.0 / d_in
    s1 = jnp.sum(x, axis=-1, keepdims=True) + jnp.sum(a, axis=-1, keepdims=True)
    s2 = jnp.sum(x * x, axis=-1, keepdims=True) + jnp.sum(a * a, axis=-1, keepdims=True)
    mu = s1 * inv_n
    var = jnp.maximum(s2 * inv_n - mu * mu, 0.0)
    inv_std = jax.lax.rsqrt(var + LN_EPS)
    xn = jnp.clip((x - mu) * inv_std * ln1wx_ref[...] + ln1bx_ref[...], -CLIP_MAX, CLIP_MAX)
    an = jnp.clip((a - mu) * inv_std * ln1wa_ref[...] + ln1ba_ref[...], -CLIP_MAX, CLIP_MAX)

    # ---- fc1 (split across the concat axis) -> relu -> LayerNorm ----
    h = (jnp.dot(xn.astype(jnp.bfloat16), w1x_ref[...], preferred_element_type=jnp.float32)
         + jnp.dot(an.astype(jnp.bfloat16), w1a_ref[...], preferred_element_type=jnp.float32)
         + b1_ref[...])
    h = jnp.maximum(h, 0.0)
    h = _layernorm(h, ln2w_ref[...], ln2b_ref[...])

    # ---- fc2 -> relu -> LayerNorm ----
    h = jnp.dot(h.astype(jnp.bfloat16), w2_ref[...], preferred_element_type=jnp.float32) + b2_ref[...]
    h = jnp.maximum(h, 0.0)
    h = _layernorm(h, ln3w_ref[...], ln3b_ref[...])

    # ---- fc3 -> relu ----
    h = jnp.dot(h.astype(jnp.bfloat16), w3_ref[...], preferred_element_type=jnp.float32) + b3_ref[...]
    h = jnp.maximum(h, 0.0)

    # ---- q_out (already folded to (256,1) for vec=False in the wrapper) ----
    q = jnp.dot(h.astype(jnp.bfloat16), wq_ref[...], preferred_element_type=jnp.float32) + bq_ref[...]
    out_ref[...] = q.astype(out_ref.dtype)


def tdm_critic_forward(x, actions, params, max_action, vec=False):
    """Pallas wrapper. x: (B, obs+goal), actions: (B, act). Returns (B, goal) or (B, 1)."""
    B, og = x.shape
    n_act = actions.shape[1]
    d_in = og + n_act
    goal = params["wq"].shape[1]
    out_dim = goal if vec else 1

    # Batch tile: multiple of 128 (MXU M dim), capped at 1024 (fits v7x's smaller VMEM).
    TB = min(1024, _round_up(max(B, 1), 128))
    B_pad = _round_up(B, TB)
    x = x.astype(jnp.float32)
    actions = actions.astype(jnp.float32)
    if B_pad != B:
        x = jnp.pad(x, ((0, B_pad - B), (0, 0)))
        actions = jnp.pad(actions, ((0, B_pad - B), (0, 0)))

    # Parameter prep: split fc1/LN1 along the concat axis, cast matmul weights to
    # bf16, and fold the vec=False goal-sum into the q_out weights.
    w1 = params["w1"]
    w1x = w1[:og].astype(jnp.bfloat16)
    w1a = w1[og:].astype(jnp.bfloat16)
    ln1_w, ln1_b = params["ln1_w"], params["ln1_b"]
    ln1wx, ln1wa = ln1_w[:, :og], ln1_w[:, og:]
    ln1bx, ln1ba = ln1_b[:, :og], ln1_b[:, og:]
    w2 = params["w2"].astype(jnp.bfloat16)
    w3 = params["w3"].astype(jnp.bfloat16)
    wq, bq = params["wq"], params["bq"]
    if not vec:
        wq = jnp.sum(wq, axis=1, keepdims=True)   # (256, 1)
        bq = jnp.sum(bq, axis=1, keepdims=True)   # (1, 1)
    wq = wq.astype(jnp.bfloat16)

    args = (
        x, actions,
        ln1wx, ln1bx, ln1wa, ln1ba,
        w1x, w1a, params["b1"],
        params["ln2_w"], params["ln2_b"], w2, params["b2"],
        params["ln3_w"], params["ln3_b"], w3, params["b3"],
        wq, bq,
    )

    def batch_map(i):
        return (i, 0)

    def const_map(i):
        return (0, 0)

    in_specs = [
        pl.BlockSpec((TB, og), batch_map),
        pl.BlockSpec((TB, n_act), batch_map),
    ]
    # Weights / biases / LN params: full-array blocks, constant index_map -> VMEM-resident.
    in_specs += [pl.BlockSpec(arg.shape, const_map) for arg in args[2:]]
    out_specs = pl.BlockSpec((TB, out_dim), batch_map)

    out = pl.pallas_call(
        functools.partial(
            _tdm_critic_kernel,
            inv_max_action=1.0 / float(max_action),
            d_in=float(d_in),
        ),
        out_shape=jax.ShapeDtypeStruct((B_pad, out_dim), jnp.float32),
        grid=(B_pad // TB,),
        in_specs=in_specs,
        out_specs=out_specs,
        compiler_params=pltpu.CompilerParams(
            dimension_semantics=("parallel",),
        ),
    )(*args)
    return out[:B]


def init_params(key, in_dim, goal_dim):
    """Deterministic synthetic parameters (shapes match tdm_critic.__init__)."""
    ks = jax.random.split(key, 8)

    def lin(k, fan_in, fan_out):
        kw, kb = jax.random.split(k)
        bound = 1.0 / jnp.sqrt(fan_in)
        w = jax.random.uniform(kw, (fan_in, fan_out), jnp.float32, -bound, bound)
        b = jax.random.uniform(kb, (1, fan_out), jnp.float32, -bound, bound)
        return w, b

    w1, b1 = lin(ks[0], in_dim, HIDDEN)
    w2, b2 = lin(ks[1], HIDDEN, HIDDEN)
    w3, b3 = lin(ks[2], HIDDEN, HIDDEN)
    wq, bq = lin(ks[3], HIDDEN, goal_dim)

    ln1_w = 1.0 + 0.1 * jax.random.normal(ks[4], (1, in_dim), jnp.float32)
    ln1_b = 0.1 * jax.random.normal(ks[5], (1, in_dim), jnp.float32)
    ln2_w = 1.0 + 0.1 * jax.random.normal(ks[6], (1, HIDDEN), jnp.float32)
    ln2_b = 0.1 * jax.random.normal(ks[7], (1, HIDDEN), jnp.float32)
    ln3_w = jnp.ones((1, HIDDEN), jnp.float32) * 0.9
    ln3_b = jnp.ones((1, HIDDEN), jnp.float32) * 0.05

    return dict(
        ln1_w=ln1_w, ln1_b=ln1_b,
        w1=w1, b1=b1,
        ln2_w=ln2_w, ln2_b=ln2_b,
        w2=w2, b2=b2,
        ln3_w=ln3_w, ln3_b=ln3_b,
        w3=w3, b3=b3,
        wq=wq, bq=bq,
    )


def _reference_forward_f32(x, actions, params, max_action, vec=False):
    """Pure-JAX f32 reference with the original PyTorch op order/semantics."""
    def ln(h, w, b):
        mu = jnp.mean(h, axis=-1, keepdims=True)
        var = jnp.mean((h - mu) ** 2, axis=-1, keepdims=True)
        return (h - mu) / jnp.sqrt(var + LN_EPS) * w + b

    h = jnp.concatenate([x, actions / max_action], axis=1).astype(jnp.float32)
    h = jnp.clip(ln(h, params["ln1_w"], params["ln1_b"]), -CLIP_MAX, CLIP_MAX)
    h = jnp.maximum(h @ params["w1"] + params["b1"], 0.0)
    h = ln(h, params["ln2_w"], params["ln2_b"])
    h = jnp.maximum(h @ params["w2"] + params["b2"], 0.0)
    h = ln(h, params["ln3_w"], params["ln3_b"])
    h = jnp.maximum(h @ params["w3"] + params["b3"], 0.0)
    q = h @ params["wq"] + params["bq"]
    if not vec:
        q = jnp.sum(q, axis=-1, keepdims=True)
    return q


def _reference_forward_bf16(x, actions, params, max_action, vec=False):
    """Reference mirroring the kernel's bf16 matmul inputs and folded vec=False reduce."""
    def mm(a, w):
        return jnp.dot(a.astype(jnp.bfloat16), w.astype(jnp.bfloat16),
                       preferred_element_type=jnp.float32)

    def ln(h, w, b):
        inv_n = 1.0 / h.shape[-1]
        mu = jnp.sum(h, axis=-1, keepdims=True) * inv_n
        var = jnp.maximum(jnp.sum(h * h, axis=-1, keepdims=True) * inv_n - mu * mu, 0.0)
        return (h - mu) * jax.lax.rsqrt(var + LN_EPS) * w + b

    h = jnp.concatenate([x, actions / max_action], axis=1).astype(jnp.float32)
    h = jnp.clip(ln(h, params["ln1_w"], params["ln1_b"]), -CLIP_MAX, CLIP_MAX)
    h = jnp.maximum(mm(h, params["w1"]) + params["b1"], 0.0)
    h = ln(h, params["ln2_w"], params["ln2_b"])
    h = jnp.maximum(mm(h, params["w2"]) + params["b2"], 0.0)
    h = ln(h, params["ln3_w"], params["ln3_b"])
    h = jnp.maximum(mm(h, params["w3"]) + params["b3"], 0.0)
    wq, bq = params["wq"], params["bq"]
    if not vec:
        wq = jnp.sum(wq, axis=1, keepdims=True)
        bq = jnp.sum(bq, axis=1, keepdims=True)
    return mm(h, wq) + bq


if __name__ == "__main__":
    # env_params: obs=10, goal=5, action=4, action_max=2.0
    OBS, GOAL, ACT = 10, 5, 4
    MAX_ACTION = 2.0
    B = 2
    in_dim = OBS + GOAL + ACT  # 19

    key = jax.random.PRNGKey(0)
    kp, kx, ka = jax.random.split(key, 3)

    params = init_params(kp, in_dim, GOAL)
    x = jax.random.normal(kx, (B, OBS + GOAL), jnp.float32)
    actions = jax.random.uniform(ka, (B, ACT), jnp.float32, -MAX_ACTION, MAX_ACTION)

    # vec=False path: (B, 1)
    q = tdm_critic_forward(x, actions, params, MAX_ACTION, vec=False)
    q = jax.block_until_ready(q)
    assert q.shape == (B, 1), q.shape

    # vec=True path: (B, GOAL)
    q_vec = tdm_critic_forward(x, actions, params, MAX_ACTION, vec=True)
    q_vec = jax.block_until_ready(q_vec)
    assert q_vec.shape == (B, GOAL), q_vec.shape

    # Tight check against a reference that mirrors the kernel's bf16 matmul inputs.
    q_ref_bf = _reference_forward_bf16(x, actions, params, MAX_ACTION, vec=False)
    qv_ref_bf = _reference_forward_bf16(x, actions, params, MAX_ACTION, vec=True)
    assert jnp.allclose(q, q_ref_bf, atol=2e-3, rtol=2e-3)
    assert jnp.allclose(q_vec, qv_ref_bf, atol=2e-3, rtol=2e-3)

    # Loose check against the full-f32 original semantics (bf16 MXU inputs approximate).
    q_ref = _reference_forward_f32(x, actions, params, MAX_ACTION, vec=False)
    qv_ref = _reference_forward_f32(x, actions, params, MAX_ACTION, vec=True)
    assert jnp.allclose(q, q_ref, atol=1e-1, rtol=1e-1)
    assert jnp.allclose(q_vec, qv_ref, atol=1e-1, rtol=1e-1)

    print("KERNEL_OK")
</pallas_src>

<mosaic_0001>
module attributes {stable_mosaic.version = 11 : i64} {
  func.func @_tdm_critic_kernel(%arg0: i32, %arg1: memref<128x15xf32, #tpu.memory_space<vmem>>, %arg2: memref<128x4xf32, #tpu.memory_space<vmem>>, %arg3: memref<1x15xf32, #tpu.memory_space<vmem>>, %arg4: memref<1x15xf32, #tpu.memory_space<vmem>>, %arg5: memref<1x4xf32, #tpu.memory_space<vmem>>, %arg6: memref<1x4xf32, #tpu.memory_space<vmem>>, %arg7: memref<15x256xbf16, #tpu.memory_space<vmem>>, %arg8: memref<4x256xbf16, #tpu.memory_space<vmem>>, %arg9: memref<1x256xf32, #tpu.memory_space<vmem>>, %arg10: memref<1x256xf32, #tpu.memory_space<vmem>>, %arg11: memref<1x256xf32, #tpu.memory_space<vmem>>, %arg12: memref<256x256xbf16, #tpu.memory_space<vmem>>, %arg13: memref<1x256xf32, #tpu.memory_space<vmem>>, %arg14: memref<1x256xf32, #tpu.memory_space<vmem>>, %arg15: memref<1x256xf32, #tpu.memory_space<vmem>>, %arg16: memref<256x256xbf16, #tpu.memory_space<vmem>>, %arg17: memref<1x256xf32, #tpu.memory_space<vmem>>, %arg18: memref<256x1xbf16, #tpu.memory_space<vmem>>, %arg19: memref<1x1xf32, #tpu.memory_space<vmem>>, %arg20: memref<128x1xf32, #tpu.memory_space<vmem>>) attributes {dimension_semantics = [#tpu.dimension_semantics<parallel>], iteration_bounds = array<i64: 1>, scalar_prefetch = 0 : i64, scratch_operands = 0 : i64, tpu.core_type = #tpu.core_type<tc>, window_params = [{transform_indices = @transform_0, window_bounds = array<i64: 128, 15>}, {transform_indices = @transform_1, window_bounds = array<i64: 128, 4>}, {pipeline_mode = #tpu.pipeline_mode<synchronous>, transform_indices = @transform_2, window_bounds = array<i64: 1, 15>}, {pipeline_mode = #tpu.pipeline_mode<synchronous>, transform_indices = @transform_3, window_bounds = array<i64: 1, 15>}, {pipeline_mode = #tpu.pipeline_mode<synchronous>, transform_indices = @transform_4, window_bounds = array<i64: 1, 4>}, {pipeline_mode = #tpu.pipeline_mode<synchronous>, transform_indices = @transform_5, window_bounds = array<i64: 1, 4>}, {pipeline_mode = #tpu.pipeline_mode<synchronous>, transform_indices = @transform_6, window_bounds = array<i64: 15, 256>}, {pipeline_mode = #tpu.pipeline_mode<synchronous>, transform_indices = @transform_7, window_bounds = array<i64: 4, 256>}, {pipeline_mode = #tpu.pipeline_mode<synchronous>, transform_indices = @transform_8, window_bounds = array<i64: 1, 256>}, {pipeline_mode = #tpu.pipeline_mode<synchronous>, transform_indices = @transform_9, window_bounds = array<i64: 1, 256>}, {pipeline_mode = #tpu.pipeline_mode<synchronous>, transform_indices = @transform_10, window_bounds = array<i64: 1, 256>}, {pipeline_mode = #tpu.pipeline_mode<synchronous>, transform_indices = @transform_11, window_bounds = array<i64: 256, 256>}, {pipeline_mode = #tpu.pipeline_mode<synchronous>, transform_indices = @transform_12, window_bounds = array<i64: 1, 256>}, {pipeline_mode = #tpu.pipeline_mode<synchronous>, transform_indices = @transform_13, window_bounds = array<i64: 1, 256>}, {pipeline_mode = #tpu.pipeline_mode<synchronous>, transform_indices = @transform_14, window_bounds = array<i64: 1, 256>}, {pipeline_mode = #tpu.pipeline_mode<synchronous>, transform_indices = @transform_15, window_bounds = array<i64: 256, 256>}, {pipeline_mode = #tpu.pipeline_mode<synchronous>, transform_indices = @transform_16, window_bounds = array<i64: 1, 256>}, {pipeline_mode = #tpu.pipeline_mode<synchronous>, transform_indices = @transform_17, window_bounds = array<i64: 256, 1>}, {pipeline_mode = #tpu.pipeline_mode<synchronous>, transform_indices = @transform_18, window_bounds = array<i64: 1, 1>}, {transform_indices = @transform_19, window_bounds = array<i64: 128, 1>}]} {
    %c0 = arith.constant 0 : index
    %c0_0 = arith.constant 0 : index
    %0 = vector.load %arg1[%c0, %c0_0] : memref<128x15xf32, #tpu.memory_space<vmem>>, vector<128x15xf32>
    %c0_1 = arith.constant 0 : index
    %c0_2 = arith.constant 0 : index
    %1 = vector.load %arg2[%c0_1, %c0_2] : memref<128x4xf32, #tpu.memory_space<vmem>>, vector<128x4xf32>
    %cst = arith.constant 5.000000e-01 : f32
    %2 = vector.broadcast %cst : f32 to vector<128x4xf32>
    %3 = arith.mulf %1, %2 : vector<128x4xf32>
    %cst_3 = arith.constant dense<0.000000e+00> : vector<128xf32>
    %4 = vector.multi_reduction <add>, %0, %cst_3 [1] : vector<128x15xf32> to vector<128xf32>
    %5 = vector.shape_cast %4 : vector<128xf32> to vector<128x1xf32>
    %cst_4 = arith.constant dense<0.000000e+00> : vector<128xf32>
    %6 = vector.multi_reduction <add>, %3, %cst_4 [1] : vector<128x4xf32> to vector<128xf32>
    %7 = vector.shape_cast %6 : vector<128xf32> to vector<128x1xf32>
    %8 = arith.addf %5, %7 : vector<128x1xf32>
    %9 = arith.mulf %0, %0 : vector<128x15xf32>
    %cst_5 = arith.constant dense<0.000000e+00> : vector<128xf32>
    %10 = vector.multi_reduction <add>, %9, %cst_5 [1] : vector<128x15xf32> to vector<128xf32>
    %11 = vector.shape_cast %10 : vector<128xf32> to vector<128x1xf32>
    %12 = arith.mulf %3, %3 : vector<128x4xf32>
    %cst_6 = arith.constant dense<0.000000e+00> : vector<128xf32>
    %13 = vector.multi_reduction <add>, %12, %cst_6 [1] : vector<128x4xf32> to vector<128xf32>
    %14 = vector.shape_cast %13 : vector<128xf32> to vector<128x1xf32>
    %15 = arith.addf %11, %14 : vector<128x1xf32>
    %cst_7 = arith.constant 0.0526315793 : f32
    %16 = vector.broadcast %cst_7 : f32 to vector<128x1xf32>
    %17 = arith.mulf %8, %16 : vector<128x1xf32>
    %cst_8 = arith.constant 0.0526315793 : f32
    %18 = vector.broadcast %cst_8 : f32 to vector<128x1xf32>
    %19 = arith.mulf %15, %18 : vector<128x1xf32>
    %20 = arith.mulf %17, %17 : vector<128x1xf32>
    %21 = arith.subf %19, %20 : vector<128x1xf32>
    %cst_9 = arith.constant 0.000000e+00 : f32
    %22 = vector.broadcast %cst_9 : f32 to vector<128x1xf32>
    %23 = arith.maximumf %21, %22 : vector<128x1xf32>
    %cst_10 = arith.constant 9.99999974E-6 : f32
    %24 = vector.broadcast %cst_10 : f32 to vector<128x1xf32>
    %25 = arith.addf %23, %24 : vector<128x1xf32>
    %26 = math.rsqrt %25 : vector<128x1xf32>
    %27 = vector.broadcast %17 : vector<128x1xf32> to vector<128x15xf32>
    %28 = arith.subf %0, %27 : vector<128x15xf32>
    %29 = vector.broadcast %26 : vector<128x1xf32> to vector<128x15xf32>
    %30 = arith.mulf %28, %29 : vector<128x15xf32>
    %c0_11 = arith.constant 0 : index
    %c0_12 = arith.constant 0 : index
    %31 = vector.load %arg3[%c0_11, %c0_12] : memref<1x15xf32, #tpu.memory_space<vmem>>, vector<1x15xf32>
    %32 = vector.broadcast %31 : vector<1x15xf32> to vector<128x15xf32>
    %33 = arith.mulf %30, %32 : vector<128x15xf32>
    %c0_13 = arith.constant 0 : index
    %c0_14 = arith.constant 0 : index
    %34 = vector.load %arg4[%c0_13, %c0_14] : memref<1x15xf32, #tpu.memory_space<vmem>>, vector<1x15xf32>
    %35 = vector.broadcast %34 : vector<1x15xf32> to vector<128x15xf32>
    %36 = arith.addf %33, %35 : vector<128x15xf32>
    %cst_15 = arith.constant -3.000000e+00 : f32
    %cst_16 = arith.constant 3.000000e+00 : f32
    %37 = vector.broadcast %cst_15 : f32 to vector<128x15xf32>
    %38 = arith.maximumf %37, %36 : vector<128x15xf32>
    %39 = vector.broadcast %cst_16 : f32 to vector<128x15xf32>
    %40 = arith.minimumf %39, %38 : vector<128x15xf32>
    %41 = vector.broadcast %17 : vector<128x1xf32> to vector<128x4xf32>
    %42 = arith.subf %3, %41 : vector<128x4xf32>
    %43 = vector.broadcast %26 : vector<128x1xf32> to vector<128x4xf32>
    %44 = arith.mulf %42, %43 : vector<128x4xf32>
    %c0_17 = arith.constant 0 : index
    %c0_18 = arith.constant 0 : index
    %45 = vector.load %arg5[%c0_17, %c0_18] : memref<1x4xf32, #tpu.memory_space<vmem>>, vector<1x4xf32>
    %46 = vector.broadcast %45 : vector<1x4xf32> to vector<128x4xf32>
    %47 = arith.mulf %44, %46 : vector<128x4xf32>
    %c0_19 = arith.constant 0 : index
    %c0_20 = arith.constant 0 : index
    %48 = vector.load %arg6[%c0_19, %c0_20] : memref<1x4xf32, #tpu.memory_space<vmem>>, vector<1x4xf32>
    %49 = vector.broadcast %48 : vector<1x4xf32> to vector<128x4xf32>
    %50 = arith.addf %47, %49 : vector<128x4xf32>
    %cst_21 = arith.constant -3.000000e+00 : f32
    %cst_22 = arith.constant 3.000000e+00 : f32
    %51 = vector.broadcast %cst_21 : f32 to vector<128x4xf32>
    %52 = arith.maximumf %51, %50 : vector<128x4xf32>
    %53 = vector.broadcast %cst_22 : f32 to vector<128x4xf32>
    %54 = arith.minimumf %53, %52 : vector<128x4xf32>
    %55 = arith.truncf %40 : vector<128x15xf32> to vector<128x15xbf16>
    %c0_23 = arith.constant 0 : index
    %c0_24 = arith.constant 0 : index
    %56 = vector.load %arg7[%c0_23, %c0_24] : memref<15x256xbf16, #tpu.memory_space<vmem>>, vector<15x256xbf16>
    %cst_25 = arith.constant dense<0.000000e+00> : vector<128x256xf32>
    %57 = tpu.matmul %55, %56, %cst_25 {dimension_numbers = #tpu.dot_dimension_numbers<[1], [0], [0], [1], [0, 0, 1, 1], [], []>} : vector<128x15xbf16>, vector<15x256xbf16>, vector<128x256xf32> -> vector<128x256xf32>
    %58 = arith.truncf %54 : vector<128x4xf32> to vector<128x4xbf16>
    %c0_26 = arith.constant 0 : index
    %c0_27 = arith.constant 0 : index
    %59 = vector.load %arg8[%c0_26, %c0_27] : memref<4x256xbf16, #tpu.memory_space<vmem>>, vector<4x256xbf16>
    %cst_28 = arith.constant dense<0.000000e+00> : vector<128x256xf32>
    %60 = tpu.matmul %58, %59, %cst_28 {dimension_numbers = #tpu.dot_dimension_numbers<[1], [0], [0], [1], [0, 0, 1, 1], [], []>} : vector<128x4xbf16>, vector<4x256xbf16>, vector<128x256xf32> -> vector<128x256xf32>
    %61 = arith.addf %57, %60 : vector<128x256xf32>
    %c0_29 = arith.constant 0 : index
    %c0_30 = arith.constant 0 : index
    %62 = vector.load %arg9[%c0_29, %c0_30] : memref<1x256xf32, #tpu.memory_space<vmem>>, vector<1x256xf32>
    %63 = vector.broadcast %62 : vector<1x256xf32> to vector<128x256xf32>
    %64 = arith.addf %61, %63 : vector<128x256xf32>
    %cst_31 = arith.constant 0.000000e+00 : f32
    %65 = vector.broadcast %cst_31 : f32 to vector<128x256xf32>
    %66 = arith.maximumf %64, %65 : vector<128x256xf32>
    %c0_32 = arith.constant 0 : index
    %c0_33 = arith.constant 0 : index
    %67 = vector.load %arg10[%c0_32, %c0_33] : memref<1x256xf32, #tpu.memory_space<vmem>>, vector<1x256xf32>
    %c0_34 = arith.constant 0 : index
    %c0_35 = arith.constant 0 : index
    %68 = vector.load %arg11[%c0_34, %c0_35] : memref<1x256xf32, #tpu.memory_space<vmem>>, vector<1x256xf32>
    %cst_36 = arith.constant dense<0.000000e+00> : vector<128xf32>
    %69 = vector.multi_reduction <add>, %66, %cst_36 [1] : vector<128x256xf32> to vector<128xf32>
    %70 = vector.shape_cast %69 : vector<128xf32> to vector<128x1xf32>
    %71 = arith.mulf %66, %66 : vector<128x256xf32>
    %cst_37 = arith.constant dense<0.000000e+00> : vector<128xf32>
    %72 = vector.multi_reduction <add>, %71, %cst_37 [1] : vector<128x256xf32> to vector<128xf32>
    %73 = vector.shape_cast %72 : vector<128xf32> to vector<128x1xf32>
    %cst_38 = arith.constant 3.906250e-03 : f32
    %74 = vector.broadcast %cst_38 : f32 to vector<128x1xf32>
    %75 = arith.mulf %70, %74 : vector<128x1xf32>
    %cst_39 = arith.constant 3.906250e-03 : f32
    %76 = vector.broadcast %cst_39 : f32 to vector<128x1xf32>
    %77 = arith.mulf %73, %76 : vector<128x1xf32>
    %78 = arith.mulf %75, %75 : vector<128x1xf32>
    %79 = arith.subf %77, %78 : vector<128x1xf32>
    %cst_40 = arith.constant 0.000000e+00 : f32
    %80 = vector.broadcast %cst_40 : f32 to vector<128x1xf32>
    %81 = arith.maximumf %79, %80 : vector<128x1xf32>
    %82 = vector.broadcast %75 : vector<128x1xf32> to vector<128x256xf32>
    %83 = arith.subf %66, %82 : vector<128x256xf32>
    %cst_41 = arith.constant 9.99999974E-6 : f32
    %84 = vector.broadcast %cst_41 : f32 to vector<128x1xf32>
    %85 = arith.addf %81, %84 : vector<128x1xf32>
    %86 = math.rsqrt %85 : vector<128x1xf32>
    %87 = vector.broadcast %86 : vector<128x1xf32> to vector<128x256xf32>
    %88 = arith.mulf %83, %87 : vector<128x256xf32>
    %89 = vector.broadcast %67 : vector<1x256xf32> to vector<128x256xf32>
    %90 = arith.mulf %88, %89 : vector<128x256xf32>
    %91 = vector.broadcast %68 : vector<1x256xf32> to vector<128x256xf32>
    %92 = arith.addf %90, %91 : vector<128x256xf32>
    %93 = arith.truncf %92 : vector<128x256xf32> to vector<128x256xbf16>
    %c0_42 = arith.constant 0 : index
    %c0_43 = arith.constant 0 : index
    %94 = vector.load %arg12[%c0_42, %c0_43] : memref<256x256xbf16, #tpu.memory_space<vmem>>, vector<256x256xbf16>
    %cst_44 = arith.constant dense<0.000000e+00> : vector<128x256xf32>
    %95 = tpu.matmul %93, %94, %cst_44 {dimension_numbers = #tpu.dot_dimension_numbers<[1], [0], [0], [1], [0, 0, 1, 1], [], []>} : vector<128x256xbf16>, vector<256x256xbf16>, vector<128x256xf32> -> vector<128x256xf32>
    %c0_45 = arith.constant 0 : index
    %c0_46 = arith.constant 0 : index
    %96 = vector.load %arg13[%c0_45, %c0_46] : memref<1x256xf32, #tpu.memory_space<vmem>>, vector<1x256xf32>
    %97 = vector.broadcast %96 : vector<1x256xf32> to vector<128x256xf32>
    %98 = arith.addf %95, %97 : vector<128x256xf32>
    %cst_47 = arith.constant 0.000000e+00 : f32
    %99 = vector.broadcast %cst_47 : f32 to vector<128x256xf32>
    %100 = arith.maximumf %98, %99 : vector<128x256xf32>
    %c0_48 = arith.constant 0 : index
    %c0_49 = arith.constant 0 : index
    %101 = vector.load %arg14[%c0_48, %c0_49] : memref<1x256xf32, #tpu.memory_space<vmem>>, vector<1x256xf32>
    %c0_50 = arith.constant 0 : index
    %c0_51 = arith.constant 0 : index
    %102 = vector.load %arg15[%c0_50, %c0_51] : memref<1x256xf32, #tpu.memory_space<vmem>>, vector<1x256xf32>
    %cst_52 = arith.constant dense<0.000000e+00> : vector<128xf32>
    %103 = vector.multi_reduction <add>, %100, %cst_52 [1] : vector<128x256xf32> to vector<128xf32>
    %104 = vector.shape_cast %103 : vector<128xf32> to vector<128x1xf32>
    %105 = arith.mulf %100, %100 : vector<128x256xf32>
    %cst_53 = arith.constant dense<0.000000e+00> : vector<128xf32>
    %106 = vector.multi_reduction <add>, %105, %cst_53 [1] : vector<128x256xf32> to vector<128xf32>
    %107 = vector.shape_cast %106 : vector<128xf32> to vector<128x1xf32>
    %cst_54 = arith.constant 3.906250e-03 : f32
    %108 = vector.broadcast %cst_54 : f32 to vector<128x1xf32>
    %109 = arith.mulf %104, %108 : vector<128x1xf32>
    %cst_55 = arith.constant 3.906250e-03 : f32
    %110 = vector.broadcast %cst_55 : f32 to vector<128x1xf32>
    %111 = arith.mulf %107, %110 : vector<128x1xf32>
    %112 = arith.mulf %109, %109 : vector<128x1xf32>
    %113 = arith.subf %111, %112 : vector<128x1xf32>
    %cst_56 = arith.constant 0.000000e+00 : f32
    %114 = vector.broadcast %cst_56 : f32 to vector<128x1xf32>
    %115 = arith.maximumf %113, %114 : vector<128x1xf32>
    %116 = vector.broadcast %109 : vector<128x1xf32> to vector<128x256xf32>
    %117 = arith.subf %100, %116 : vector<128x256xf32>
    %cst_57 = arith.constant 9.99999974E-6 : f32
    %118 = vector.broadcast %cst_57 : f32 to vector<128x1xf32>
    %119 = arith.addf %115, %118 : vector<128x1xf32>
    %120 = math.rsqrt %119 : vector<128x1xf32>
    %121 = vector.broadcast %120 : vector<128x1xf32> to vector<128x256xf32>
    %122 = arith.mulf %117, %121 : vector<128x256xf32>
    %123 = vector.broadcast %101 : vector<1x256xf32> to vector<128x256xf32>
    %124 = arith.mulf %122, %123 : vector<128x256xf32>
    %125 = vector.broadcast %102 : vector<1x256xf32> to vector<128x256xf32>
    %126 = arith.addf %124, %125 : vector<128x256xf32>
    %127 = arith.truncf %126 : vector<128x256xf32> to vector<128x256xbf16>
    %c0_58 = arith.constant 0 : index
    %c0_59 = arith.constant 0 : index
    %128 = vector.load %arg16[%c0_58, %c0_59] : memref<256x256xbf16, #tpu.memory_space<vmem>>, vector<256x256xbf16>
    %cst_60 = arith.constant dense<0.000000e+00> : vector<128x256xf32>
    %129 = tpu.matmul %127, %128, %cst_60 {dimension_numbers = #tpu.dot_dimension_numbers<[1], [0], [0], [1], [0, 0, 1, 1], [], []>} : vector<128x256xbf16>, vector<256x256xbf16>, vector<128x256xf32> -> vector<128x256xf32>
    %c0_61 = arith.constant 0 : index
    %c0_62 = arith.constant 0 : index
    %130 = vector.load %arg17[%c0_61, %c0_62] : memref<1x256xf32, #tpu.memory_space<vmem>>, vector<1x256xf32>
    %131 = vector.broadcast %130 : vector<1x256xf32> to vector<128x256xf32>
    %132 = arith.addf %129, %131 : vector<128x256xf32>
    %cst_63 = arith.constant 0.000000e+00 : f32
    %133 = vector.broadcast %cst_63 : f32 to vector<128x256xf32>
    %134 = arith.maximumf %132, %133 : vector<128x256xf32>
    %135 = arith.truncf %134 : vector<128x256xf32> to vector<128x256xbf16>
    %c0_64 = arith.constant 0 : index
    %c0_65 = arith.constant 0 : index
    %136 = vector.load %arg18[%c0_64, %c0_65] : memref<256x1xbf16, #tpu.memory_space<vmem>>, vector<256x1xbf16>
    %cst_66 = arith.constant dense<0.000000e+00> : vector<128x1xf32>
    %137 = tpu.matmul %135, %136, %cst_66 {dimension_numbers = #tpu.dot_dimension_numbers<[1], [0], [0], [1], [0, 0, 1, 1], [], []>} : vector<128x256xbf16>, vector<256x1xbf16>, vector<128x1xf32> -> vector<128x1xf32>
    %c0_67 = arith.constant 0 : index
    %c0_68 = arith.constant 0 : index
    %138 = vector.load %arg19[%c0_67, %c0_68] : memref<1x1xf32, #tpu.memory_space<vmem>>, vector<1x1xf32>
    %139 = vector.broadcast %138 : vector<1x1xf32> to vector<128x1xf32>
    %140 = arith.addf %137, %139 : vector<128x1xf32>
    %c0_69 = arith.constant 0 : index
    %c0_70 = arith.constant 0 : index
    %141 = vector.load %arg20[%c0_69, %c0_70] : memref<128x1xf32, #tpu.memory_space<vmem>>, vector<128x1xf32>
    tpu.vector_store %arg20[%c0_69, %c0_70], %140 {strides = array<i32>} : memref<128x1xf32, #tpu.memory_space<vmem>>, vector<128x1xf32>,
    return
  }
  func.func @transform_0(%arg0: i32) -> (i32, i32) {
    %c0_i32 = arith.constant 0 : i32
    %c0_i32_0 = arith.constant 0 : i32
    return %arg0, %c0_i32 : i32, i32
  }
  func.func @transform_1(%arg0: i32) -> (i32, i32) {
    %c0_i32 = arith.constant 0 : i32
    %c0_i32_0 = arith.constant 0 : i32
    return %arg0, %c0_i32 : i32, i32
  }
  func.func @transform_2(%arg0: i32) -> (i32, i32) {
    %c0_i32 = arith.constant 0 : i32
    %c0_i32_0 = arith.constant 0 : i32
    %c0_i32_1 = arith.constant 0 : i32
    return %c0_i32, %c0_i32_0 : i32, i32
  }
  func.func @transform_3(%arg0: i32) -> (i32, i32) {
    %c0_i32 = arith.constant 0 : i32
    %c0_i32_0 = arith.constant 0 : i32
    %c0_i32_1 = arith.constant 0 : i32
    return %c0_i32, %c0_i32_0 : i32, i32
  }
  func.func @transform_4(%arg0: i32) -> (i32, i32) {
    %c0_i32 = arith.constant 0 : i32
    %c0_i32_0 = arith.constant 0 : i32
    %c0_i32_1 = arith.constant 0 : i32
    return %c0_i32, %c0_i32_0 : i32, i32
  }
  func.func @transform_5(%arg0: i32) -> (i32, i32) {
    %c0_i32 = arith.constant 0 : i32
    %c0_i32_0 = arith.constant 0 : i32
    %c0_i32_1 = arith.constant 0 : i32
    return %c0_i32, %c0_i32_0 : i32, i32
  }
  func.func @transform_6(%arg0: i32) -> (i32, i32) {
    %c0_i32 = arith.constant 0 : i32
    %c0_i32_0 = arith.constant 0 : i32
    %c0_i32_1 = arith.constant 0 : i32
    return %c0_i32, %c0_i32_0 : i32, i32
  }
  func.func @transform_7(%arg0: i32) -> (i32, i32) {
    %c0_i32 = arith.constant 0 : i32
    %c0_i32_0 = arith.constant 0 : i32
    %c0_i32_1 = arith.constant 0 : i32
    return %c0_i32, %c0_i32_0 : i32, i32
  }
  func.func @transform_8(%arg0: i32) -> (i32, i32) {
    %c0_i32 = arith.constant 0 : i32
    %c0_i32_0 = arith.constant 0 : i32
    %c0_i32_1 = arith.constant 0 : i32
    return %c0_i32, %c0_i32_0 : i32, i32
  }
  func.func @transform_9(%arg0: i32) -> (i32, i32) {
    %c0_i32 = arith.constant 0 : i32
    %c0_i32_0 = arith.constant 0 : i32
    %c0_i32_1 = arith.constant 0 : i32
    return %c0_i32, %c0_i32_0 : i32, i32
  }
  func.func @transform_10(%arg0: i32) -> (i32, i32) {
    %c0_i32 = arith.constant 0 : i32
    %c0_i32_0 = arith.constant 0 : i32
    %c0_i32_1 = arith.constant 0 : i32
    return %c0_i32, %c0_i32_0 : i32, i32
  }
  func.func @transform_11(%arg0: i32) -> (i32, i32) {
    %c0_i32 = arith.constant 0 : i32
    %c0_i32_0 = arith.constant 0 : i32
    %c0_i32_1 = arith.constant 0 : i32
    return %c0_i32, %c0_i32_0 : i32, i32
  }
  func.func @transform_12(%arg0: i32) -> (i32, i32) {
    %c0_i32 = arith.constant 0 : i32
    %c0_i32_0 = arith.constant 0 : i32
    %c0_i32_1 = arith.constant 0 : i32
    return %c0_i32, %c0_i32_0 : i32, i32
  }
  func.func @transform_13(%arg0: i32) -> (i32, i32) {
    %c0_i32 = arith.constant 0 : i32
    %c0_i32_0 = arith.constant 0 : i32
    %c0_i32_1 = arith.constant 0 : i32
    return %c0_i32, %c0_i32_0 : i32, i32
  }
  func.func @transform_14(%arg0: i32) -> (i32, i32) {
    %c0_i32 = arith.constant 0 : i32
    %c0_i32_0 = arith.constant 0 : i32
    %c0_i32_1 = arith.constant 0 : i32
    return %c0_i32, %c0_i32_0 : i32, i32
  }
  func.func @transform_15(%arg0: i32) -> (i32, i32) {
    %c0_i32 = arith.constant 0 : i32
    %c0_i32_0 = arith.constant 0 : i32
    %c0_i32_1 = arith.constant 0 : i32
    return %c0_i32, %c0_i32_0 : i32, i32
  }
  func.func @transform_16(%arg0: i32) -> (i32, i32) {
    %c0_i32 = arith.constant 0 : i32
    %c0_i32_0 = arith.constant 0 : i32
    %c0_i32_1 = arith.constant 0 : i32
    return %c0_i32, %c0_i32_0 : i32, i32
  }
  func.func @transform_17(%arg0: i32) -> (i32, i32) {
    %c0_i32 = arith.constant 0 : i32
    %c0_i32_0 = arith.constant 0 : i32
    %c0_i32_1 = arith.constant 0 : i32
    return %c0_i32, %c0_i32_0 : i32, i32
  }
  func.func @transform_18(%arg0: i32) -> (i32, i32) {
    %c0_i32 = arith.constant 0 : i32
    %c0_i32_0 = arith.constant 0 : i32
    %c0_i32_1 = arith.constant 0 : i32
    return %c0_i32, %c0_i32_0 : i32, i32
  }
  func.func @transform_19(%arg0: i32) -> (i32, i32) {
    %c0_i32 = arith.constant 0 : i32
    %c0_i32_0 = arith.constant 0 : i32
    return %arg0, %c0_i32 : i32, i32
  }
}

</mosaic_0001>

<bundles_post_ra>
// kernel: tpu_custom_call.1
= control target key start
LH: loop header
LB: loop body
LE: loop exit
PB: predicated region body
PF: predicated region fallthrough
CT: control target
= control target key end

     0   :  { %s5106_s0 = inlined_call_operand.vmem [shape: f32[128,15], index: 0, kind: input, shape index: {}]   ;;  %s5107_s1 = inlined_call_operand.vmem [shape: f32[128,4], index: 1, kind: input, shape index: {}]   ;;  %s5108_s2 = inlined_call_operand.vmem [shape: f32[1,15], index: 2, kind: input, shape index: {}]   ;;  %s5109_s3 = inlined_call_operand.vmem [shape: f32[1,15], index: 3, kind: input, shape index: {}]   ;;  %s5110_s4 = inlined_call_operand.vmem [shape: f32[1,4], index: 4, kind: input, shape index: {}]   ;;  %s5111_s5 = inlined_call_operand.vmem [shape: f32[1,4], index: 5, kind: input, shape index: {}]   ;;  %s5112_s6 = inlined_call_operand.vmem [shape: bf16[15,256], index: 6, kind: input, shape index: {}]   ;;  %s5113_s7 = inlined_call_operand.vmem [shape: bf16[4,256], index: 7, kind: input, shape index: {}]   ;;  %s5114_s8 = inlined_call_operand.vmem [shape: f32[1,256], index: 8, kind: input, shape index: {}]   ;;  %s5115_s9 = inlined_call_operand.vmem [shape: f32[1,256], index: 9, kind: input, shape index: {}]   ;;  %s5116_s10 = inlined_call_operand.vmem [shape: f32[1,256], index: 10, kind: input, shape index: {}]   ;;  %s5117_s11 = inlined_call_operand.vmem [shape: bf16[256,256], index: 11, kind: input, shape index: {}]   ;;  %s5118_s12 = inlined_call_operand.vmem [shape: f32[1,256], index: 12, kind: input, shape index: {}]   ;;  %s5119_s13 = inlined_call_operand.vmem [shape: f32[1,256], index: 13, kind: input, shape index: {}]   ;;  %s5120_s14 = inlined_call_operand.vmem [shape: f32[1,256], index: 14, kind: input, shape index: {}]   ;;  %s5121_s15 = inlined_call_operand.hbm [shape: bf16[256,256], index: 15, kind: input, shape index: {}]   ;;  %s5122_s16 = inlined_call_operand.vmem [shape: f32[1,256], index: 16, kind: input, shape index: {}]   ;;  %s5123_s17 = inlined_call_operand.vmem [shape: bf16[256,1], index: 17, kind: input, shape index: {}]   ;;  %s5124_s18 = inlined_call_operand.<no memory space> [shape: f32[1,1], index: 18, kind: input, shape index: {}]   ;;  %s5125_s19 = inlined_call_operand.vmem [shape: f32[128,1], index: 19, kind: output, shape index: {}]  }
   0x1   :  { %5128 = sst [smem:[#allocation6_spill]] %s5106_s0  ;;  %v24_v0 = vstv %s5124_s18 }
   0x2   :  { %5129 = sst [smem:[#allocation7_spill]] %s5107_s1  ;;  %25 = vst [vmem:[#allocation2] sm:$0x1] %v24_v0 }
   0x3   :  { %5130 = sst [smem:[#allocation8_spill]] %s5108_s2 }
   0x4   :  { %5131 = sst [smem:[#allocation9_spill]] %s5109_s3 }
   0x5   :  { %26 = vsyncpa [#allocation4], 0  ;;  %s3359_s20 = smov [#allocation3]  }
   0x6   :  { %s62_s21 = sshll.u32 %s3359_s20, 4  ;;  %s63_s21 = int_to_ptr.vmem [resolvable:$true] %s62_s21 }
   0x7   :  { %s3345_s1 = scalar_lea.vmem %s63_s21, 4096  ;;  %p3350_p1 = scmp.lt.s32.totalorder %s63_s21, %s63_s21 }
   0x8   :  { %p3346_p0 = scmp.ne.s32.totalorder %s63_s21, %s3345_s1  ;;  %p3351_p2 = scmp.lt.s32.totalorder %s3345_s1, %s3345_s1 }
   0xa   :  { %p3352_p3 = por %p3351_p2, %p3350_p1 }
   0xc   :  { %p3353_p4 = pnand %p3352_p3, %p3346_p0 }
   0xe   :  { %3356 = shalt.err (!%p3353_p4)
}
   0xf   :  { %s3360_s22 = smov 128   ;;  %s3361_s2 = smov 8  }
  0x10   :  { %68 = dma.hbm_to_vmem [thread:$0]  %s5121_s15, 4096, %s63_s21, [#allocation4], %s3360_s22, %s3360_s22, %s3361_s2  }
  0x11   :  { %3357 = dma.done.wait [#allocation4], 4096  }
  0x12   :  { %3358 = vsyncadd [#allocation4], 4294963200  ;;  %vm127_vm0 = vcmask 121856   ;;  %s5132_s3 = sld [smem:[#allocation6_spill]]  ;;  %vm176_vm1 = vcmask 31744   ;;  %vm921_vm2 = vcmask 1046528  }
  0x13   :  { %s5133_s28 = sld [smem:[#allocation7_spill]]  ;;  %vm922_vm3 = vcmask 1047552   ;;  %vm769_vm4 = vcmask 1041408   ;;  %vm2882_vm5 = vcmask 7168  }
  0x14   :  { %s5135_s1 = sld [smem:[#allocation9_spill]] }
  0x18   :  { %v3473_v1 = vld [vmem:[%s5132_s3] sm:$0xff]  ;;  %v3481_v3 = vld [vmem:[%s5132_s3 + $0x8] sm:$0xff]  ;;  %v3512_v18 = vld [vmem:[%s5132_s3 + $0x10] sm:$0xff] }
  0x19   :  { %v95_v2 = vld [vmem:[%s5133_s28] sm:$0xff]  ;;  %v128_v4 = vsel %vm127_vm0, %v3473_v1, 0.0  ;;  %v96_v6 = vld [vmem:[%s5133_s28 + $0x8] sm:$0xff]  ;;  %v131_v9 = vsel %vm127_vm0, %v3481_v3, 0.0  ;;  %v241_v10 = vmul.f32 %v3473_v1, %v3473_v1  ;;  %v242_v12 = vmul.f32 %v3481_v3, %v3481_v3  ;;  %v97_v19 = vld [vmem:[%s5133_s28 + $0x10] sm:$0xff] }
  0x1a   :  { %v3485_v5 = vmul.f32 0.5, %v95_v2  ;;  %129 = vadd.xlane.f32.xlu0 %v128_v4  ;;  %v3490_v7 = vmul.f32 0.5, %v96_v6  ;;  %v3520_v20 = vld [vmem:[%s5132_s3 + $0x18] sm:$0xff]  ;;  %v134_v23 = vsel %vm127_vm0, %v3512_v18, 0.0  ;;  %v3528_v24 = vmul.f32 0.5, %v97_v19  ;;  %v99_v33 = vld [vmem:[%s5133_s28 + $0x20] sm:$0xff] }
  0x1b   :  { %v257_v13 = vsel %vm127_vm0, %v241_v10, 0.0  ;;  %v260_v15 = vsel %vm127_vm0, %v242_v12, 0.0  ;;  %v98_v22 = vld [vmem:[%s5133_s28 + $0x18] sm:$0xff]  ;;  %v137_v25 = vsel %vm127_vm0, %v3520_v20, 0.0  ;;  %v243_v28 = vmul.f32 %v3512_v18, %v3512_v18  ;;  %v100_v36 = vld [vmem:[%s5133_s28 + $0x28] sm:$0xff]  ;;  %v3557_v37 = vld [vmem:[%s5132_s3 + $0x20] sm:$0xff] }
  0x1c   :  { %v177_v8 = vsel %vm176_vm1, %v3485_v5, 0.0  ;;  %v180_v11 = vsel %vm176_vm1, %v3490_v7, 0.0  ;;  %v305_v14 = vmul.f32 %v3485_v5, %v3485_v5  ;;  %v306_v16 = vmul.f32 %v3490_v7, %v3490_v7  ;;  %v3563_v39 = vld [vmem:[%s5132_s3 + $0x28] sm:$0xff]  ;;  %v3593_v55 = vld [vmem:[%s5132_s3 + $0x30] sm:$0xff]  ;;  %v3601_v57 = vld [vmem:[%s5132_s3 + $0x38] sm:$0xff] }
  0x1d   :  { %178 = vadd.xlane.f32.xlu1 %v177_v8  ;;  %v3532_v26 = vmul.f32 0.5, %v98_v22  ;;  %v183_v27 = vsel %vm176_vm1, %v3528_v24, 0.0  ;;  %v244_v30 = vmul.f32 %v3520_v20, %v3520_v20  ;;  %v263_v31 = vsel %vm127_vm0, %v243_v28, 0.0  ;;  %v101_v56 = vld [vmem:[%s5133_s28 + $0x30] sm:$0xff]  ;;  %v102_v58 = vld [vmem:[%s5133_s28 + $0x38] sm:$0xff] }
  0x1e   :  { %132 = vadd.xlane.f32.xlu0 %v131_v9  ;;  %v321_v17 = vsel %vm176_vm1, %v305_v14, 0.0  ;;  %v324_v21 = vsel %vm176_vm1, %v306_v16, 0.0  ;;  %v307_v32 = vmul.f32 %v3528_v24, %v3528_v24  ;;  %v3566_v41 = vmul.f32 0.5, %v99_v33  ;;  %v3126_v6 = vld [vmem:[%s5112_s6 + $0x4] ss:$8 sps:$4 sm:$0xff]  }
  0x1f   :  { %v186_v29 = vsel %vm176_vm1, %v3532_v26, 0.0  ;;  %v266_v34 = vsel %vm127_vm0, %v244_v30, 0.0  ;;  %v308_v35 = vmul.f32 %v3532_v26, %v3532_v26  ;;  %v3568_v42 = vmul.f32 0.5, %v100_v36  ;;  %v3128_v16 = vld [vmem:[%s5112_s6] ss:$8 sps:$4 sm:$0xff]  }
  0x20   :  { %v327_v38 = vsel %vm176_vm1, %v307_v32, 0.0  ;;  %v245_v43 = vmul.f32 %v3557_v37, %v3557_v37  ;;  %v246_v44 = vmul.f32 %v3563_v39, %v3563_v39  ;;  %v140_v45 = vsel %vm127_vm0, %v3557_v37, 0.0  ;;  %v2940_v10 = vld.sshfl [vmem:[%s5113_s7] sm:$0x33 pattern:$0x76325410] }
  0x21   :  { %181 = vadd.xlane.f32.xlu1 %v180_v11  ;;  %v330_v40 = vsel %vm176_vm1, %v308_v35, 0.0  ;;  %v309_v46 = vmul.f32 %v3566_v41, %v3566_v41  ;;  %v310_v47 = vmul.f32 %v3568_v42, %v3568_v42  ;;  %v143_v48 = vsel %vm127_vm0, %v3563_v39, 0.0  ;;  %v3652_v30 = vld [vmem:[%s5132_s3 + $0x48] sm:$0xff]  ;;  %s5134_s7 = sld [smem:[#allocation8_spill]] }
  0x22   :  { %258 = vadd.xlane.f32.xlu0 %v257_v13  ;;  %v189_v49 = vsel %vm176_vm1, %v3566_v41, 0.0  ;;  %v192_v50 = vsel %vm176_vm1, %v3568_v42, 0.0  ;;  %v269_v51 = vsel %vm127_vm0, %v245_v43, 0.0  ;;  %v272_v52 = vsel %vm127_vm0, %v246_v44, 0.0 }
  0x23   :  { %v333_v53 = vsel %vm176_vm1, %v309_v46, 0.0  ;;  %v336_v54 = vsel %vm176_vm1, %v310_v47, 0.0  ;;  %v146_v59 = vsel %vm127_vm0, %v3593_v55, 0.0  ;;  %v3608_v60 = vmul.f32 0.5, %v101_v56 }
  0x24   :  { %v149_v61 = vsel %vm127_vm0, %v3601_v57, 0.0  ;;  %v3612_v62 = vmul.f32 0.5, %v102_v58  ;;  %v247_v0 = vmul.f32 %v3593_v55, %v3593_v55  ;;  %v248_v4 = vmul.f32 %v3601_v57, %v3601_v57 }
  0x25   :  { %261 = vadd.xlane.f32.xlu1 %v260_v15  ;;  %v195_v63 = vsel %vm176_vm1, %v3608_v60, 0.0  ;;  %v3362_v8 = vmov 65535   ;;  %v311_v13 = vmul.f32 %v3608_v60, %v3608_v60  ;;  %v744_v14 = vcombine.high %v2940_v10, %v2940_v10 }
  0x26   :  { %322 = vadd.xlane.f32.xlu0 %v321_v17  ;;  %v198_v2 = vsel %vm176_vm1, %v3612_v62, 0.0  ;;  %v923_v9 = vsel %vm921_vm2, 4294967295, %v3362_v8  ;;  %v275_v12 = vsel %vm127_vm0, %v247_v0, 0.0  ;;  %v278_v17 = vsel %vm127_vm0, %v248_v4, 0.0 }
  0x27   :  { %v924_v11 = vsel %vm922_vm3, %v923_v9, 0  ;;  %v312_v19 = vmul.f32 %v3612_v62, %v3612_v62  ;;  %2941 = vmatprep.subr.msk.bf16.mxu0 %vm769_vm4, %v744_v14  ;;  %v3363_v28 = vmov 0   ;;  %v250_v43 = vmul.f32 %v3652_v30, %v3652_v30  ;;  %v3732_v14 = vld [vmem:[%s5132_s3 + $0x68] sm:$0xff] }
  0x28   :  { %v929_v15 = vand.u32 %v3126_v6, %v924_v11  ;;  %v926_v22 = vand.u32 %v3128_v16, %v924_v11  ;;  %808 = vmatprep.mubr.bf16.mxu0 %v3363_v28  ;;  %963 = vmatprep.mubr.bf16.mxu1 %v3363_v28  ;;  %v3723_v11 = vld [vmem:[%s5132_s3 + $0x60] sm:$0xff] }
  0x29   :  { %325 = vadd.xlane.f32.xlu1 %v324_v21  ;;  %v771_v21 = vsel %vm769_vm4, %v2940_v10, 0  ;;  %v284_v46 = vsel %vm127_vm0, %v250_v43, 0.0  ;;  %v164_v16 = vsel %vm127_vm0, %v3723_v11, 0.0  ;;  %v109_v43 = vld [vmem:[%s5133_s28 + $0x70] sm:$0xff] }
  0x2a   :  { %135 = vadd.xlane.f32.xlu0 %v134_v23  ;;  %945 = vmatprep.subr.bf16.mxu1 %v929_v15  ;;  %v339_v23 = vsel %vm176_vm1, %v311_v13, 0.0  ;;  %v108_v15 = vld [vmem:[%s5133_s28 + $0x68] sm:$0xff] }
  0x2b   :  { %791 = vmatpush1.bf16.msra.mxu0 %v771_v21  ;;  %946 = vmatpush1.bf16.msra.mxu1 %v926_v22  ;;  %v3743_v21 = vmul.f32 0.5, %v108_v15 }
  0x2d   :  { %138 = vadd.xlane.f32.xlu1 %v137_v25  ;;  %v3641_v25 = vld [vmem:[%s5132_s3 + $0x40] sm:$0xff] }
  0x2e   :  { %184 = vadd.xlane.f32.xlu0 %v183_v27  ;;  %v103_v27 = vld [vmem:[%s5133_s28 + $0x40] sm:$0xff]  ;;  %v152_v32 = vsel %vm127_vm0, %v3641_v25, 0.0 }
  0x2f   :  { %v3659_v33 = vmul.f32 0.5, %v103_v27  ;;  %v216_v27 = vsel %vm176_vm1, %v3743_v21, 0.0 }
  0x31   :  { %187 = vadd.xlane.f32.xlu1 %v186_v29  ;;  %v342_v29 = vsel %vm176_vm1, %v312_v19, 0.0  ;;  %v201_v36 = vsel %vm176_vm1, %v3659_v33, 0.0  ;;  %v167_v19 = vsel %vm127_vm0, %v3732_v14, 0.0 }
  0x32   :  { %264 = vadd.xlane.f32.xlu0 %v263_v31  ;;  %v104_v31 = vld [vmem:[%s5133_s28 + $0x48] sm:$0xff] }
  0x33   :  { %v3663_v35 = vmul.f32 0.5, %v104_v31 }
  0x35   :  { %267 = vadd.xlane.f32.xlu1 %v266_v34  ;;  %v155_v34 = vsel %vm127_vm0, %v3652_v30, 0.0  ;;  %v314_v47 = vmul.f32 %v3663_v35, %v3663_v35 }
  0x36   :  { %328 = vadd.xlane.f32.xlu0 %v327_v38  ;;  %v249_v38 = vmul.f32 %v3641_v25, %v3641_v25 }
  0x38   :  { %v281_v44 = vsel %vm127_vm0, %v249_v38, 0.0 }
  0x39   :  { %331 = vadd.xlane.f32.xlu1 %v330_v40  ;;  %v204_v40 = vsel %vm176_vm1, %v3663_v35, 0.0 }
  0x3a   :  { %141 = vadd.xlane.f32.xlu0 %v140_v45  ;;  %v313_v45 = vmul.f32 %v3659_v33, %v3659_v33 }
  0x3d   :  { %144 = vadd.xlane.f32.xlu1 %v143_v48  ;;  %v345_v48 = vsel %vm176_vm1, %v313_v45, 0.0  ;;  %v3772_v45 = vld [vmem:[%s5132_s3 + $0x78] sm:$0xff] }
  0x3e   :  { %190 = vadd.xlane.f32.xlu0 %v189_v49  ;;  %v3683_v49 = vld [vmem:[%s5132_s3 + $0x50] sm:$0xff] }
  0x41   :  { %193 = vadd.xlane.f32.xlu1 %v192_v50  ;;  %v105_v50 = vld [vmem:[%s5133_s28 + $0x50] sm:$0xff] }
  0x42   :  { %270 = vadd.xlane.f32.xlu0 %v269_v51  ;;  %v348_v51 = vsel %vm176_vm1, %v314_v47, 0.0  ;;  %v3699_v56 = vmul.f32 0.5, %v105_v50  ;;  %v173_v50 = vsel %vm127_vm0, %v3772_v45, 0.0 }
  0x44   :  { %v315_v6 = vmul.f32 %v3699_v56, %v3699_v56 }
  0x45   :  { %273 = vadd.xlane.f32.xlu1 %v272_v52  ;;  %v3692_v52 = vld [vmem:[%s5132_s3 + $0x58] sm:$0xff] }
  0x46   :  { %334 = vadd.xlane.f32.xlu0 %v333_v53  ;;  %v106_v53 = vld [vmem:[%s5133_s28 + $0x58] sm:$0xff]  ;;  %v161_v58 = vsel %vm127_vm0, %v3692_v52, 0.0  ;;  %v351_v10 = vsel %vm176_vm1, %v315_v6, 0.0 }
  0x49   :  { %337 = vadd.xlane.f32.xlu1 %v336_v54  ;;  %v158_v54 = vsel %vm127_vm0, %v3683_v49, 0.0 }
  0x4a   :  { %147 = vadd.xlane.f32.xlu0 %v146_v59  ;;  %v3703_v59 = vmul.f32 0.5, %v106_v53 }
  0x4c   :  { %v210_v0 = vsel %vm176_vm1, %v3703_v59, 0.0  ;;  %v316_v9 = vmul.f32 %v3703_v59, %v3703_v59 }
  0x4d   :  { %150 = vadd.xlane.f32.xlu1 %v149_v61  ;;  %v207_v61 = vsel %vm176_vm1, %v3699_v56, 0.0 }
  0x4e   :  { %196 = vadd.xlane.f32.xlu0 %v195_v63  ;;  %v251_v63 = vmul.f32 %v3683_v49, %v3683_v49  ;;  %v354_v13 = vsel %vm176_vm1, %v316_v9, 0.0 }
  0x50   :  { %v287_v4 = vsel %vm127_vm0, %v251_v63, 0.0 }
  0x51   :  { %199 = vadd.xlane.f32.xlu1 %v198_v2  ;;  %v252_v2 = vmul.f32 %v3692_v52, %v3692_v52 }
  0x52   :  { %276 = vadd.xlane.f32.xlu0 %v275_v12  ;;  %v107_v12 = vld [vmem:[%s5133_s28 + $0x60] sm:$0xff] }
  0x53   :  { %v290_v8 = vsel %vm127_vm0, %v252_v2, 0.0 }
  0x55   :  { %279 = vadd.xlane.f32.xlu1 %v278_v17  ;;  %v3739_v17 = vmul.f32 0.5, %v107_v12 }
  0x56   :  { %340 = vadd.xlane.f32.xlu0 %v339_v23  ;;  %v253_v23 = vmul.f32 %v3723_v11, %v3723_v11 }
  0x57   :  { %v213_v22 = vsel %vm176_vm1, %v3739_v17, 0.0 }
  0x58   :  { %v293_v31 = vsel %vm127_vm0, %v253_v23, 0.0 }
  0x59   :  { %343 = vadd.xlane.f32.xlu1 %v342_v29  ;;  %v254_v29 = vmul.f32 %v3732_v14, %v3732_v14 }
  0x5a   :  { %153 = vadd.xlane.f32.xlu0 %v152_v32  ;;  %v317_v32 = vmul.f32 %v3739_v17, %v3739_v17 }
  0x5c   :  { %v357_v38 = vsel %vm176_vm1, %v317_v32, 0.0 }
  0x5d   :  { %156 = vadd.xlane.f32.xlu1 %v155_v34  ;;  %v296_v34 = vsel %vm127_vm0, %v254_v29, 0.0 }
  0x5e   :  { %202 = vadd.xlane.f32.xlu0 %v201_v36  ;;  %v318_v36 = vmul.f32 %v3743_v21, %v3743_v21 }
  0x61   :  { %205 = vadd.xlane.f32.xlu1 %v204_v40  ;;  %v3763_v40 = vld [vmem:[%s5132_s3 + $0x70] sm:$0xff] }
  0x62   :  { %282 = vadd.xlane.f32.xlu0 %v281_v44  ;;  %v360_v44 = vsel %vm176_vm1, %v318_v36, 0.0  ;;  %v170_v47 = vsel %vm127_vm0, %v3763_v40, 0.0 }
  0x65   :  { %285 = vadd.xlane.f32.xlu1 %v284_v46  ;;  %v110_v46 = vld [vmem:[%s5133_s28 + $0x78] sm:$0xff] }
  0x66   :  { %346 = vadd.xlane.f32.xlu0 %v345_v48  ;;  %v3779_v48 = vmul.f32 0.5, %v109_v43 }
  0x68   :  { %v219_v53 = vsel %vm176_vm1, %v3779_v48, 0.0 }
  0x69   :  { %349 = vadd.xlane.f32.xlu1 %v348_v51  ;;  %v3783_v51 = vmul.f32 0.5, %v110_v46 }
  0x6a   :  { %159 = vadd.xlane.f32.xlu0 %v158_v54  ;;  %v255_v54 = vmul.f32 %v3763_v40, %v3763_v40 }
  0x6c   :  { %v299_v63 = vsel %vm127_vm0, %v255_v54, 0.0 }
  0x6d   :  { %162 = vadd.xlane.f32.xlu1 %v161_v58  ;;  %v222_v58 = vsel %vm176_vm1, %v3783_v51, 0.0 }
  0x6e   :  { %208 = vadd.xlane.f32.xlu0 %v207_v61  ;;  %v256_v61 = vmul.f32 %v3772_v45, %v3772_v45 }
  0x70   :  { %v302_v2 = vsel %vm127_vm0, %v256_v61, 0.0 }
  0x71   :  { %211 = vadd.xlane.f32.xlu1 %v210_v0  ;;  %v319_v0 = vmul.f32 %v3779_v48, %v3779_v48 }
  0x72   :  { %288 = vadd.xlane.f32.xlu0 %v287_v4  ;;  %v320_v4 = vmul.f32 %v3783_v51, %v3783_v51 }
  0x73   :  { %v363_v6 = vsel %vm176_vm1, %v319_v0, 0.0 }
  0x75   :  { %291 = vadd.xlane.f32.xlu1 %v290_v8  ;;  %v366_v8 = vsel %vm176_vm1, %v320_v4, 0.0 }
  0x76   :  { %352 = vadd.xlane.f32.xlu0 %v351_v10 }
  0x79   :  { %355 = vadd.xlane.f32.xlu1 %v354_v13 }
  0x7a   :  { %165 = vadd.xlane.f32.xlu0 %v164_v16 }
  0x7d   :  { %168 = vadd.xlane.f32.xlu1 %v167_v19 }
  0x7e   :  { %214 = vadd.xlane.f32.xlu0 %v213_v22 }
  0x81   :  { %217 = vadd.xlane.f32.xlu1 %v216_v27 }
  0x82   :  { %294 = vadd.xlane.f32.xlu0 %v293_v31 }
  0x85   :  { %297 = vadd.xlane.f32.xlu1 %v296_v34 }
  0x86   :  { %358 = vadd.xlane.f32.xlu0 %v357_v38 }
  0x89   :  { %361 = vadd.xlane.f32.xlu1 %v360_v44 }
  0x8a   :  { %171 = vadd.xlane.f32.xlu0 %v170_v47 }
  0x8d   :  { %174 = vadd.xlane.f32.xlu1 %v173_v50 }
  0x8e   :  { %220 = vadd.xlane.f32.xlu0 %v219_v53 }
  0x91   :  { %223 = vadd.xlane.f32.xlu1 %v222_v58 }
  0x92   :  { %300 = vadd.xlane.f32.xlu0 %v299_v63 }
  0x95   :  { %303 = vadd.xlane.f32.xlu1 %v302_v2 }
  0x96   :  { %364 = vadd.xlane.f32.xlu0 %v363_v6 }
  0x99   :  { %367 = vadd.xlane.f32.xlu1 %v366_v8 }
  0xa3   :  { %v130_v9 = vpop.xlane.xlu0 %129 }
  0xa6   :  { %v179_v10 = vpop.xlane.xlu1 %178 }
  0xa7   :  { %v133_v12 = vpop.xlane.xlu0 %132  ;;  %v225_v15 = vadd.f32 %v179_v10, %v130_v9 }
  0xa9   :  { %v385_v23 = vmul.f32 0.05263158, %v225_v15 }
  0xaa   :  { %v182_v13 = vpop.xlane.xlu1 %181 }
  0xab   :  { %v259_v16 = vpop.xlane.xlu0 %258  ;;  %v226_v19 = vadd.f32 %v182_v13, %v133_v12  ;;  %v417_v34 = vmul.f32 %v385_v23, %v385_v23 }
  0xad   :  { %v386_v29 = vmul.f32 0.05263158, %v226_v19 }
  0xae   :  { %v262_v22 = vpop.xlane.xlu1 %261 }
  0xaf   :  { %v323_v27 = vpop.xlane.xlu0 %322  ;;  %v418_v47 = vmul.f32 %v386_v29, %v386_v29 }
  0xb0   :  { %v369_v31 = vadd.f32 %v323_v27, %v259_v16 }
  0xb2   :  { %v326_v32 = vpop.xlane.xlu1 %325  ;;  %v401_v36 = vmul.f32 0.05263158, %v369_v31 }
  0xb3   :  { %v370_v38 = vadd.f32 %v326_v32, %v262_v22  ;;  %v136_v43 = vpop.xlane.xlu0 %135 }
  0xb4   :  { %v433_v44 = vsub.f32 %v401_v36, %v417_v34 }
  0xb5   :  { %v402_v46 = vmul.f32 0.05263158, %v370_v38 }
  0xb6   :  { %v139_v50 = vpop.xlane.xlu1 %138  ;;  %v449_v53 = vmax.f32 %v433_v44, 0.0 }
  0xb7   :  { %v434_v54 = vsub.f32 %v402_v46, %v418_v47  ;;  %v185_v58 = vpop.xlane.xlu0 %184 }
  0xb8   :  { %v465_v61 = vadd.f32 1e-05, %v449_v53  ;;  %v227_v4 = vadd.f32 %v185_v58, %v136_v43  ;;  %v607_v43 = vsub.f32 %v3485_v5, %v385_v23 }
  0xb9   :  { %v450_v63 = vmax.f32 %v434_v54, 0.0  ;;  %v3814_v54 = vld [vmem:[%s5110_s4] ss:$0 sm:$0xff] }
  0xba   :  { %v188_v0 = vpop.xlane.xlu1 %187  ;;  %3241 = vrsqrt.f32 %v465_v61  ;;  %v3801_v10 = vmul.f32 0.05263158, %v227_v4  ;;  %v608_v4 = vsub.f32 %v3490_v7, %v386_v29 }
  0xbb   :  { %v466_v2 = vadd.f32 1e-05, %v450_v63  ;;  %v265_v6 = vpop.xlane.xlu0 %264  ;;  %v228_v8 = vadd.f32 %v188_v0, %v139_v50  ;;  %v497_v50 = vsub.f32 %v3473_v1, %v385_v23  ;;  %v3819_v0 = vld [vmem:[%s5134_s7] ss:$0 sm:$0xff] }
  0xbc   :  { %v419_v19 = vmul.f32 %v3801_v10, %v3801_v10 }
  0xbd   :  { %3243 = vrsqrt.f32 %v466_v2  ;;  %v3803_v13 = vmul.f32 0.05263158, %v228_v8  ;;  %v498_v2 = vsub.f32 %v3481_v3, %v386_v29  ;;  %v3833_v3 = vld [vmem:[%s5135_s1] ss:$0 sm:$0xff] }
  0xbe   :  { %v268_v9 = vpop.xlane.xlu1 %267 }
  0xbf   :  { %v329_v12 = vpop.xlane.xlu0 %328  ;;  %v420_v34 = vmul.f32 %v3803_v13, %v3803_v13 }
  0xc0   :  { %v371_v15 = vadd.f32 %v329_v12, %v265_v6 }
  0xc2   :  { %v332_v16 = vpop.xlane.xlu1 %331  ;;  %v403_v22 = vmul.f32 0.05263158, %v371_v15 }
  0xc3   :  { %v372_v27 = vadd.f32 %v332_v16, %v268_v9  ;;  %v142_v31 = vpop.xlane.xlu0 %141  ;;  %v3826_v9 = vld [vmem:[%s5111_s5] ss:$0 sm:$0xff] }
  0xc4   :  { %v435_v32 = vsub.f32 %v403_v22, %v419_v19 }
  0xc5   :  { %v404_v36 = vmul.f32 0.05263158, %v372_v27 }
  0xc6   :  { %v145_v38 = vpop.xlane.xlu1 %144  ;;  %v451_v44 = vmax.f32 %v435_v32, 0.0 }
  0xc7   :  { %v436_v46 = vsub.f32 %v404_v36, %v420_v34  ;;  %v3242_v47 = vpop.eup %3241  ;;  %v191_v53 = vpop.xlane.xlu0 %190 }
  0xc8   :  { %v467_v58 = vadd.f32 1e-05, %v451_v44  ;;  %v623_v63 = vmul.f32 %v3242_v47, %v607_v43  ;;  %v513_v23 = vmul.f32 %v3242_v47, %v497_v50  ;;  %v229_v8 = vadd.f32 %v191_v53, %v142_v31 }
  0xc9   :  { %v452_v61 = vmax.f32 %v436_v46, 0.0 }
  0xca   :  { %v3244_v5 = vpop.eup %3243  ;;  %v194_v1 = vpop.xlane.xlu1 %193  ;;  %3245 = vrsqrt.f32 %v467_v58  ;;  %v646_v16 = vmul.f32 %v3814_v54, %v623_v63  ;;  %v536_v22 = vmul.f32 %v3819_v0, %v513_v23  ;;  %v3838_v34 = vmul.f32 0.05263158, %v229_v8 }
  0xcb   :  { %v468_v6 = vadd.f32 1e-05, %v452_v61  ;;  %v271_v12 = vpop.xlane.xlu0 %270  ;;  %v624_v15 = vmul.f32 %v3244_v5, %v608_v4  ;;  %v514_v19 = vmul.f32 %v3244_v5, %v498_v2  ;;  %v230_v7 = vadd.f32 %v194_v1, %v145_v38 }
  0xcc   :  { %v669_v31 = vadd.f32 %v3826_v9, %v646_v16  ;;  %v559_v36 = vadd.f32 %v3833_v3, %v536_v22  ;;  %v421_v5 = vmul.f32 %v3838_v34, %v3838_v34 }
  0xcd   :  { %3247 = vrsqrt.f32 %v468_v6  ;;  %v647_v27 = vmul.f32 %v3814_v54, %v624_v15  ;;  %v537_v32 = vmul.f32 %v3819_v0, %v514_v19  ;;  %v3843_v47 = vmul.f32 0.05263158, %v230_v7 }
  0xce   :  { %v274_v29 = vpop.xlane.xlu1 %273  ;;  %v2924_v53 = vclamps-f32 %v669_v31, 3.0  ;;  %v2906_v61 = vclamps-f32 %v559_v36, 3.0  ;;  %v609_v19 = vsub.f32 %v3528_v24, %v3801_v10  ;;  %v610_v24 = vsub.f32 %v3532_v26, %v3803_v13 }
  0xcf   :  { %v335_v43 = vpop.xlane.xlu0 %334  ;;  %v670_v44 = vadd.f32 %v3826_v9, %v647_v27  ;;  %v560_v46 = vadd.f32 %v3833_v3, %v537_v32  ;;  %v422_v15 = vmul.f32 %v3843_v47, %v3843_v47  ;;  %v499_v27 = vsub.f32 %v3512_v18, %v3801_v10 }
  0xd0   :  { %v373_v50 = vadd.f32 %v335_v43, %v271_v12 }
  0xd1   :  { %v2925_v58 = vclamps-f32 %v670_v44, 3.0  ;;  %v2907_v63 = vclamps-f32 %v560_v46, 3.0  ;;  %v500_v46 = vsub.f32 %v3520_v20, %v3803_v13 }
  0xd2   :  { %v338_v38 = vpop.xlane.xlu1 %337  ;;  %v405_v2 = vmul.f32 0.05263158, %v373_v50 }
  0xd3   :  { %v374_v4 = vadd.f32 %v338_v38, %v274_v29  ;;  %v148_v1 = vpop.xlane.xlu0 %147  ;;  %v727_v23 = vpack.c.bf16 %v2925_v58, %v2924_v53  ;;  %v717_v6 = vpack.c.bf16 %v2907_v63, %v2906_v61 }
  0xd4   :  { %v437_v8 = vsub.f32 %v405_v2, %v421_v5 }
  0xd5   :  { %v406_v16 = vmul.f32 0.05263158, %v374_v4  ;;  %2942 = vmatmul.mubr.msk.bf16.vlgmr.msra.gmra.mxu0 %vm176_vm1, %v727_v23  ;;  %2952 = vmatmul.mubr.msk.bf16.vlgmr.msra.gmra.mxu1 %vm127_vm0, %v717_v6 }
  0xd6   :  { %v151_v12 = vpop.xlane.xlu1 %150  ;;  %v453_v22 = vmax.f32 %v437_v8, 0.0  ;;  %818 = vmatprep.mubr.bf16.mxu0 %v3363_v28  ;;  %973 = vmatprep.mubr.bf16.mxu1 %v3363_v28 }
  0xd7   :  { %v438_v7 = vsub.f32 %v406_v16, %v422_v15  ;;  %v3246_v29 = vpop.eup %3245  ;;  %v197_v31 = vpop.xlane.xlu0 %196 }
  0xd8   :  { %v469_v32 = vadd.f32 1e-05, %v453_v22  ;;  %v625_v43 = vmul.f32 %v3246_v29, %v609_v19  ;;  %v515_v38 = vmul.f32 %v3246_v29, %v499_v27  ;;  %v231_v58 = vadd.f32 %v197_v31, %v148_v1 }
  0xd9   :  { %v454_v36 = vmax.f32 %v438_v7, 0.0 }
  0xda   :  { %v3248_v44 = vpop.eup %3247  ;;  %v200_v50 = vpop.xlane.xlu1 %199  ;;  %3249 = vrsqrt.f32 %v469_v32  ;;  %v648_v18 = vmul.f32 %v3814_v54, %v625_v43  ;;  %v538_v5 = vmul.f32 %v3819_v0, %v515_v38  ;;  %v3866_v13 = vmul.f32 0.05263158, %v231_v58 }
  0xdb   :  { %v470_v53 = vadd.f32 1e-05, %v454_v36  ;;  %v277_v61 = vpop.xlane.xlu0 %276  ;;  %v626_v63 = vmul.f32 %v3248_v44, %v610_v24  ;;  %v516_v10 = vmul.f32 %v3248_v44, %v500_v46  ;;  %v232_v2 = vadd.f32 %v200_v50, %v151_v12 }
  0xdc   :  { %v671_v23 = vadd.f32 %v3826_v9, %v648_v18  ;;  %v561_v1 = vadd.f32 %v3833_v3, %v538_v5  ;;  %v423_v31 = vmul.f32 %v3866_v13, %v3866_v13  ;;  %v611_v58 = vsub.f32 %v3566_v41, %v3838_v34 }
  0xdd   :  { %3251 = vrsqrt.f32 %v470_v53  ;;  %v649_v20 = vmul.f32 %v3814_v54, %v626_v63  ;;  %v539_v26 = vmul.f32 %v3819_v0, %v516_v10  ;;  %v3871_v16 = vmul.f32 0.05263158, %v232_v2 }
  0xde   :  { %v280_v4 = vpop.xlane.xlu1 %279  ;;  %v2926_v22 = vclamps-f32 %v671_v23, 3.0  ;;  %v2908_v29 = vclamps-f32 %v561_v1, 3.0  ;;  %v501_v10 = vsub.f32 %v3557_v37, %v3838_v34  ;;  %v612_v41 = vsub.f32 %v3568_v42, %v3843_v47 }
  0xdf   :  { %v341_v6 = vpop.xlane.xlu0 %340  ;;  %v672_v8 = vadd.f32 %v3826_v9, %v649_v20  ;;  %v562_v15 = vadd.f32 %v3833_v3, %v539_v26  ;;  %v424_v50 = vmul.f32 %v3871_v16, %v3871_v16  ;;  %v502_v26 = vsub.f32 %v3563_v39, %v3843_v47 }
  0xe0   :  { %v375_v19 = vadd.f32 %v341_v6, %v277_v61 }
  0xe1   :  { %v2927_v7 = vclamps-f32 %v672_v8, 3.0  ;;  %v2909_v27 = vclamps-f32 %v562_v15, 3.0 }
  0xe2   :  { %v344_v12 = vpop.xlane.xlu1 %343  ;;  %v407_v32 = vmul.f32 0.05263158, %v375_v19 }
  0xe3   :  { %v376_v36 = vadd.f32 %v344_v12, %v280_v4  ;;  %v154_v43 = vpop.xlane.xlu0 %153  ;;  %v728_v44 = vpack.c.bf16 %v2927_v7, %v2926_v22  ;;  %v718_v46 = vpack.c.bf16 %v2909_v27, %v2908_v29 }
  0xe4   :  { %v439_v24 = vsub.f32 %v407_v32, %v423_v31 }
  0xe5   :  { %v408_v38 = vmul.f32 0.05263158, %v376_v36  ;;  %2943 = vmatmul.mubr.msk.bf16.gmra.mxu0 %vm176_vm1, %v728_v44  ;;  %2953 = vmatmul.mubr.msk.bf16.gmra.mxu1 %vm127_vm0, %v718_v46 }
  0xe6   :  { %v157_v53 = vpop.xlane.xlu1 %156  ;;  %v455_v61 = vmax.f32 %v439_v24, 0.0  ;;  %828 = vmatprep.mubr.bf16.mxu0 %v3363_v28  ;;  %983 = vmatprep.mubr.bf16.mxu1 %v3363_v28 }
  0xe7   :  { %v440_v63 = vsub.f32 %v408_v38, %v424_v50  ;;  %v3250_v18 = vpop.eup %3249  ;;  %v203_v5 = vpop.xlane.xlu0 %202 }
  0xe8   :  { %v471_v2 = vadd.f32 1e-05, %v455_v61  ;;  %v627_v20 = vmul.f32 %v3250_v18, %v611_v58  ;;  %v517_v6 = vmul.f32 %v3250_v18, %v501_v10  ;;  %v233_v15 = vadd.f32 %v203_v5, %v154_v43 }
  0xe9   :  { %v456_v4 = vmax.f32 %v440_v63, 0.0 }
  0xea   :  { %v3252_v23 = vpop.eup %3251  ;;  %v206_v1 = vpop.xlane.xlu1 %205  ;;  %3253 = vrsqrt.f32 %v471_v2  ;;  %v650_v37 = vmul.f32 %v3814_v54, %v627_v20  ;;  %v540_v22 = vmul.f32 %v3819_v0, %v517_v6  ;;  %v3894_v47 = vmul.f32 0.05263158, %v233_v15 }
  0xeb   :  { %v472_v8 = vadd.f32 1e-05, %v456_v4  ;;  %v283_v19 = vpop.xlane.xlu0 %282  ;;  %v628_v12 = vmul.f32 %v3252_v23, %v612_v41  ;;  %v518_v34 = vmul.f32 %v3252_v23, %v502_v26  ;;  %v234_v7 = vadd.f32 %v206_v1, %v157_v53 }
  0xec   :  { %v673_v27 = vadd.f32 %v3826_v9, %v650_v37  ;;  %v563_v31 = vadd.f32 %v3833_v3, %v540_v22  ;;  %v425_v61 = vmul.f32 %v3894_v47, %v3894_v47  ;;  %v613_v41 = vsub.f32 %v3608_v60, %v3866_v13 }
  0xed   :  { %3255 = vrsqrt.f32 %v472_v8  ;;  %v651_v39 = vmul.f32 %v3814_v54, %v628_v12  ;;  %v541_v42 = vmul.f32 %v3819_v0, %v518_v34  ;;  %v3899_v44 = vmul.f32 0.05263158, %v234_v7 }
  0xee   :  { %v286_v29 = vpop.xlane.xlu1 %285  ;;  %v2928_v50 = vclamps-f32 %v673_v27, 3.0  ;;  %v2910_v53 = vclamps-f32 %v563_v31, 3.0  ;;  %v503_v15 = vsub.f32 %v3593_v55, %v3866_v13  ;;  %v504_v7 = vsub.f32 %v3601_v57, %v3871_v16 }
  0xef   :  { %v347_v32 = vpop.xlane.xlu0 %346  ;;  %v674_v36 = vadd.f32 %v3826_v9, %v651_v39  ;;  %v564_v43 = vadd.f32 %v3833_v3, %v541_v42  ;;  %v426_v20 = vmul.f32 %v3899_v44, %v3899_v44  ;;  %v614_v60 = vsub.f32 %v3612_v62, %v3871_v16 }
  0xf0   :  { %v377_v46 = vadd.f32 %v347_v32, %v283_v19 }
  0xf1   :  { %v2929_v38 = vclamps-f32 %v674_v36, 3.0  ;;  %v2911_v58 = vclamps-f32 %v564_v43, 3.0 }
  0xf2   :  { %v350_v24 = vpop.xlane.xlu1 %349  ;;  %v409_v63 = vmul.f32 0.05263158, %v377_v46 }
  0xf3   :  { %v378_v18 = vadd.f32 %v350_v24, %v286_v29  ;;  %v160_v10 = vpop.xlane.xlu0 %159  ;;  %v729_v5 = vpack.c.bf16 %v2929_v38, %v2928_v50  ;;  %v719_v2 = vpack.c.bf16 %v2911_v58, %v2910_v53 }
  0xf4   :  { %v441_v4 = vsub.f32 %v409_v63, %v425_v61 }
  0xf5   :  { %v410_v23 = vmul.f32 0.05263158, %v378_v18  ;;  %2944 = vmatmul.mubr.msk.bf16.gmra.mxu0 %vm176_vm1, %v729_v5  ;;  %2954 = vmatmul.mubr.msk.bf16.gmra.mxu1 %vm127_vm0, %v719_v2 }
  0xf6   :  { %v163_v26 = vpop.xlane.xlu1 %162  ;;  %v457_v1 = vmax.f32 %v441_v4, 0.0  ;;  %838 = vmatprep.mubr.bf16.mxu0 %v3363_v28  ;;  %993 = vmatprep.mubr.bf16.mxu1 %v3363_v28 }
  0xf7   :  { %v442_v6 = vsub.f32 %v410_v23, %v426_v20  ;;  %v3254_v8 = vpop.eup %3253  ;;  %v209_v19 = vpop.xlane.xlu0 %208 }
  0xf8   :  { %v473_v12 = vadd.f32 1e-05, %v457_v1  ;;  %v629_v34 = vmul.f32 %v3254_v8, %v613_v41  ;;  %v519_v39 = vmul.f32 %v3254_v8, %v503_v15  ;;  %v235_v42 = vadd.f32 %v209_v19, %v160_v10 }
  0xf9   :  { %v458_v37 = vmax.f32 %v442_v6, 0.0 }
  0xfa   :  { %v3256_v22 = vpop.eup %3255  ;;  %v212_v29 = vpop.xlane.xlu1 %211  ;;  %3257 = vrsqrt.f32 %v473_v12  ;;  %v652_v55 = vmul.f32 %v3814_v54, %v629_v34  ;;  %v542_v36 = vmul.f32 %v3819_v0, %v519_v39  ;;  %v3922_v16 = vmul.f32 0.05263158, %v235_v42 }
  0xfb   :  { %v474_v27 = vadd.f32 1e-05, %v458_v37  ;;  %v289_v31 = vpop.xlane.xlu0 %288  ;;  %v630_v32 = vmul.f32 %v3256_v22, %v614_v60  ;;  %v520_v13 = vmul.f32 %v3256_v22, %v504_v7  ;;  %v236_v43 = vadd.f32 %v212_v29, %v163_v26 }
  0xfc   :  { %v675_v24 = vadd.f32 %v3826_v9, %v652_v55  ;;  %v565_v50 = vadd.f32 %v3833_v3, %v542_v36  ;;  %v427_v20 = vmul.f32 %v3922_v16, %v3922_v16  ;;  %v615_v37 = vsub.f32 %v3659_v33, %v3894_v47 }
  0xfd   :  { %3259 = vrsqrt.f32 %v474_v27  ;;  %v653_v57 = vmul.f32 %v3814_v54, %v630_v32  ;;  %v543_v62 = vmul.f32 %v3819_v0, %v520_v13  ;;  %v3927_v61 = vmul.f32 0.05263158, %v236_v43 }
  0xfe   :  { %v292_v46 = vpop.xlane.xlu1 %291  ;;  %v2930_v10 = vclamps-f32 %v675_v24, 3.0  ;;  %v2912_v2 = vclamps-f32 %v565_v50, 3.0  ;;  %v505_v60 = vsub.f32 %v3641_v25, %v3894_v47  ;;  %v506_v32 = vsub.f32 %v3652_v30, %v3899_v44 }
  0xff   :  { %v353_v38 = vpop.xlane.xlu0 %352  ;;  %v676_v53 = vadd.f32 %v3826_v9, %v653_v57  ;;  %v566_v58 = vadd.f32 %v3833_v3, %v543_v62  ;;  %v428_v15 = vmul.f32 %v3927_v61, %v3927_v61  ;;  %v616_v33 = vsub.f32 %v3663_v35, %v3899_v44 }
 0x100   :  { %v379_v63 = vadd.f32 %v353_v38, %v289_v31 }
 0x101   :  { %v2931_v5 = vclamps-f32 %v676_v53, 3.0  ;;  %v2913_v4 = vclamps-f32 %v566_v58, 3.0 }
 0x102   :  { %v356_v18 = vpop.xlane.xlu1 %355  ;;  %v411_v23 = vmul.f32 0.05263158, %v379_v63 }
 0x103   :  { %v380_v26 = vadd.f32 %v356_v18, %v292_v46  ;;  %v166_v41 = vpop.xlane.xlu0 %165  ;;  %v730_v1 = vpack.c.bf16 %v2931_v5, %v2930_v10  ;;  %v720_v6 = vpack.c.bf16 %v2913_v4, %v2912_v2 }
 0x104   :  { %v443_v8 = vsub.f32 %v411_v23, %v427_v20 }
 0x105   :  { %v412_v19 = vmul.f32 0.05263158, %v380_v26  ;;  %2945 = vmatmul.mubr.msk.bf16.gmra.mxu0 %vm176_vm1, %v730_v1  ;;  %2955 = vmatmul.mubr.msk.bf16.gmra.mxu1 %vm127_vm0, %v720_v6 }
 0x106   :  { %v169_v12 = vpop.xlane.xlu1 %168  ;;  %v459_v34 = vmax.f32 %v443_v8, 0.0  ;;  %848 = vmatprep.mubr.bf16.mxu0 %v3363_v28  ;;  %1003 = vmatprep.mubr.bf16.mxu1 %v3363_v28 }
 0x107   :  { %v444_v22 = vsub.f32 %v412_v19, %v428_v15  ;;  %v3258_v7 = vpop.eup %3257  ;;  %v215_v29 = vpop.xlane.xlu0 %214 }
 0x108   :  { %v475_v39 = vadd.f32 1e-05, %v459_v34  ;;  %v631_v42 = vmul.f32 %v3258_v7, %v615_v37  ;;  %v521_v13 = vmul.f32 %v3258_v7, %v505_v60  ;;  %v237_v43 = vadd.f32 %v215_v29, %v166_v41 }
 0x109   :  { %v460_v27 = vmax.f32 %v444_v22, 0.0  ;;  %v617_v7 = vsub.f32 %v3699_v56, %v3922_v16  ;;  %v618_v56 = vsub.f32 %v3703_v59, %v3927_v61 }
 0x10a   :  { %v3260_v31 = vpop.eup %3259  ;;  %v218_v55 = vpop.xlane.xlu1 %217  ;;  %3261 = vrsqrt.f32 %v475_v39  ;;  %v654_v25 = vmul.f32 %v3814_v54, %v631_v42  ;;  %v544_v24 = vmul.f32 %v3819_v0, %v521_v13  ;;  %v3950_v44 = vmul.f32 0.05263158, %v237_v43 }
 0x10b   :  { %v476_v36 = vadd.f32 1e-05, %v460_v27  ;;  %v295_v46 = vpop.xlane.xlu0 %294  ;;  %v632_v57 = vmul.f32 %v3260_v31, %v616_v33  ;;  %v522_v47 = vmul.f32 %v3260_v31, %v506_v32  ;;  %v238_v62 = vadd.f32 %v218_v55, %v169_v12 }
 0x10c   :  { %v677_v38 = vadd.f32 %v3826_v9, %v654_v25  ;;  %v567_v53 = vadd.f32 %v3833_v3, %v544_v24  ;;  %v429_v41 = vmul.f32 %v3950_v44, %v3950_v44  ;;  %v507_v27 = vsub.f32 %v3683_v49, %v3922_v16 }
 0x10d   :  { %3263 = vrsqrt.f32 %v476_v36  ;;  %v655_v30 = vmul.f32 %v3814_v54, %v632_v57  ;;  %v545_v35 = vmul.f32 %v3819_v0, %v522_v47  ;;  %v3955_v10 = vmul.f32 0.05263158, %v238_v62 }
 0x10e   :  { %v298_v50 = vpop.xlane.xlu1 %297  ;;  %v2932_v4 = vclamps-f32 %v677_v38, 3.0  ;;  %v2914_v23 = vclamps-f32 %v567_v53, 3.0  ;;  %v508_v13 = vsub.f32 %v3692_v52, %v3927_v61 }
 0x10f   :  { %v359_v58 = vpop.xlane.xlu0 %358  ;;  %v678_v63 = vadd.f32 %v3826_v9, %v655_v30  ;;  %v568_v18 = vadd.f32 %v3833_v3, %v545_v35  ;;  %v430_v37 = vmul.f32 %v3955_v10, %v3955_v10 }
 0x110   :  { %v381_v5 = vadd.f32 %v359_v58, %v295_v46 }
 0x111   :  { %v2933_v20 = vclamps-f32 %v678_v63, 3.0  ;;  %v2915_v26 = vclamps-f32 %v568_v18, 3.0 }
 0x112   :  { %v362_v2 = vpop.xlane.xlu1 %361  ;;  %v413_v1 = vmul.f32 0.05263158, %v381_v5 }
 0x113   :  { %v382_v6 = vadd.f32 %v362_v2, %v298_v50  ;;  %v172_v8 = vpop.xlane.xlu0 %171  ;;  %v731_v15 = vpack.c.bf16 %v2933_v20, %v2932_v4  ;;  %v721_v19 = vpack.c.bf16 %v2915_v26, %v2914_v23 }
 0x114   :  { %v445_v12 = vsub.f32 %v413_v1, %v429_v41 }
 0x115   :  { %v414_v34 = vmul.f32 0.05263158, %v382_v6  ;;  %2946 = vmatmul.mubr.msk.bf16.gmra.mxu0 %vm176_vm1, %v731_v15  ;;  %2956 = vmatmul.mubr.msk.bf16.gmra.mxu1 %vm127_vm0, %v721_v19 }
 0x116   :  { %v175_v22 = vpop.xlane.xlu1 %174  ;;  %v461_v60 = vmax.f32 %v445_v12, 0.0  ;;  %858 = vmatprep.mubr.bf16.mxu0 %v3363_v28  ;;  %1013 = vmatprep.mubr.bf16.mxu1 %v3363_v28 }
 0x117   :  { %v446_v29 = vsub.f32 %v414_v34, %v430_v37  ;;  %v3262_v39 = vpop.eup %3261  ;;  %v221_v42 = vpop.xlane.xlu0 %220  ;;  %v509_v37 = vsub.f32 %v3723_v11, %v3950_v44  ;;  %v619_v34 = vsub.f32 %v3739_v17, %v3950_v44  ;;  %v510_v11 = vsub.f32 %v3732_v14, %v3955_v10 }
 0x118   :  { %v477_v31 = vadd.f32 1e-05, %v461_v60  ;;  %v633_v33 = vmul.f32 %v3262_v39, %v617_v7  ;;  %v523_v43 = vmul.f32 %v3262_v39, %v507_v27  ;;  %v239_v57 = vadd.f32 %v221_v42, %v172_v8 }
 0x119   :  { %v462_v32 = vmax.f32 %v446_v29, 0.0  ;;  %v620_v29 = vsub.f32 %v3743_v21, %v3955_v10 }
 0x11a   :  { %v3264_v55 = vpop.eup %3263  ;;  %v224_v36 = vpop.xlane.xlu1 %223  ;;  %3265 = vrsqrt.f32 %v477_v31  ;;  %v656_v49 = vmul.f32 %v3814_v54, %v633_v33  ;;  %v546_v24 = vmul.f32 %v3819_v0, %v523_v43  ;;  %v3978_v61 = vmul.f32 0.05263158, %v239_v57 }
 0x11b   :  { %v478_v46 = vadd.f32 1e-05, %v462_v32  ;;  %v301_v25 = vpop.xlane.xlu0 %300  ;;  %v634_v47 = vmul.f32 %v3264_v55, %v618_v56  ;;  %v524_v16 = vmul.f32 %v3264_v55, %v508_v13  ;;  %v240_v62 = vadd.f32 %v224_v36, %v175_v22 }
 0x11c   :  { %v679_v30 = vadd.f32 %v3826_v9, %v656_v49  ;;  %v569_v38 = vadd.f32 %v3833_v3, %v546_v24  ;;  %v431_v26 = vmul.f32 %v3978_v61, %v3978_v61  ;;  %v511_v24 = vsub.f32 %v3763_v40, %v3978_v61 }
 0x11d   :  { %3267 = vrsqrt.f32 %v478_v46  ;;  %v657_v52 = vmul.f32 %v3814_v54, %v634_v47  ;;  %v547_v59 = vmul.f32 %v3819_v0, %v524_v16  ;;  %v3983_v63 = vmul.f32 0.05263158, %v240_v62 }
 0x11e   :  { %v304_v50 = vpop.xlane.xlu1 %303  ;;  %v2934_v2 = vclamps-f32 %v679_v30, 3.0  ;;  %v2916_v20 = vclamps-f32 %v569_v38, 3.0  ;;  %v621_v62 = vsub.f32 %v3779_v48, %v3978_v61 }
 0x11f   :  { %v365_v35 = vpop.xlane.xlu0 %364  ;;  %v680_v53 = vadd.f32 %v3826_v9, %v657_v52  ;;  %v570_v58 = vadd.f32 %v3833_v3, %v547_v59  ;;  %v432_v19 = vmul.f32 %v3983_v63, %v3983_v63  ;;  %v512_v52 = vsub.f32 %v3772_v45, %v3983_v63 }
 0x120   :  { %v383_v18 = vadd.f32 %v365_v35, %v301_v25  ;;  %v622_v30 = vsub.f32 %v3783_v51, %v3983_v63 }
 0x121   :  { %v2935_v4 = vclamps-f32 %v680_v53, 3.0  ;;  %v2917_v23 = vclamps-f32 %v570_v58, 3.0 }
 0x122   :  { %v368_v5 = vpop.xlane.xlu1 %367  ;;  %v415_v41 = vmul.f32 0.05263158, %v383_v18 }
 0x123   :  { %v384_v1 = vadd.f32 %v368_v5, %v304_v50  ;;  %v732_v6 = vpack.c.bf16 %v2935_v4, %v2934_v2  ;;  %v722_v8 = vpack.c.bf16 %v2917_v23, %v2916_v20 }
 0x124   :  { %v447_v15 = vsub.f32 %v415_v41, %v431_v26 }
 0x125   :  { %v416_v12 = vmul.f32 0.05263158, %v384_v1  ;;  %2947 = vmatmul.mubr.msk.bf16.gmra.mxu0 %vm176_vm1, %v732_v6  ;;  %2957 = vmatmul.mubr.msk.bf16.gmra.mxu1 %vm127_vm0, %v722_v8  ;;  %v1044_v1 = vld [vmem:[%s5114_s8] sm:$0x3] }
 0x126   :  { %v463_v22 = vmax.f32 %v447_v15, 0.0  ;;  %868 = vmatprep.mubr.bf16.mxu0 %v3363_v28  ;;  %1023 = vmatprep.mubr.bf16.mxu1 %v3363_v28  ;;  %v3132_v8 = vld [vmem:[%s5117_s11 + $0x60] ss:$8 sps:$4 sm:$0xff]   ;;  %v3134_v15 = vld [vmem:[%s5117_s11 + $0x64] ss:$8 sps:$4 sm:$0xff]  }
 0x127   :  { %v448_v7 = vsub.f32 %v416_v12, %v432_v19  ;;  %v3266_v60 = vpop.eup %3265 }
 0x128   :  { %v479_v39 = vadd.f32 1e-05, %v463_v22  ;;  %v635_v42 = vmul.f32 %v3266_v60, %v619_v34  ;;  %v525_v31 = vmul.f32 %v3266_v60, %v509_v37 }
 0x129   :  { %v464_v27 = vmax.f32 %v448_v7, 0.0 }
 0x12a   :  { %v3268_v32 = vpop.eup %3267  ;;  %3269 = vrsqrt.f32 %v479_v39  ;;  %v658_v33 = vmul.f32 %v3814_v54, %v635_v42  ;;  %v548_v13 = vmul.f32 %v3819_v0, %v525_v31  ;;  %v3137_v39 = vld [vmem:[%s5117_s11 + $0x54] ss:$8 sps:$4 sm:$0xff]   ;;  %v3140_v31 = vld [vmem:[%s5117_s11 + $0x44] ss:$8 sps:$4 sm:$0xff]  }
 0x12b   :  { %v480_v17 = vadd.f32 1e-05, %v464_v27  ;;  %v636_v44 = vmul.f32 %v3268_v32, %v620_v29  ;;  %v526_v55 = vmul.f32 %v3268_v32, %v510_v11  ;;  %v3135_v29 = vld [vmem:[%s5117_s11 + $0x50] ss:$8 sps:$4 sm:$0xff]  }
 0x12c   :  { %v681_v21 = vadd.f32 %v3826_v9, %v658_v33  ;;  %v571_v43 = vadd.f32 %v3833_v3, %v548_v13  ;;  %v3138_v33 = vld [vmem:[%s5117_s11 + $0x40] ss:$8 sps:$4 sm:$0xff]  }
 0x12d   :  { %3271 = vrsqrt.f32 %v480_v17  ;;  %v659_v56 = vmul.f32 %v3814_v54, %v636_v44  ;;  %v549_v36 = vmul.f32 %v3819_v0, %v526_v55 }
 0x12e   :  { %v2936_v10 = vclamps-f32 %v681_v21, 3.0  ;;  %v2918_v25 = vclamps-f32 %v571_v43, 3.0 }
 0x12f   :  { %v682_v46 = vadd.f32 %v3826_v9, %v659_v56  ;;  %v572_v14 = vadd.f32 %v3833_v3, %v549_v36  ;;  %v3143_v56 = vld [vmem:[%s5117_s11 + $0x34] ss:$8 sps:$4 sm:$0xff]  }
 0x131   :  { %v2937_v57 = vclamps-f32 %v682_v46, 3.0  ;;  %v2919_v47 = vclamps-f32 %v572_v14, 3.0 }
 0x133   :  { %v733_v49 = vpack.c.bf16 %v2937_v57, %v2936_v10  ;;  %v723_v16 = vpack.c.bf16 %v2919_v47, %v2918_v25  ;;  %v3141_v25 = vld [vmem:[%s5117_s11 + $0x30] ss:$8 sps:$4 sm:$0xff]   ;;  %v3146_v47 = vld [vmem:[%s5117_s11 + $0x24] ss:$8 sps:$4 sm:$0xff]  }
 0x135   :  { %2948 = vmatmul.mubr.msk.bf16.gmra.mxu0 %vm176_vm1, %v733_v49  ;;  %2958 = vmatmul.mubr.msk.bf16.gmra.mxu1 %vm127_vm0, %v723_v16 }
 0x136   :  { %878 = vmatprep.mubr.bf16.mxu0 %v3363_v28  ;;  %1033 = vmatprep.mubr.bf16.mxu1 %v3363_v28 }
 0x137   :  { %v3270_v50 = vpop.eup %3269 }
 0x138   :  { %v637_v59 = vmul.f32 %v3270_v50, %v621_v62  ;;  %v527_v38 = vmul.f32 %v3270_v50, %v511_v24 }
 0x13a   :  { %v3272_v35 = vpop.eup %3271  ;;  %v660_v58 = vmul.f32 %v3814_v54, %v637_v59  ;;  %v550_v40 = vmul.f32 %v3819_v0, %v527_v38  ;;  %v3149_v59 = vld [vmem:[%s5117_s11 + $0x14] ss:$8 sps:$4 sm:$0xff]  }
 0x13b   :  { %v638_v53 = vmul.f32 %v3272_v35, %v622_v30  ;;  %v528_v18 = vmul.f32 %v3272_v35, %v512_v52  ;;  %v3144_v30 = vld [vmem:[%s5117_s11 + $0x20] ss:$8 sps:$4 sm:$0xff]  }
 0x13c   :  { %v683_v28 = vadd.f32 %v3826_v9, %v660_v58  ;;  %v573_v45 = vadd.f32 %v3833_v3, %v550_v40  ;;  %v3147_v40 = vld [vmem:[%s5117_s11 + $0x10] ss:$8 sps:$4 sm:$0xff]  }
 0x13d   :  { %v661_v48 = vmul.f32 %v3814_v54, %v638_v53  ;;  %v551_v61 = vmul.f32 %v3819_v0, %v528_v18  ;;  %v1046_v54 = vlaneseq  ;;  %v3129_v0 = vld [vmem:[%s5117_s11 + $0x70] ss:$8 sps:$4 sm:$0xff]  }
 0x13e   :  { %v2938_v63 = vclamps-f32 %v683_v28, 3.0  ;;  %v2920_v4 = vclamps-f32 %v573_v45, 3.0 }
 0x13f   :  { %v684_v5 = vadd.f32 %v3826_v9, %v661_v48  ;;  %v574_v51 = vadd.f32 %v3833_v3, %v551_v61  ;;  %v1047_v41 = vshrl.u32 %v1046_v54, 7  ;;  %v3131_v9 = vld [vmem:[%s5117_s11 + $0x74] ss:$8 sps:$4 sm:$0xff]  }
 0x140   :  { %1732 = vmatprep.subr.bf16.mxu0 %v3131_v9  ;;  %v3152_v9 = vld [vmem:[%s5117_s11 + $0x4] ss:$8 sps:$4 sm:$0xff]  }
 0x141   :  { %v2939_v2 = vclamps-f32 %v684_v5, 3.0  ;;  %v2921_v20 = vclamps-f32 %v574_v51, 3.0  ;;  %v4037_v3 = vsub.s32 0, %v1047_v41  ;;  %v4042_v6 = vsub.s32 1, %v1047_v41  ;;  %1733 = vmatpush1.bf16.msra.mxu0 %v3129_v0  ;;  %v3150_v0 = vld [vmem:[%s5117_s11] ss:$8 sps:$4 sm:$0xff]  }
 0x142   :  { %1734 = vmatprep.subr.bf16.mxu0 %v3134_v15 }
 0x143   :  { %v734_v23 = vpack.c.bf16 %v2939_v2, %v2938_v63  ;;  %v724_v26 = vpack.c.bf16 %v2921_v20, %v2920_v4  ;;  %v4051_v19 = vrot.slane %v1044_v1, %v4037_v3  ;;  %v4054_v22 = vrot.slane %v1044_v1, %v4042_v6 }
 0x145   :  { %2949 = vmatmul.mubr.msk.bf16.gmra.mxu0 %vm176_vm1, %v734_v23  ;;  %2959 = vmatmul.mubr.msk.bf16.gmra.mxu1 %vm127_vm0, %v724_v26 }
 0x146   :  { %1735 = vmatpush1.bf16.msra.mxu0 %v3132_v8 }
 0x147   :  { %1736 = vmatprep.subr.bf16.mxu0 %v3137_v39 }
 0x14a   :  { %1737 = vmatpush1.bf16.msra.mxu0 %v3135_v29 }
 0x14b   :  { %1738 = vmatprep.subr.bf16.mxu0 %v3140_v31  ;;  %v3158_v31 = vld [vmem:[%s5117_s11 + $0xe4] ss:$8 sps:$4 sm:$0xff]  }
 0x14e   :  { %1739 = vmatpush1.bf16.msra.mxu0 %v3138_v33 }
 0x14f   :  { %1740 = vmatprep.subr.bf16.mxu0 %v3143_v56 }
 0x152   :  { %1741 = vmatpush1.bf16.msra.mxu0 %v3141_v25 }
 0x153   :  { %1742 = vmatprep.subr.bf16.mxu0 %v3146_v47 }
 0x156   :  { %1743 = vmatpush1.bf16.msra.mxu0 %v3144_v30 }
 0x157   :  { %1744 = vmatprep.subr.bf16.mxu0 %v3149_v59 }
 0x15a   :  { %1745 = vmatpush1.bf16.msra.mxu0 %v3147_v40 }
 0x15b   :  { %1746 = vmatprep.subr.bf16.mxu0 %v3152_v9 }
 0x15e   :  { %1747 = vmatpush1.bf16.msra.mxu0 %v3150_v0 }
 0x195   :  { %v810_v12 = vpop.f32.mrf.mxu0  ;;  %v965_v37 = vpop.f32.mrf.mxu1 }
 0x196   :  { %v966_v34 = vadd.f32 %v965_v37, %v810_v12 }
 0x197   :  { %v812_v7 = vpop.f32.mrf.mxu0  ;;  %v967_v60 = vpop.f32.mrf.mxu1 }
 0x198   :  { %v1056_v27 = vadd.f32 %v4051_v19, %v966_v34  ;;  %v968_v42 = vadd.f32 %v967_v60, %v812_v7  ;;  %v3155_v7 = vld [vmem:[%s5117_s11 + $0xf4] ss:$8 sps:$4 sm:$0xff]   ;;  %v3153_v60 = vld [vmem:[%s5117_s11 + $0xf0] ss:$8 sps:$4 sm:$0xff]  }
 0x199   :  { %v814_v32 = vpop.f32.mrf.mxu0  ;;  %v969_v11 = vpop.f32.mrf.mxu1  ;;  %1748 = vmatprep.subr.bf16.mxu0 %v3155_v7  ;;  %v3173_v7 = vld [vmem:[%s5117_s11 + $0x94] ss:$8 sps:$4 sm:$0xff]  }
 0x19a   :  { %v1057_v17 = vadd.f32 %v4054_v22, %v968_v42  ;;  %v970_v44 = vadd.f32 %v969_v11, %v814_v32  ;;  %v4073_v21 = vmax.f32 %v1056_v27, 0.0  ;;  %1749 = vmatpush2.bf16.msra.mxu0 %v3153_v60 }
 0x19b   :  { %v816_v55 = vpop.f32.mrf.mxu0  ;;  %v971_v13 = vpop.f32.mrf.mxu1  ;;  %1750 = vmatprep.subr.bf16.mxu0 %v3158_v31 }
 0x19c   :  { %v4075_v36 = vmax.f32 %v1057_v17, 0.0  ;;  %v1058_v43 = vadd.f32 %v4051_v19, %v970_v44  ;;  %v972_v46 = vadd.f32 %v971_v13, %v816_v55  ;;  %v1170_v24 = vmul.f32 %v4073_v21, %v4073_v21  ;;  %v3156_v17 = vld [vmem:[%s5117_s11 + $0xe0] ss:$8 sps:$4 sm:$0xff]  }
 0x19e   :  { %v1059_v14 = vadd.f32 %v4054_v22, %v972_v46  ;;  %v1122_v10 = vadd.f32 %v4075_v36, %v4073_v21  ;;  %v1171_v57 = vmul.f32 %v4075_v36, %v4075_v36  ;;  %v4089_v49 = vmax.f32 %v1058_v43, 0.0  ;;  %1751 = vmatpush2.bf16.msra.mxu0 %v3156_v17  ;;  %v3161_v46 = vld [vmem:[%s5117_s11 + $0xd4] ss:$8 sps:$4 sm:$0xff]  }
 0x19f   :  { %1752 = vmatprep.subr.bf16.mxu0 %v3161_v46 }
 0x1a0   :  { %v4091_v16 = vmax.f32 %v1059_v14, 0.0  ;;  %1123 = vadd.xlane.f32.xlu0 %v1122_v10  ;;  %v1202_v50 = vadd.f32 %v1171_v57, %v1170_v24  ;;  %v1172_v38 = vmul.f32 %v4089_v49, %v4089_v49  ;;  %v3159_v57 = vld [vmem:[%s5117_s11 + $0xd0] ss:$8 sps:$4 sm:$0xff]  }
 0x1a2   :  { %v1125_v62 = vadd.f32 %v4091_v16, %v4089_v49  ;;  %v1173_v52 = vmul.f32 %v4091_v16, %v4091_v16  ;;  %1753 = vmatpush2.bf16.msra.mxu0 %v3159_v57 }
 0x1a4   :  { %1126 = vadd.xlane.f32.xlu1 %v1125_v62  ;;  %1203 = vadd.xlane.f32.xlu0 %v1202_v50  ;;  %v1205_v18 = vadd.f32 %v1173_v52, %v1172_v38  ;;  %v3162_v38 = vld [vmem:[%s5117_s11 + $0xc0] ss:$8 sps:$4 sm:$0xff]  }
 0x1a5   :  { %v820_v35 = vpop.f32.mrf.mxu0  ;;  %v975_v53 = vpop.f32.mrf.mxu1 }
 0x1a6   :  { %v976_v58 = vadd.f32 %v975_v53, %v820_v35  ;;  %v3164_v35 = vld [vmem:[%s5117_s11 + $0xc4] ss:$8 sps:$4 sm:$0xff]  }
 0x1a7   :  { %v822_v48 = vpop.f32.mrf.mxu0  ;;  %v977_v28 = vpop.f32.mrf.mxu1  ;;  %1754 = vmatprep.subr.bf16.mxu0 %v3164_v35 }
 0x1a8   :  { %v1060_v61 = vadd.f32 %v4051_v19, %v976_v58  ;;  %v978_v45 = vadd.f32 %v977_v28, %v822_v48  ;;  %1206 = vadd.xlane.f32.xlu1 %v1205_v18  ;;  %1755 = vmatpush2.bf16.msra.mxu0 %v3162_v38 }
 0x1a9   :  { %v824_v5 = vpop.f32.mrf.mxu0  ;;  %v979_v51 = vpop.f32.mrf.mxu1 }
 0x1aa   :  { %v1061_v63 = vadd.f32 %v4054_v22, %v978_v45  ;;  %v980_v2 = vadd.f32 %v979_v51, %v824_v5  ;;  %v4112_v23 = vmax.f32 %v1060_v61, 0.0  ;;  %v3167_v61 = vld [vmem:[%s5117_s11 + $0xb4] ss:$8 sps:$4 sm:$0xff]   ;;  %v3165_v45 = vld [vmem:[%s5117_s11 + $0xb0] ss:$8 sps:$4 sm:$0xff]  }
 0x1ab   :  { %v826_v4 = vpop.f32.mrf.mxu0  ;;  %v981_v20 = vpop.f32.mrf.mxu1  ;;  %1756 = vmatprep.subr.bf16.mxu0 %v3167_v61 }
 0x1ac   :  { %v4114_v26 = vmax.f32 %v1061_v63, 0.0  ;;  %v1062_v54 = vadd.f32 %v4051_v19, %v980_v2  ;;  %v982_v41 = vadd.f32 %v981_v20, %v826_v4  ;;  %v1174_v34 = vmul.f32 %v4112_v23, %v4112_v23  ;;  %1757 = vmatpush2.bf16.msra.mxu0 %v3165_v45  ;;  %v3170_v4 = vld [vmem:[%s5117_s11 + $0xa4] ss:$8 sps:$4 sm:$0xff]  }
 0x1ad   :  { %1758 = vmatprep.subr.bf16.mxu0 %v3170_v4 }
 0x1ae   :  { %v1063_v1 = vadd.f32 %v4054_v22, %v982_v41  ;;  %v1128_v8 = vadd.f32 %v4114_v26, %v4112_v23  ;;  %v1175_v15 = vmul.f32 %v4114_v26, %v4114_v26  ;;  %v4128_v12 = vmax.f32 %v1062_v54, 0.0  ;;  %v3168_v41 = vld [vmem:[%s5117_s11 + $0xa0] ss:$8 sps:$4 sm:$0xff]  }
 0x1b0   :  { %v4130_v37 = vmax.f32 %v1063_v1, 0.0  ;;  %1129 = vadd.xlane.f32.xlu0 %v1128_v8  ;;  %v1208_v39 = vadd.f32 %v1175_v15, %v1174_v34  ;;  %v1176_v42 = vmul.f32 %v4128_v12, %v4128_v12  ;;  %1759 = vmatpush2.bf16.msra.mxu0 %v3168_v41 }
 0x1b1   :  { %1760 = vmatprep.subr.bf16.mxu0 %v3173_v7 }
 0x1b2   :  { %v1131_v29 = vadd.f32 %v4130_v37, %v4128_v12  ;;  %v1177_v27 = vmul.f32 %v4130_v37, %v4130_v37 }
 0x1b4   :  { %1132 = vadd.xlane.f32.xlu1 %v1131_v29  ;;  %1209 = vadd.xlane.f32.xlu0 %v1208_v39  ;;  %v1211_v33 = vadd.f32 %v1177_v27, %v1176_v42  ;;  %v3171_v39 = vld [vmem:[%s5117_s11 + $0x90] ss:$8 sps:$4 sm:$0xff]  }
 0x1b5   :  { %v830_v32 = vpop.f32.mrf.mxu0  ;;  %v985_v11 = vpop.f32.mrf.mxu1  ;;  %1761 = vmatpush2.bf16.msra.mxu0 %v3171_v39 }
 0x1b6   :  { %v986_v44 = vadd.f32 %v985_v11, %v830_v32 }
 0x1b7   :  { %v832_v55 = vpop.f32.mrf.mxu0  ;;  %v987_v13 = vpop.f32.mrf.mxu1 }
 0x1b8   :  { %v1064_v56 = vadd.f32 %v4051_v19, %v986_v44  ;;  %v988_v43 = vadd.f32 %v987_v13, %v832_v55  ;;  %1212 = vadd.xlane.f32.xlu1 %v1211_v33  ;;  %v3174_v55 = vld [vmem:[%s5117_s11 + $0x80] ss:$8 sps:$4 sm:$0xff]   ;;  %v3176_v13 = vld [vmem:[%s5117_s11 + $0x84] ss:$8 sps:$4 sm:$0xff]  }
 0x1b9   :  { %v834_v14 = vpop.f32.mrf.mxu0  ;;  %v989_v10 = vpop.f32.mrf.mxu1  ;;  %1762 = vmatprep.subr.bf16.mxu0 %v3176_v13 }
 0x1ba   :  { %v1065_v25 = vadd.f32 %v4054_v22, %v988_v43  ;;  %v990_v47 = vadd.f32 %v989_v10, %v834_v14  ;;  %v4160_v50 = vmax.f32 %v1064_v56, 0.0  ;;  %1763 = vmatpush2.bf16.msra.mxu0 %v3174_v55 }
 0x1bb   :  { %v836_v24 = vpop.f32.mrf.mxu0  ;;  %v991_v62 = vpop.f32.mrf.mxu1 }
 0x1bc   :  { %v4162_v52 = vmax.f32 %v1065_v25, 0.0  ;;  %v1066_v30 = vadd.f32 %v4051_v19, %v990_v47  ;;  %v992_v59 = vadd.f32 %v991_v62, %v836_v24  ;;  %v1178_v28 = vmul.f32 %v4160_v50, %v4160_v50 }
 0x1be   :  { %v1067_v53 = vadd.f32 %v4054_v22, %v992_v59  ;;  %v1134_v58 = vadd.f32 %v4162_v52, %v4160_v50  ;;  %v1179_v18 = vmul.f32 %v4162_v52, %v4162_v52  ;;  %v4176_v40 = vmax.f32 %v1066_v30, 0.0 }
 0x1c0   :  { %v4178_v48 = vmax.f32 %v1067_v53, 0.0  ;;  %1135 = vadd.xlane.f32.xlu0 %v1134_v58  ;;  %v1214_v51 = vadd.f32 %v1179_v18, %v1178_v28  ;;  %v1180_v2 = vmul.f32 %v4176_v40, %v4176_v40 }
 0x1c2   :  { %v1137_v5 = vadd.f32 %v4178_v48, %v4176_v40  ;;  %v1181_v63 = vmul.f32 %v4178_v48, %v4178_v48 }
 0x1c4   :  { %1138 = vadd.xlane.f32.xlu1 %v1137_v5  ;;  %1215 = vadd.xlane.f32.xlu0 %v1214_v51  ;;  %v1217_v9 = vadd.f32 %v1181_v63, %v1180_v2 }
 0x1c5   :  { %v840_v20 = vpop.f32.mrf.mxu0  ;;  %v995_v54 = vpop.f32.mrf.mxu1 }
 0x1c6   :  { %v996_v0 = vadd.f32 %v995_v54, %v840_v20 }
 0x1c7   :  { %v842_v1 = vpop.f32.mrf.mxu0  ;;  %v997_v8 = vpop.f32.mrf.mxu1 }
 0x1c8   :  { %v1068_v15 = vadd.f32 %v4051_v19, %v996_v0  ;;  %v998_v34 = vadd.f32 %v997_v8, %v842_v1  ;;  %1218 = vadd.xlane.f32.xlu1 %v1217_v9 }
 0x1c9   :  { %v844_v60 = vpop.f32.mrf.mxu0  ;;  %v999_v29 = vpop.f32.mrf.mxu1 }
 0x1ca   :  { %v1069_v27 = vadd.f32 %v4054_v22, %v998_v34  ;;  %v1000_v42 = vadd.f32 %v999_v29, %v844_v60  ;;  %v4208_v11 = vmax.f32 %v1068_v15, 0.0 }
 0x1cb   :  { %v846_v31 = vpop.f32.mrf.mxu0  ;;  %v1001_v32 = vpop.f32.mrf.mxu1 }
 0x1cc   :  { %v4210_v17 = vmax.f32 %v1069_v27, 0.0  ;;  %v1070_v44 = vadd.f32 %v4051_v19, %v1000_v42  ;;  %v1002_v33 = vadd.f32 %v1001_v32, %v846_v31  ;;  %v1182_v57 = vmul.f32 %v4208_v11, %v4208_v11 }
 0x1ce   :  { %v1071_v56 = vadd.f32 %v4054_v22, %v1002_v33  ;;  %v1140_v43 = vadd.f32 %v4210_v17, %v4208_v11  ;;  %v1183_v46 = vmul.f32 %v4210_v17, %v4210_v17  ;;  %v4224_v14 = vmax.f32 %v1070_v44, 0.0 }
 0x1d0   :  { %v4226_v10 = vmax.f32 %v1071_v56, 0.0  ;;  %1141 = vadd.xlane.f32.xlu0 %v1140_v43  ;;  %v1220_v47 = vadd.f32 %v1183_v46, %v1182_v57  ;;  %v1184_v62 = vmul.f32 %v4224_v14, %v4224_v14 }
 0x1d2   :  { %v1143_v25 = vadd.f32 %v4226_v10, %v4224_v14  ;;  %v1185_v24 = vmul.f32 %v4226_v10, %v4226_v10 }
 0x1d4   :  { %1144 = vadd.xlane.f32.xlu1 %v1143_v25  ;;  %1221 = vadd.xlane.f32.xlu0 %v1220_v47  ;;  %v1223_v35 = vadd.f32 %v1185_v24, %v1184_v62 }
 0x1d5   :  { %v850_v30 = vpop.f32.mrf.mxu0  ;;  %v1005_v59 = vpop.f32.mrf.mxu1 }
 0x1d6   :  { %v1006_v38 = vadd.f32 %v1005_v59, %v850_v30 }
 0x1d7   :  { %v852_v53 = vpop.f32.mrf.mxu0  ;;  %v1007_v58 = vpop.f32.mrf.mxu1 }
 0x1d8   :  { %v1072_v18 = vadd.f32 %v4051_v19, %v1006_v38  ;;  %v1008_v28 = vadd.f32 %v1007_v58, %v852_v53  ;;  %1224 = vadd.xlane.f32.xlu1 %v1223_v35 }
 0x1d9   :  { %v854_v61 = vpop.f32.mrf.mxu0  ;;  %v1009_v45 = vpop.f32.mrf.mxu1 }
 0x1da   :  { %v1073_v5 = vadd.f32 %v4054_v22, %v1008_v28  ;;  %v1010_v51 = vadd.f32 %v1009_v45, %v854_v61  ;;  %v4238_v4 = vmax.f32 %v1072_v18, 0.0 }
 0x1db   :  { %v856_v63 = vpop.f32.mrf.mxu0  ;;  %v1011_v2 = vpop.f32.mrf.mxu1 }
 0x1dc   :  { %v4240_v20 = vmax.f32 %v1073_v5, 0.0  ;;  %v1074_v54 = vadd.f32 %v4051_v19, %v1010_v51  ;;  %v1012_v41 = vadd.f32 %v1011_v2, %v856_v63  ;;  %v1186_v34 = vmul.f32 %v4238_v4, %v4238_v4 }
 0x1de   :  { %v1075_v0 = vadd.f32 %v4054_v22, %v1012_v41  ;;  %v1146_v9 = vadd.f32 %v4240_v20, %v4238_v4  ;;  %v1187_v1 = vmul.f32 %v4240_v20, %v4240_v20  ;;  %v4248_v8 = vmax.f32 %v1074_v54, 0.0 }
 0x1e0   :  { %v4250_v15 = vmax.f32 %v1075_v0, 0.0  ;;  %1147 = vadd.xlane.f32.xlu0 %v1146_v9  ;;  %v1226_v60 = vadd.f32 %v1187_v1, %v1186_v34  ;;  %v1188_v39 = vmul.f32 %v4248_v8, %v4248_v8 }
 0x1e2   :  { %v1149_v7 = vadd.f32 %v4250_v15, %v4248_v8  ;;  %v1189_v29 = vmul.f32 %v4250_v15, %v4250_v15 }
 0x1e4   :  { %1150 = vadd.xlane.f32.xlu1 %v1149_v7  ;;  %1227 = vadd.xlane.f32.xlu0 %v1226_v60  ;;  %v1229_v32 = vadd.f32 %v1189_v29, %v1188_v39 }
 0x1e5   :  { %v860_v27 = vpop.f32.mrf.mxu0  ;;  %v1015_v42 = vpop.f32.mrf.mxu1 }
 0x1e6   :  { %v1016_v31 = vadd.f32 %v1015_v42, %v860_v27 }
 0x1e7   :  { %v862_v44 = vpop.f32.mrf.mxu0  ;;  %v1017_v33 = vpop.f32.mrf.mxu1 }
 0x1e8   :  { %v1076_v55 = vadd.f32 %v4051_v19, %v1016_v31  ;;  %v1018_v13 = vadd.f32 %v1017_v33, %v862_v44  ;;  %1230 = vadd.xlane.f32.xlu1 %v1229_v32 }
 0x1e9   :  { %v864_v56 = vpop.f32.mrf.mxu0  ;;  %v1019_v43 = vpop.f32.mrf.mxu1 }
 0x1ea   :  { %v1077_v46 = vadd.f32 %v4054_v22, %v1018_v13  ;;  %v1020_v57 = vadd.f32 %v1019_v43, %v864_v56  ;;  %v4262_v24 = vmax.f32 %v1076_v55, 0.0 }
 0x1eb   :  { %v866_v25 = vpop.f32.mrf.mxu0  ;;  %v1021_v47 = vpop.f32.mrf.mxu1 }
 0x1ec   :  { %v4264_v62 = vmax.f32 %v1077_v46, 0.0  ;;  %v1078_v30 = vadd.f32 %v4051_v19, %v1020_v57  ;;  %v1022_v59 = vadd.f32 %v1021_v47, %v866_v25  ;;  %v1190_v28 = vmul.f32 %v4262_v24, %v4262_v24 }
 0x1ee   :  { %v1079_v38 = vadd.f32 %v4054_v22, %v1022_v59  ;;  %v1152_v35 = vadd.f32 %v4264_v62, %v4262_v24  ;;  %v1191_v53 = vmul.f32 %v4264_v62, %v4264_v62  ;;  %v4272_v58 = vmax.f32 %v1078_v30, 0.0 }
 0x1f0   :  { %v4274_v18 = vmax.f32 %v1079_v38, 0.0  ;;  %1153 = vadd.xlane.f32.xlu0 %v1152_v35  ;;  %v1232_v45 = vadd.f32 %v1191_v53, %v1190_v28  ;;  %v1192_v63 = vmul.f32 %v4272_v58, %v4272_v58 }
 0x1f2   :  { %v1155_v61 = vadd.f32 %v4274_v18, %v4272_v58  ;;  %v1193_v5 = vmul.f32 %v4274_v18, %v4274_v18 }
 0x1f4   :  { %1156 = vadd.xlane.f32.xlu1 %v1155_v61  ;;  %1233 = vadd.xlane.f32.xlu0 %v1232_v45  ;;  %v1235_v0 = vadd.f32 %v1193_v5, %v1192_v63 }
 0x1f5   :  { %v870_v51 = vpop.f32.mrf.mxu0  ;;  %v1025_v2 = vpop.f32.mrf.mxu1 }
 0x1f6   :  { %v1026_v54 = vadd.f32 %v1025_v2, %v870_v51 }
 0x1f7   :  { %v872_v41 = vpop.f32.mrf.mxu0  ;;  %v1027_v9 = vpop.f32.mrf.mxu1 }
 0x1f8   :  { %v1080_v1 = vadd.f32 %v4051_v19, %v1026_v54  ;;  %v1028_v34 = vadd.f32 %v1027_v9, %v872_v41  ;;  %1236 = vadd.xlane.f32.xlu1 %v1235_v0 }
 0x1f9   :  { %v874_v7 = vpop.f32.mrf.mxu0  ;;  %v1029_v60 = vpop.f32.mrf.mxu1 }
 0x1fa   :  { %v1081_v29 = vadd.f32 %v4054_v22, %v1028_v34  ;;  %v1030_v39 = vadd.f32 %v1029_v60, %v874_v7  ;;  %v4286_v31 = vmax.f32 %v1080_v1, 0.0 }
 0x1fb   :  { %v876_v27 = vpop.f32.mrf.mxu0  ;;  %v1031_v42 = vpop.f32.mrf.mxu1 }
 0x1fc   :  { %v4288_v32 = vmax.f32 %v1081_v29, 0.0  ;;  %v1082_v44 = vadd.f32 %v4051_v19, %v1030_v39  ;;  %v1032_v33 = vadd.f32 %v1031_v42, %v876_v27  ;;  %v1194_v57 = vmul.f32 %v4286_v31, %v4286_v31 }
 0x1fe   :  { %v1083_v55 = vadd.f32 %v4054_v22, %v1032_v33  ;;  %v1158_v13 = vadd.f32 %v4288_v32, %v4286_v31  ;;  %v1195_v56 = vmul.f32 %v4288_v32, %v4288_v32  ;;  %v4296_v43 = vmax.f32 %v1082_v44, 0.0 }
 0x200   :  { %v4298_v46 = vmax.f32 %v1083_v55, 0.0  ;;  %1159 = vadd.xlane.f32.xlu0 %v1158_v13  ;;  %v1238_v47 = vadd.f32 %v1195_v56, %v1194_v57  ;;  %v1196_v35 = vmul.f32 %v4296_v43, %v4296_v43 }
 0x202   :  { %v1161_v25 = vadd.f32 %v4298_v46, %v4296_v43  ;;  %v1197_v30 = vmul.f32 %v4298_v46, %v4298_v46 }
 0x204   :  { %1162 = vadd.xlane.f32.xlu1 %v1161_v25  ;;  %1239 = vadd.xlane.f32.xlu0 %v1238_v47  ;;  %v1241_v45 = vadd.f32 %v1197_v30, %v1196_v35 }
 0x205   :  { %v880_v59 = vpop.f32.mrf.mxu0  ;;  %v1035_v38 = vpop.f32.mrf.mxu1 }
 0x206   :  { %v1036_v53 = vadd.f32 %v1035_v38, %v880_v59 }
 0x207   :  { %v882_v28 = vpop.f32.mrf.mxu0  ;;  %v1037_v61 = vpop.f32.mrf.mxu1 }
 0x208   :  { %v1084_v5 = vadd.f32 %v4051_v19, %v1036_v53  ;;  %v1038_v51 = vadd.f32 %v1037_v61, %v882_v28  ;;  %1242 = vadd.xlane.f32.xlu1 %v1241_v45 }
 0x209   :  { %v884_v63 = vpop.f32.mrf.mxu0  ;;  %v1039_v2 = vpop.f32.mrf.mxu1 }
 0x20a   :  { %v1085_v54 = vadd.f32 %v4054_v22, %v1038_v51  ;;  %v1040_v41 = vadd.f32 %v1039_v2, %v884_v63  ;;  %v4310_v1 = vmax.f32 %v1084_v5, 0.0 }
 0x20b   :  { %v886_v0 = vpop.f32.mrf.mxu0  ;;  %v1041_v9 = vpop.f32.mrf.mxu1 }
 0x20c   :  { %v4312_v34 = vmax.f32 %v1085_v54, 0.0  ;;  %v1086_v7 = vadd.f32 %v4051_v19, %v1040_v41  ;;  %v1042_v60 = vadd.f32 %v1041_v9, %v886_v0  ;;  %v1198_v33 = vmul.f32 %v4310_v1, %v4310_v1 }
 0x20e   :  { %v1087_v29 = vadd.f32 %v4054_v22, %v1042_v60  ;;  %v1164_v39 = vadd.f32 %v4312_v34, %v4310_v1  ;;  %v1199_v27 = vmul.f32 %v4312_v34, %v4312_v34  ;;  %v4320_v42 = vmax.f32 %v1086_v7, 0.0 }
 0x210   :  { %v4322_v44 = vmax.f32 %v1087_v29, 0.0  ;;  %1165 = vadd.xlane.f32.xlu0 %v1164_v39  ;;  %v1244_v55 = vadd.f32 %v1199_v27, %v1198_v33  ;;  %v1200_v13 = vmul.f32 %v4320_v42, %v4320_v42 }
 0x212   :  { %v1167_v19 = vadd.f32 %v4322_v44, %v4320_v42  ;;  %v1201_v22 = vmul.f32 %v4322_v44, %v4322_v44 }
 0x214   :  { %1168 = vadd.xlane.f32.xlu1 %v1167_v19  ;;  %1245 = vadd.xlane.f32.xlu0 %v1244_v55  ;;  %v1247_v56 = vadd.f32 %v1201_v22, %v1200_v13  ;;  %v1120_v19 = vld [vmem:[%s5115_s9] sm:$0x3] }
 0x218   :  { %1248 = vadd.xlane.f32.xlu1 %v1247_v56 }
 0x229   :  { %v1124_v57 = vpop.xlane.xlu0 %1123 }
 0x22a   :  { %v1250_v25 = vmul.f32 0.00390625, %v1124_v57 }
 0x22c   :  { %v1282_v38 = vmul.f32 %v1250_v25, %v1250_v25  ;;  %v1331_v55 = vsub.f32 %v4075_v36, %v1250_v25  ;;  %v4352_v36 = vrot.slane %v1120_v19, %v4037_v3 }
 0x22d   :  { %v1127_v47 = vpop.xlane.xlu1 %1126  ;;  %v1204_v30 = vpop.xlane.xlu0 %1203 }
 0x22e   :  { %v1251_v59 = vmul.f32 0.00390625, %v1127_v47  ;;  %v1266_v35 = vmul.f32 0.00390625, %v1204_v30  ;;  %v1330_v47 = vsub.f32 %v4073_v21, %v1250_v25 }
 0x230   :  { %v1298_v53 = vsub.f32 %v1266_v35, %v1282_v38  ;;  %v1283_v45 = vmul.f32 %v1251_v59, %v1251_v59  ;;  %v1121_v35 = vld [vmem:[%s5116_s10] sm:$0x3] }
 0x231   :  { %v1207_v28 = vpop.xlane.xlu1 %1206 }
 0x232   :  { %v1314_v61 = vmax.f32 %v1298_v53, 0.0  ;;  %v1267_v5 = vmul.f32 0.00390625, %v1207_v28  ;;  %v4349_v28 = vrot.slane %v1120_v19, %v4042_v6 }
 0x234   :  { %v1362_v51 = vadd.f32 1e-05, %v1314_v61  ;;  %v1299_v63 = vsub.f32 %v1267_v5, %v1283_v45  ;;  %v1332_v45 = vsub.f32 %v4089_v49, %v1251_v59  ;;  %v1333_v5 = vsub.f32 %v4091_v16, %v1251_v59 }
 0x236   :  { %3273 = vrsqrt.f32 %v1362_v51  ;;  %v1315_v2 = vmax.f32 %v1299_v63, 0.0  ;;  %v4357_v51 = vrot.slane %v1121_v35, %v4042_v6 }
 0x238   :  { %v1363_v54 = vadd.f32 1e-05, %v1315_v2 }
 0x239   :  { %v1130_v41 = vpop.xlane.xlu0 %1129 }
 0x23a   :  { %3275 = vrsqrt.f32 %v1363_v54  ;;  %v4332_v0 = vmul.f32 0.00390625, %v1130_v41 }
 0x23c   :  { %v1284_v29 = vmul.f32 %v4332_v0, %v4332_v0 }
 0x23d   :  { %v1133_v9 = vpop.xlane.xlu1 %1132  ;;  %v1210_v7 = vpop.xlane.xlu0 %1209 }
 0x23e   :  { %v4334_v60 = vmul.f32 0.00390625, %v1133_v9  ;;  %v1268_v39 = vmul.f32 0.00390625, %v1210_v7  ;;  %v4361_v7 = vrot.slane %v1121_v35, %v4037_v3 }
 0x240   :  { %v1300_v27 = vsub.f32 %v1268_v39, %v1284_v29  ;;  %v1285_v13 = vmul.f32 %v4334_v60, %v4334_v60 }
 0x241   :  { %v1213_v33 = vpop.xlane.xlu1 %1212 }
 0x242   :  { %v1316_v22 = vmax.f32 %v1300_v27, 0.0  ;;  %v1269_v56 = vmul.f32 0.00390625, %v1213_v33 }
 0x243   :  { %v3274_v57 = vpop.eup %3273 }
 0x244   :  { %v1364_v30 = vadd.f32 1e-05, %v1316_v22  ;;  %v1301_v38 = vsub.f32 %v1269_v56, %v1285_v13  ;;  %v1395_v53 = vmul.f32 %v3274_v57, %v1331_v55  ;;  %v1394_v61 = vmul.f32 %v3274_v57, %v1330_v47 }
 0x246   :  { %3277 = vrsqrt.f32 %v1364_v30  ;;  %v1317_v21 = vmax.f32 %v1301_v38, 0.0  ;;  %v1438_v54 = vmul.f32 %v4349_v28, %v1395_v53  ;;  %v1437_v29 = vmul.f32 %v4352_v36, %v1394_v61 }
 0x247   :  { %v3276_v25 = vpop.eup %3275  ;;  %v1335_v53 = vsub.f32 %v4114_v26, %v4332_v0 }
 0x248   :  { %v1365_v63 = vadd.f32 1e-05, %v1317_v21  ;;  %v1397_v2 = vmul.f32 %v3276_v25, %v1333_v5  ;;  %v1396_v41 = vmul.f32 %v3276_v25, %v1332_v45  ;;  %v1481_v39 = vadd.f32 %v4357_v51, %v1438_v54 }
 0x249   :  { %v1136_v9 = vpop.xlane.xlu0 %1135  ;;  %v1480_v55 = vadd.f32 %v4361_v7, %v1437_v29  ;;  %v1334_v25 = vsub.f32 %v4112_v23, %v4332_v0  ;;  %v1337_v29 = vsub.f32 %v4130_v37, %v4334_v60 }
 0x24a   :  { %3279 = vrsqrt.f32 %v1365_v63  ;;  %v4364_v49 = vmul.f32 0.00390625, %v1136_v9  ;;  %v1440_v16 = vmul.f32 %v4349_v28, %v1397_v2  ;;  %v1439_v59 = vmul.f32 %v4352_v36, %v1396_v41 }
 0x24b   :  { %v1336_v9 = vsub.f32 %v4128_v12, %v4334_v60 }
 0x24c   :  { %v1483_v27 = vadd.f32 %v4357_v51, %v1440_v16  ;;  %v1482_v22 = vadd.f32 %v4361_v7, %v1439_v59  ;;  %v1286_v56 = vmul.f32 %v4364_v49, %v4364_v49 }
 0x24d   :  { %v1139_v33 = vpop.xlane.xlu1 %1138  ;;  %v1216_v19 = vpop.xlane.xlu0 %1215 }
 0x24e   :  { %v4372_v13 = vmul.f32 0.00390625, %v1139_v33  ;;  %v1270_v57 = vmul.f32 0.00390625, %v1216_v19  ;;  %v1513_v47 = vpack.c.bf16 %v1483_v27, %v1481_v39  ;;  %v1512_v30 = vpack.c.bf16 %v1482_v22, %v1480_v55 }
 0x250   :  { %v1302_v38 = vsub.f32 %v1270_v57, %v1286_v56  ;;  %1764 = vmatprep.mubr.bf16.mxu0 %v1513_v47  ;;  %v1287_v45 = vmul.f32 %v4372_v13, %v4372_v13 }
 0x251   :  { %v1219_v35 = vpop.xlane.xlu1 %1218  ;;  %1765 = vmatmul.mubr.bf16.vlgmr.msra.gmra.mxu0 %v1512_v30 }
 0x252   :  { %v1318_v61 = vmax.f32 %v1302_v38, 0.0  ;;  %v1271_v5 = vmul.f32 0.00390625, %v1219_v35 }
 0x253   :  { %v3278_v21 = vpop.eup %3277 }
 0x254   :  { %v1366_v63 = vadd.f32 1e-05, %v1318_v61  ;;  %v1303_v2 = vsub.f32 %v1271_v5, %v1287_v45  ;;  %v1399_v54 = vmul.f32 %v3278_v21, %v1335_v53  ;;  %v1398_v41 = vmul.f32 %v3278_v21, %v1334_v25 }
 0x255   :  { %v1339_v21 = vsub.f32 %v4162_v52, %v4364_v49 }
 0x256   :  { %3281 = vrsqrt.f32 %v1366_v63  ;;  %v1319_v26 = vmax.f32 %v1303_v2, 0.0  ;;  %v1442_v27 = vmul.f32 %v4349_v28, %v1399_v54  ;;  %v1441_v23 = vmul.f32 %v4352_v36, %v1398_v41 }
 0x257   :  { %v3280_v16 = vpop.eup %3279  ;;  %v1338_v41 = vsub.f32 %v4160_v50, %v4364_v49 }
 0x258   :  { %v1367_v59 = vadd.f32 1e-05, %v1319_v26  ;;  %v1401_v39 = vmul.f32 %v3280_v16, %v1337_v29  ;;  %v1400_v33 = vmul.f32 %v3280_v16, %v1336_v9  ;;  %v1485_v37 = vadd.f32 %v4357_v51, %v1442_v27 }
 0x259   :  { %v1142_v19 = vpop.xlane.xlu0 %1141  ;;  %v1484_v57 = vadd.f32 %v4361_v7, %v1441_v23 }
 0x25a   :  { %3283 = vrsqrt.f32 %v1367_v59  ;;  %v4388_v0 = vmul.f32 0.00390625, %v1142_v19  ;;  %v1444_v55 = vmul.f32 %v4349_v28, %v1401_v39  ;;  %v1443_v12 = vmul.f32 %v4352_v36, %v1400_v33 }
 0x25b   :  { %v1340_v59 = vsub.f32 %v4176_v40, %v4372_v13  ;;  %v1341_v39 = vsub.f32 %v4178_v48, %v4372_v13 }
 0x25c   :  { %v1487_v60 = vadd.f32 %v4357_v51, %v1444_v55  ;;  %v1486_v47 = vadd.f32 %v4361_v7, %v1443_v12  ;;  %v1288_v38 = vmul.f32 %v4388_v0, %v4388_v0 }
 0x25d   :  { %v1145_v22 = vpop.xlane.xlu1 %1144  ;;  %v1222_v56 = vpop.xlane.xlu0 %1221 }
 0x25e   :  { %v4396_v30 = vmul.f32 0.00390625, %v1145_v22  ;;  %v1272_v35 = vmul.f32 0.00390625, %v1222_v56  ;;  %v1515_v53 = vpack.c.bf16 %v1487_v60, %v1485_v37  ;;  %v1514_v61 = vpack.c.bf16 %v1486_v47, %v1484_v57 }
 0x260   :  { %v1304_v45 = vsub.f32 %v1272_v35, %v1288_v38  ;;  %1774 = vmatprep.mubr.bf16.mxu0 %v1515_v53  ;;  %v1289_v63 = vmul.f32 %v4396_v30, %v4396_v30 }
 0x261   :  { %v1225_v5 = vpop.xlane.xlu1 %1224  ;;  %1775 = vmatmul.mubr.bf16.gmra.mxu0 %v1514_v61 }
 0x262   :  { %v1320_v25 = vmax.f32 %v1304_v45, 0.0  ;;  %v1273_v2 = vmul.f32 0.00390625, %v1225_v5 }
 0x263   :  { %v3282_v54 = vpop.eup %3281 }
 0x264   :  { %v1368_v9 = vadd.f32 1e-05, %v1320_v25  ;;  %v1305_v29 = vsub.f32 %v1273_v2, %v1289_v63  ;;  %v1403_v26 = vmul.f32 %v3282_v54, %v1339_v21  ;;  %v1402_v16 = vmul.f32 %v3282_v54, %v1338_v41 }
 0x265   :  { %v1343_v21 = vsub.f32 %v4210_v17, %v4388_v0  ;;  %v1342_v41 = vsub.f32 %v4208_v11, %v4388_v0 }
 0x266   :  { %3285 = vrsqrt.f32 %v1368_v9  ;;  %v1321_v52 = vmax.f32 %v1305_v29, 0.0  ;;  %v1446_v23 = vmul.f32 %v4349_v28, %v1403_v26  ;;  %v1445_v50 = vmul.f32 %v4352_v36, %v1402_v16 }
 0x267   :  { %v3284_v27 = vpop.eup %3283 }
 0x268   :  { %v1369_v33 = vadd.f32 1e-05, %v1321_v52  ;;  %v1405_v19 = vmul.f32 %v3284_v27, %v1341_v39  ;;  %v1404_v55 = vmul.f32 %v3284_v27, %v1340_v59  ;;  %v1489_v48 = vadd.f32 %v4357_v51, %v1446_v23 }
 0x269   :  { %v1148_v12 = vpop.xlane.xlu0 %1147  ;;  %v1488_v56 = vadd.f32 %v4361_v7, %v1445_v50  ;;  %v1344_v59 = vsub.f32 %v4224_v14, %v4396_v30  ;;  %v1345_v39 = vsub.f32 %v4226_v10, %v4396_v30 }
 0x26a   :  { %3287 = vrsqrt.f32 %v1369_v33  ;;  %v4412_v49 = vmul.f32 0.00390625, %v1148_v12  ;;  %v1448_v37 = vmul.f32 %v4349_v28, %v1405_v19  ;;  %v1447_v40 = vmul.f32 %v4352_v36, %v1404_v55 }
 0x26c   :  { %v1491_v13 = vadd.f32 %v4357_v51, %v1448_v37  ;;  %v1490_v57 = vadd.f32 %v4361_v7, %v1447_v40  ;;  %v1290_v38 = vmul.f32 %v4412_v49, %v4412_v49 }
 0x26d   :  { %v1151_v60 = vpop.xlane.xlu1 %1150  ;;  %v1228_v22 = vpop.xlane.xlu0 %1227 }
 0x26e   :  { %v4420_v47 = vmul.f32 0.00390625, %v1151_v60  ;;  %v1274_v35 = vmul.f32 0.00390625, %v1228_v22  ;;  %v1517_v53 = vpack.c.bf16 %v1491_v13, %v1489_v48  ;;  %v1516_v61 = vpack.c.bf16 %v1490_v57, %v1488_v56 }
 0x270   :  { %v1306_v45 = vsub.f32 %v1274_v35, %v1290_v38  ;;  %1784 = vmatprep.mubr.bf16.mxu0 %v1517_v53  ;;  %v1291_v63 = vmul.f32 %v4420_v47, %v4420_v47  ;;  %v1347_v53 = vsub.f32 %v4240_v20, %v4412_v49 }
 0x271   :  { %v1231_v5 = vpop.xlane.xlu1 %1230  ;;  %1785 = vmatmul.mubr.bf16.gmra.mxu0 %v1516_v61 }
 0x272   :  { %v1322_v25 = vmax.f32 %v1306_v45, 0.0  ;;  %v1275_v2 = vmul.f32 0.00390625, %v1231_v5 }
 0x273   :  { %v3286_v54 = vpop.eup %3285 }
 0x274   :  { %v1370_v9 = vadd.f32 1e-05, %v1322_v25  ;;  %v1307_v29 = vsub.f32 %v1275_v2, %v1291_v63  ;;  %v1407_v26 = vmul.f32 %v3286_v54, %v1343_v21  ;;  %v1406_v16 = vmul.f32 %v3286_v54, %v1342_v41 }
 0x275   :  { %v1346_v25 = vsub.f32 %v4238_v4, %v4412_v49 }
 0x276   :  { %3289 = vrsqrt.f32 %v1370_v9  ;;  %v1323_v17 = vmax.f32 %v1307_v29, 0.0  ;;  %v1450_v19 = vmul.f32 %v4349_v28, %v1407_v26  ;;  %v1449_v11 = vmul.f32 %v4352_v36, %v1406_v16 }
 0x277   :  { %v3288_v52 = vpop.eup %3287  ;;  %v1348_v9 = vsub.f32 %v4248_v8, %v4420_v47  ;;  %v1349_v29 = vsub.f32 %v4250_v15, %v4420_v47 }
 0x278   :  { %v1371_v27 = vadd.f32 1e-05, %v1323_v17  ;;  %v1409_v33 = vmul.f32 %v3288_v52, %v1345_v39  ;;  %v1408_v23 = vmul.f32 %v3288_v52, %v1344_v59  ;;  %v1493_v10 = vadd.f32 %v4357_v51, %v1450_v19 }
 0x279   :  { %v1154_v55 = vpop.xlane.xlu0 %1153  ;;  %v1492_v40 = vadd.f32 %v4361_v7, %v1449_v11 }
 0x27a   :  { %3291 = vrsqrt.f32 %v1371_v27  ;;  %v4436_v0 = vmul.f32 0.00390625, %v1154_v55  ;;  %v1452_v12 = vmul.f32 %v4349_v28, %v1409_v33  ;;  %v1451_v14 = vmul.f32 %v4352_v36, %v1408_v23 }
 0x27c   :  { %v1495_v30 = vadd.f32 %v4357_v51, %v1452_v12  ;;  %v1494_v48 = vadd.f32 %v4361_v7, %v1451_v14  ;;  %v1292_v60 = vmul.f32 %v4436_v0, %v4436_v0 }
 0x27d   :  { %v1157_v50 = vpop.xlane.xlu1 %1156  ;;  %v1234_v37 = vpop.xlane.xlu0 %1233 }
 0x27e   :  { %v4444_v13 = vmul.f32 0.00390625, %v1157_v50  ;;  %v1276_v22 = vmul.f32 0.00390625, %v1234_v37  ;;  %v1519_v56 = vpack.c.bf16 %v1495_v30, %v1493_v10  ;;  %v1518_v57 = vpack.c.bf16 %v1494_v48, %v1492_v40 }
 0x27f   :  { %v1350_v37 = vsub.f32 %v4262_v24, %v4436_v0  ;;  %v1351_v48 = vsub.f32 %v4264_v62, %v4436_v0 }
 0x280   :  { %v1308_v38 = vsub.f32 %v1276_v22, %v1292_v60  ;;  %1794 = vmatprep.mubr.bf16.mxu0 %v1519_v56  ;;  %v1293_v45 = vmul.f32 %v4444_v13, %v4444_v13  ;;  %v1353_v24 = vsub.f32 %v4274_v18, %v4444_v13 }
 0x281   :  { %v1237_v35 = vpop.xlane.xlu1 %1236  ;;  %1795 = vmatmul.mubr.bf16.gmra.mxu0 %v1518_v57 }
 0x282   :  { %v1324_v61 = vmax.f32 %v1308_v38, 0.0  ;;  %v1277_v5 = vmul.f32 0.00390625, %v1237_v35 }
 0x283   :  { %v3290_v21 = vpop.eup %3289 }
 0x284   :  { %v1372_v63 = vadd.f32 1e-05, %v1324_v61  ;;  %v1309_v2 = vsub.f32 %v1277_v5, %v1293_v45  ;;  %v1411_v54 = vmul.f32 %v3290_v21, %v1347_v53  ;;  %v1410_v41 = vmul.f32 %v3290_v21, %v1346_v25 }
 0x285   :  { %v1352_v45 = vsub.f32 %v4272_v58, %v4444_v13 }
 0x286   :  { %3293 = vrsqrt.f32 %v1372_v63  ;;  %v1325_v20 = vmax.f32 %v1309_v2, 0.0  ;;  %v1454_v39 = vmul.f32 %v4349_v28, %v1411_v54  ;;  %v1453_v4 = vmul.f32 %v4352_v36, %v1410_v41 }
 0x287   :  { %v3292_v26 = vpop.eup %3291 }
 0x288   :  { %v1373_v16 = vadd.f32 1e-05, %v1325_v20  ;;  %v1413_v59 = vmul.f32 %v3292_v26, %v1349_v29  ;;  %v1412_v17 = vmul.f32 %v3292_v26, %v1348_v9  ;;  %v1497_v15 = vadd.f32 %v4357_v51, %v1454_v39 }
 0x289   :  { %v1160_v52 = vpop.xlane.xlu0 %1159  ;;  %v1496_v23 = vadd.f32 %v4361_v7, %v1453_v4 }
 0x28a   :  { %3295 = vrsqrt.f32 %v1373_v16  ;;  %v4460_v49 = vmul.f32 0.00390625, %v1160_v52  ;;  %v1456_v27 = vmul.f32 %v4349_v28, %v1413_v59  ;;  %v1455_v8 = vmul.f32 %v4352_v36, %v1412_v17 }
 0x28c   :  { %v1499_v47 = vadd.f32 %v4357_v51, %v1456_v27  ;;  %v1498_v55 = vadd.f32 %v4361_v7, %v1455_v8  ;;  %v1294_v12 = vmul.f32 %v4460_v49, %v4460_v49 }
 0x28d   :  { %v1163_v33 = vpop.xlane.xlu1 %1162  ;;  %v1240_v19 = vpop.xlane.xlu0 %1239 }
 0x28e   :  { %v4468_v11 = vmul.f32 0.00390625, %v1163_v33  ;;  %v1278_v14 = vmul.f32 0.00390625, %v1240_v19  ;;  %v1521_v10 = vpack.c.bf16 %v1499_v47, %v1497_v15  ;;  %v1520_v30 = vpack.c.bf16 %v1498_v55, %v1496_v23 }
 0x28f   :  { %v1354_v19 = vsub.f32 %v4286_v31, %v4460_v49  ;;  %v1355_v23 = vsub.f32 %v4288_v32, %v4460_v49 }
 0x290   :  { %v1310_v50 = vsub.f32 %v1278_v14, %v1294_v12  ;;  %1804 = vmatprep.mubr.bf16.mxu0 %v1521_v10  ;;  %v1295_v22 = vmul.f32 %v4468_v11, %v4468_v11 }
 0x291   :  { %v1243_v40 = vpop.xlane.xlu1 %1242  ;;  %1805 = vmatmul.mubr.bf16.gmra.mxu0 %v1520_v30 }
 0x292   :  { %v1326_v60 = vmax.f32 %v1310_v50, 0.0  ;;  %v1279_v56 = vmul.f32 0.00390625, %v1243_v40  ;;  %v1357_v40 = vsub.f32 %v4298_v46, %v4468_v11 }
 0x293   :  { %v3294_v57 = vpop.eup %3293 }
 0x294   :  { %v1374_v38 = vadd.f32 1e-05, %v1326_v60  ;;  %v1311_v35 = vsub.f32 %v1279_v56, %v1295_v22  ;;  %v1415_v53 = vmul.f32 %v3294_v57, %v1351_v48  ;;  %v1414_v61 = vmul.f32 %v3294_v57, %v1350_v37 }
 0x295   :  { %v1356_v37 = vsub.f32 %v4296_v43, %v4468_v11 }
 0x296   :  { %3297 = vrsqrt.f32 %v1374_v38  ;;  %v1327_v5 = vmax.f32 %v1311_v35, 0.0  ;;  %v1458_v62 = vmul.f32 %v4349_v28, %v1415_v53  ;;  %v1457_v54 = vmul.f32 %v4352_v36, %v1414_v61 }
 0x297   :  { %v3296_v21 = vpop.eup %3295 }
 0x298   :  { %v1375_v0 = vadd.f32 1e-05, %v1327_v5  ;;  %v1417_v63 = vmul.f32 %v3296_v21, %v1353_v24  ;;  %v1416_v2 = vmul.f32 %v3296_v21, %v1352_v45  ;;  %v1501_v18 = vadd.f32 %v4357_v51, %v1458_v62 }
 0x299   :  { %v1166_v25 = vpop.xlane.xlu0 %1165  ;;  %v1500_v26 = vadd.f32 %v4361_v7, %v1457_v54 }
 0x29a   :  { %v1264_v41 = vmul.f32 0.00390625, %v1166_v25  ;;  %3299 = vrsqrt.f32 %v1375_v0  ;;  %v1460_v9 = vmul.f32 %v4349_v28, %v1417_v63  ;;  %v1459_v58 = vmul.f32 %v4352_v36, %v1416_v2 }
 0x29c   :  { %v1503_v13 = vadd.f32 %v4357_v51, %v1460_v9  ;;  %v1502_v16 = vadd.f32 %v4361_v7, %v1459_v58  ;;  %v1296_v39 = vmul.f32 %v1264_v41, %v1264_v41  ;;  %v1358_v61 = vsub.f32 %v4310_v1, %v1264_v41 }
 0x29d   :  { %v1169_v29 = vpop.xlane.xlu1 %1168  ;;  %v1246_v20 = vpop.xlane.xlu0 %1245  ;;  %v1359_v45 = vsub.f32 %v4312_v34, %v1264_v41 }
 0x29e   :  { %v1265_v59 = vmul.f32 0.00390625, %v1169_v29  ;;  %v1280_v17 = vmul.f32 0.00390625, %v1246_v20  ;;  %v1523_v52 = vpack.c.bf16 %v1503_v13, %v1501_v18  ;;  %v1522_v4 = vpack.c.bf16 %v1502_v16, %v1500_v26  ;;  %v3179_v18 = vld [vmem:[#allocation3 + $0x74] ss:$8 sps:$4 sm:$0xff]   ;;  %v3182_v26 = vld [vmem:[#allocation3 + $0x64] ss:$8 sps:$4 sm:$0xff]  }
 0x29f   :  { %v1560_v13 = vld [vmem:[%s5118_s12] sm:$0x3]  ;;  %2489 = vmatprep.subr.bf16.mxu1 %v3179_v18 }
 0x2a0   :  { %v1312_v27 = vsub.f32 %v1280_v17, %v1296_v39  ;;  %1814 = vmatprep.mubr.bf16.mxu0 %v1523_v52  ;;  %v1297_v47 = vmul.f32 %v1265_v59, %v1265_v59  ;;  %v1360_v62 = vsub.f32 %v4320_v42, %v1265_v59  ;;  %v1361_v0 = vsub.f32 %v4322_v44, %v1265_v59  ;;  %v3183_v59 = vld [vmem:[#allocation3 + $0x50] ss:$8 sps:$4 sm:$0xff]   ;;  %v3185_v39 = vld [vmem:[#allocation3 + $0x54] ss:$8 sps:$4 sm:$0xff]   ;;  %v3188_v52 = vld [vmem:[#allocation3 + $0x44] ss:$8 sps:$4 sm:$0xff]  }
 0x2a1   :  { %v1249_v8 = vpop.xlane.xlu1 %1248  ;;  %1815 = vmatmul.mubr.bf16.gmra.mxu0 %v1522_v4 }
 0x2a2   :  { %v1328_v15 = vmax.f32 %v1312_v27, 0.0  ;;  %v1281_v33 = vmul.f32 0.00390625, %v1249_v8 }
 0x2a3   :  { %v3298_v55 = vpop.eup %3297 }
 0x2a4   :  { %v1376_v12 = vadd.f32 1e-05, %v1328_v15  ;;  %v1313_v14 = vsub.f32 %v1281_v33, %v1297_v47  ;;  %v1419_v10 = vmul.f32 %v3298_v55, %v1355_v23  ;;  %v1418_v30 = vmul.f32 %v3298_v55, %v1354_v19  ;;  %v3186_v15 = vld [vmem:[#allocation3 + $0x40] ss:$8 sps:$4 sm:$0xff]   ;;  %v3191_v23 = vld [vmem:[#allocation3 + $0x34] ss:$8 sps:$4 sm:$0xff]  }
 0x2a6   :  { %3301 = vrsqrt.f32 %v1376_v12  ;;  %v1329_v50 = vmax.f32 %v1313_v14, 0.0  ;;  %v1462_v31 = vmul.f32 %v4349_v28, %v1419_v10  ;;  %v1461_v32 = vmul.f32 %v4352_v36, %v1418_v30  ;;  %v3189_v30 = vld [vmem:[#allocation3 + $0x30] ss:$8 sps:$4 sm:$0xff]  }
 0x2a7   :  { %v3300_v48 = vpop.eup %3299 }
 0x2a8   :  { %v1377_v60 = vadd.f32 1e-05, %v1329_v50  ;;  %v1421_v22 = vmul.f32 %v3300_v48, %v1357_v40  ;;  %v1420_v56 = vmul.f32 %v3300_v48, %v1356_v37  ;;  %v1505_v38 = vadd.f32 %v4357_v51, %v1462_v31  ;;  %v3194_v48 = vld [vmem:[#allocation3 + $0x24] ss:$8 sps:$4 sm:$0xff]  }
 0x2a9   :  { %v1504_v35 = vadd.f32 %v4361_v7, %v1461_v32 }
 0x2aa   :  { %3303 = vrsqrt.f32 %v1377_v60  ;;  %v1464_v49 = vmul.f32 %v4349_v28, %v1421_v22  ;;  %v1463_v57 = vmul.f32 %v4352_v36, %v1420_v56  ;;  %v3192_v56 = vld [vmem:[#allocation3 + $0x20] ss:$8 sps:$4 sm:$0xff]  }
 0x2ac   :  { %v1507_v43 = vadd.f32 %v4357_v51, %v1464_v49  ;;  %v1506_v46 = vadd.f32 %v4361_v7, %v1463_v57  ;;  %v3197_v49 = vld [vmem:[#allocation3 + $0x14] ss:$8 sps:$4 sm:$0xff]  }
 0x2ae   :  { %v1525_v11 = vpack.c.bf16 %v1507_v43, %v1505_v38  ;;  %v1524_v53 = vpack.c.bf16 %v1506_v46, %v1504_v35  ;;  %v3195_v43 = vld [vmem:[#allocation3 + $0x10] ss:$8 sps:$4 sm:$0xff]  }
 0x2b0   :  { %1824 = vmatprep.mubr.bf16.mxu0 %v1525_v11 }
 0x2b1   :  { %1825 = vmatmul.mubr.bf16.gmra.mxu0 %v1524_v53 }
 0x2b3   :  { %v3302_v24 = vpop.eup %3301 }
 0x2b4   :  { %v1423_v5 = vmul.f32 %v3302_v24, %v1359_v45  ;;  %v1422_v21 = vmul.f32 %v3302_v24, %v1358_v61 }
 0x2b6   :  { %v1466_v2 = vmul.f32 %v4349_v28, %v1423_v5  ;;  %v1465_v9 = vmul.f32 %v4352_v36, %v1422_v21  ;;  %v3198_v5 = vld [vmem:[#allocation3] ss:$8 sps:$4 sm:$0xff]   ;;  %v3200_v21 = vld [vmem:[#allocation3 + $0x4] ss:$8 sps:$4 sm:$0xff]  }
 0x2b7   :  { %v3304_v25 = vpop.eup %3303 }
 0x2b8   :  { %v1425_v63 = vmul.f32 %v3304_v25, %v1361_v0  ;;  %v1424_v54 = vmul.f32 %v3304_v25, %v1360_v62  ;;  %v1509_v34 = vadd.f32 %v4357_v51, %v1466_v2  ;;  %v1508_v29 = vadd.f32 %v4361_v7, %v1465_v9 }
 0x2ba   :  { %v1468_v58 = vmul.f32 %v4349_v28, %v1425_v63  ;;  %v1467_v1 = vmul.f32 %v4352_v36, %v1424_v54  ;;  %v3177_v28 = vld [vmem:[#allocation3 + $0x70] ss:$8 sps:$4 sm:$0xff]   ;;  %v3180_v36 = vld [vmem:[#allocation3 + $0x60] ss:$8 sps:$4 sm:$0xff]  }
 0x2bb   :  { %2490 = vmatpush1.bf16.msra.mxu1 %v3177_v28 }
 0x2bc   :  { %v1511_v41 = vadd.f32 %v4357_v51, %v1468_v58  ;;  %v1510_v42 = vadd.f32 %v4361_v7, %v1467_v1  ;;  %v4522_v51 = vrot.slane %v1560_v13, %v4037_v3  ;;  %2491 = vmatprep.subr.bf16.mxu1 %v3182_v26  ;;  %v4525_v7 = vrot.slane %v1560_v13, %v4042_v6  ;;  %v3203_v58 = vld [vmem:[#allocation3 + $0xf4] ss:$8 sps:$4 sm:$0xff]   ;;  %v3201_v1 = vld [vmem:[#allocation3 + $0xf0] ss:$8 sps:$4 sm:$0xff]  }
 0x2be   :  { %v1527_v44 = vpack.c.bf16 %v1511_v41, %v1509_v34  ;;  %v1526_v20 = vpack.c.bf16 %v1510_v42, %v1508_v29 }
 0x2bf   :  { %2492 = vmatpush1.bf16.msra.mxu1 %v3180_v36  ;;  %v3209_v36 = vld [vmem:[#allocation3 + $0xd4] ss:$8 sps:$4 sm:$0xff]  }
 0x2c0   :  { %1834 = vmatprep.mubr.bf16.mxu0 %v1527_v44  ;;  %2493 = vmatprep.subr.bf16.mxu1 %v3185_v39  ;;  %v3206_v44 = vld [vmem:[#allocation3 + $0xe4] ss:$8 sps:$4 sm:$0xff]  }
 0x2c1   :  { %1835 = vmatmul.mubr.bf16.gmra.mxu0 %v1526_v20  ;;  %v3204_v20 = vld [vmem:[#allocation3 + $0xe0] ss:$8 sps:$4 sm:$0xff]  }
 0x2c3   :  { %2494 = vmatpush1.bf16.msra.mxu1 %v3183_v59 }
 0x2c4   :  { %2495 = vmatprep.subr.bf16.mxu1 %v3188_v52 }
 0x2c7   :  { %2496 = vmatpush1.bf16.msra.mxu1 %v3186_v15 }
 0x2c8   :  { %2497 = vmatprep.subr.bf16.mxu1 %v3191_v23 }
 0x2cb   :  { %2498 = vmatpush1.bf16.msra.mxu1 %v3189_v30  ;;  %v3215_v30 = vld [vmem:[#allocation3 + $0xb4] ss:$8 sps:$4 sm:$0xff]  }
 0x2cc   :  { %2499 = vmatprep.subr.bf16.mxu1 %v3194_v48 }
 0x2cf   :  { %2500 = vmatpush1.bf16.msra.mxu1 %v3192_v56  ;;  %v3218_v56 = vld [vmem:[#allocation3 + $0xa4] ss:$8 sps:$4 sm:$0xff]  }
 0x2d0   :  { %2501 = vmatprep.subr.bf16.mxu1 %v3197_v49 }
 0x2d3   :  { %2502 = vmatpush1.bf16.msra.mxu1 %v3195_v43  ;;  %v3221_v43 = vld [vmem:[#allocation3 + $0x94] ss:$8 sps:$4 sm:$0xff]  }
 0x2d4   :  { %2503 = vmatprep.subr.bf16.mxu1 %v3200_v21 }
 0x2d7   :  { %2504 = vmatpush1.bf16.msra.mxu1 %v3198_v5 }
 0x2d8   :  { %2505 = vmatprep.subr.bf16.mxu1 %v3203_v58 }
 0x2db   :  { %2506 = vmatpush2.bf16.msra.mxu1 %v3201_v1 }
 0x2dc   :  { %2507 = vmatprep.subr.bf16.mxu1 %v3206_v44 }
 0x2df   :  { %2508 = vmatpush2.bf16.msra.mxu1 %v3204_v20 }
 0x2e0   :  { %2509 = vmatprep.subr.bf16.mxu1 %v3209_v36 }
 0x311   :  { %v1766_v16 = vpop.f32.mrf.mxu0 }
 0x312   :  { %v1767_v17 = vadd.f32 %v1766_v16, %v4522_v51  ;;  %v3207_v16 = vld [vmem:[#allocation3 + $0xd0] ss:$8 sps:$4 sm:$0xff]  }
 0x313   :  { %v1768_v4 = vpop.f32.mrf.mxu0  ;;  %2510 = vmatpush2.bf16.msra.mxu1 %v3207_v16 }
 0x314   :  { %v1769_v27 = vadd.f32 %v1768_v4, %v4525_v7  ;;  %v4529_v47 = vmax.f32 %v1767_v17, 0.0 }
 0x315   :  { %v1770_v8 = vpop.f32.mrf.mxu0 }
 0x316   :  { %v4531_v33 = vmax.f32 %v1769_v27, 0.0  ;;  %v1771_v19 = vadd.f32 %v1770_v8, %v4522_v51  ;;  %v1927_v50 = vmul.f32 %v4529_v47, %v4529_v47  ;;  %v3210_v27 = vld [vmem:[#allocation3 + $0xc0] ss:$8 sps:$4 sm:$0xff]   ;;  %v3212_v8 = vld [vmem:[#allocation3 + $0xc4] ss:$8 sps:$4 sm:$0xff]  }
 0x317   :  { %v1772_v55 = vpop.f32.mrf.mxu0  ;;  %2511 = vmatprep.subr.bf16.mxu1 %v3212_v8 }
 0x318   :  { %v1928_v12 = vmul.f32 %v4531_v33, %v4531_v33  ;;  %v1773_v14 = vadd.f32 %v1772_v55, %v4525_v7  ;;  %v1879_v10 = vadd.f32 %v4531_v33, %v4529_v47  ;;  %v4541_v37 = vmax.f32 %v1771_v19, 0.0  ;;  %2512 = vmatpush2.bf16.msra.mxu1 %v3210_v27 }
 0x319   :  { %2513 = vmatprep.subr.bf16.mxu1 %v3215_v30 }
 0x31a   :  { %v4543_v40 = vmax.f32 %v1773_v14, 0.0  ;;  %1880 = vadd.xlane.f32.xlu0 %v1879_v10  ;;  %v1959_v31 = vadd.f32 %v1928_v12, %v1927_v50  ;;  %v1929_v32 = vmul.f32 %v4541_v37, %v4541_v37  ;;  %v3213_v50 = vld [vmem:[#allocation3 + $0xb0] ss:$8 sps:$4 sm:$0xff]  }
 0x31c   :  { %v1930_v60 = vmul.f32 %v4543_v40, %v4543_v40  ;;  %v1882_v22 = vadd.f32 %v4543_v40, %v4541_v37  ;;  %2514 = vmatpush2.bf16.msra.mxu1 %v3213_v50 }
 0x31d   :  { %2515 = vmatprep.subr.bf16.mxu1 %v3218_v56 }
 0x31e   :  { %1883 = vadd.xlane.f32.xlu1 %v1882_v22  ;;  %1960 = vadd.xlane.f32.xlu0 %v1959_v31  ;;  %v1962_v57 = vadd.f32 %v1930_v60, %v1929_v32  ;;  %v3216_v32 = vld [vmem:[#allocation3 + $0xa0] ss:$8 sps:$4 sm:$0xff]  }
 0x320   :  { %2516 = vmatpush2.bf16.msra.mxu1 %v3216_v32 }
 0x321   :  { %v1776_v38 = vpop.f32.mrf.mxu0  ;;  %2517 = vmatprep.subr.bf16.mxu1 %v3221_v43 }
 0x322   :  { %v1777_v35 = vadd.f32 %v1776_v38, %v4522_v51  ;;  %1963 = vadd.xlane.f32.xlu1 %v1962_v57 }
 0x323   :  { %v1778_v46 = vpop.f32.mrf.mxu0 }
 0x324   :  { %v1779_v11 = vadd.f32 %v1778_v46, %v4525_v7  ;;  %v4553_v61 = vmax.f32 %v1777_v35, 0.0  ;;  %v3219_v46 = vld [vmem:[#allocation3 + $0x90] ss:$8 sps:$4 sm:$0xff]  }
 0x325   :  { %v1780_v53 = vpop.f32.mrf.mxu0  ;;  %2518 = vmatpush2.bf16.msra.mxu1 %v3219_v46 }
 0x326   :  { %v4555_v45 = vmax.f32 %v1779_v11, 0.0  ;;  %v1781_v24 = vadd.f32 %v1780_v53, %v4522_v51  ;;  %v1931_v2 = vmul.f32 %v4553_v61, %v4553_v61 }
 0x327   :  { %v1782_v62 = vpop.f32.mrf.mxu0 }
 0x328   :  { %v1932_v0 = vmul.f32 %v4555_v45, %v4555_v45  ;;  %v1783_v25 = vadd.f32 %v1782_v62, %v4525_v7  ;;  %v1885_v63 = vadd.f32 %v4555_v45, %v4553_v61  ;;  %v4565_v54 = vmax.f32 %v1781_v24, 0.0  ;;  %v3222_v62 = vld [vmem:[#allocation3 + $0x80] ss:$8 sps:$4 sm:$0xff]  }
 0x32a   :  { %v4567_v9 = vmax.f32 %v1783_v25, 0.0  ;;  %1886 = vadd.xlane.f32.xlu0 %v1885_v63  ;;  %v1965_v29 = vadd.f32 %v1932_v0, %v1931_v2  ;;  %v1933_v42 = vmul.f32 %v4565_v54, %v4565_v54  ;;  %v3224_v0 = vld [vmem:[#allocation3 + $0x84] ss:$8 sps:$4 sm:$0xff]  }
 0x32b   :  { %2519 = vmatprep.subr.bf16.mxu1 %v3224_v0 }
 0x32c   :  { %v1934_v34 = vmul.f32 %v4567_v9, %v4567_v9  ;;  %v1888_v41 = vadd.f32 %v4567_v9, %v4565_v54  ;;  %2520 = vmatpush2.bf16.msra.mxu1 %v3222_v62 }
 0x32e   :  { %1889 = vadd.xlane.f32.xlu1 %v1888_v41  ;;  %1966 = vadd.xlane.f32.xlu0 %v1965_v29  ;;  %v1968_v18 = vadd.f32 %v1934_v34, %v1933_v42 }
 0x331   :  { %v1786_v13 = vpop.f32.mrf.mxu0 }
 0x332   :  { %v1787_v28 = vadd.f32 %v1786_v13, %v4522_v51  ;;  %1969 = vadd.xlane.f32.xlu1 %v1968_v18 }
 0x333   :  { %v1788_v26 = vpop.f32.mrf.mxu0 }
 0x334   :  { %v1789_v59 = vadd.f32 %v1788_v26, %v4525_v7  ;;  %v4577_v17 = vmax.f32 %v1787_v28, 0.0 }
 0x335   :  { %v1790_v39 = vpop.f32.mrf.mxu0 }
 0x336   :  { %v4579_v52 = vmax.f32 %v1789_v59, 0.0  ;;  %v1791_v4 = vadd.f32 %v1790_v39, %v4522_v51  ;;  %v1935_v12 = vmul.f32 %v4577_v17, %v4577_v17 }
 0x337   :  { %v1792_v15 = vpop.f32.mrf.mxu0 }
 0x338   :  { %v1936_v19 = vmul.f32 %v4579_v52, %v4579_v52  ;;  %v1793_v23 = vadd.f32 %v1792_v15, %v4525_v7  ;;  %v1891_v55 = vadd.f32 %v4579_v52, %v4577_v17  ;;  %v4589_v14 = vmax.f32 %v1791_v4, 0.0 }
 0x33a   :  { %v4591_v10 = vmax.f32 %v1793_v23, 0.0  ;;  %1892 = vadd.xlane.f32.xlu0 %v1891_v55  ;;  %v1971_v22 = vadd.f32 %v1936_v19, %v1935_v12  ;;  %v1937_v31 = vmul.f32 %v4589_v14, %v4589_v14 }
 0x33c   :  { %v1938_v48 = vmul.f32 %v4591_v10, %v4591_v10  ;;  %v1894_v60 = vadd.f32 %v4591_v10, %v4589_v14 }
 0x33e   :  { %1895 = vadd.xlane.f32.xlu1 %v1894_v60  ;;  %1972 = vadd.xlane.f32.xlu0 %v1971_v22  ;;  %v1974_v49 = vadd.f32 %v1938_v48, %v1937_v31 }
 0x341   :  { %v1796_v57 = vpop.f32.mrf.mxu0 }
 0x342   :  { %v1797_v38 = vadd.f32 %v1796_v57, %v4522_v51  ;;  %1975 = vadd.xlane.f32.xlu1 %v1974_v49 }
 0x343   :  { %v1798_v35 = vpop.f32.mrf.mxu0 }
 0x344   :  { %v1799_v11 = vadd.f32 %v1798_v35, %v4525_v7  ;;  %v4601_v24 = vmax.f32 %v1797_v38, 0.0 }
 0x345   :  { %v1800_v53 = vpop.f32.mrf.mxu0 }
 0x346   :  { %v4603_v5 = vmax.f32 %v1799_v11, 0.0  ;;  %v1801_v21 = vadd.f32 %v1800_v53, %v4522_v51  ;;  %v1939_v1 = vmul.f32 %v4601_v24, %v4601_v24 }
 0x347   :  { %v1802_v25 = vpop.f32.mrf.mxu0 }
 0x348   :  { %v1940_v63 = vmul.f32 %v4603_v5, %v4603_v5  ;;  %v1803_v2 = vadd.f32 %v1802_v25, %v4525_v7  ;;  %v1897_v58 = vadd.f32 %v4603_v5, %v4601_v24  ;;  %v4613_v34 = vmax.f32 %v1801_v21, 0.0 }
 0x34a   :  { %v4615_v41 = vmax.f32 %v1803_v2, 0.0  ;;  %1898 = vadd.xlane.f32.xlu0 %v1897_v58  ;;  %v1977_v44 = vadd.f32 %v1940_v63, %v1939_v1  ;;  %v1941_v20 = vmul.f32 %v4613_v34, %v4613_v34 }
 0x34c   :  { %v1942_v29 = vmul.f32 %v4615_v41, %v4615_v41  ;;  %v1900_v42 = vadd.f32 %v4615_v41, %v4613_v34 }
 0x34e   :  { %1901 = vadd.xlane.f32.xlu1 %v1900_v42  ;;  %1978 = vadd.xlane.f32.xlu0 %v1977_v44  ;;  %v1980_v18 = vadd.f32 %v1942_v29, %v1941_v20 }
 0x351   :  { %v1806_v13 = vpop.f32.mrf.mxu0 }
 0x352   :  { %v1807_v28 = vadd.f32 %v1806_v13, %v4522_v51  ;;  %1981 = vadd.xlane.f32.xlu1 %v1980_v18 }
 0x353   :  { %v1808_v36 = vpop.f32.mrf.mxu0 }
 0x354   :  { %v1809_v26 = vadd.f32 %v1808_v36, %v4525_v7  ;;  %v4625_v59 = vmax.f32 %v1807_v28, 0.0 }
 0x355   :  { %v1810_v16 = vpop.f32.mrf.mxu0 }
 0x356   :  { %v4627_v39 = vmax.f32 %v1809_v26, 0.0  ;;  %v1811_v4 = vadd.f32 %v1810_v16, %v4522_v51  ;;  %v1943_v23 = vmul.f32 %v4625_v59, %v4625_v59 }
 0x357   :  { %v1812_v27 = vpop.f32.mrf.mxu0 }
 0x358   :  { %v1944_v8 = vmul.f32 %v4627_v39, %v4627_v39  ;;  %v1813_v15 = vadd.f32 %v1812_v27, %v4525_v7  ;;  %v1903_v19 = vadd.f32 %v4627_v39, %v4625_v59  ;;  %v4637_v55 = vmax.f32 %v1811_v4, 0.0 }
 0x35a   :  { %v4639_v12 = vmax.f32 %v1813_v15, 0.0  ;;  %1904 = vadd.xlane.f32.xlu0 %v1903_v19  ;;  %v1983_v48 = vadd.f32 %v1944_v8, %v1943_v23  ;;  %v1945_v60 = vmul.f32 %v4637_v55, %v4637_v55 }
 0x35c   :  { %v1946_v30 = vmul.f32 %v4639_v12, %v4639_v12  ;;  %v1906_v50 = vadd.f32 %v4639_v12, %v4637_v55 }
 0x35e   :  { %1907 = vadd.xlane.f32.xlu1 %v1906_v50  ;;  %1984 = vadd.xlane.f32.xlu0 %v1983_v48  ;;  %v1986_v22 = vadd.f32 %v1946_v30, %v1945_v60 }
 0x361   :  { %v1816_v31 = vpop.f32.mrf.mxu0 }
 0x362   :  { %v1817_v56 = vadd.f32 %v1816_v31, %v4522_v51  ;;  %1987 = vadd.xlane.f32.xlu1 %v1986_v22 }
 0x363   :  { %v1818_v32 = vpop.f32.mrf.mxu0 }
 0x364   :  { %v1819_v49 = vadd.f32 %v1818_v32, %v4525_v7  ;;  %v4649_v38 = vmax.f32 %v1817_v56, 0.0 }
 0x365   :  { %v1820_v57 = vpop.f32.mrf.mxu0 }
 0x366   :  { %v4651_v43 = vmax.f32 %v1819_v49, 0.0  ;;  %v1821_v35 = vadd.f32 %v1820_v57, %v4522_v51  ;;  %v1947_v62 = vmul.f32 %v4649_v38, %v4649_v38 }
 0x367   :  { %v1822_v46 = vpop.f32.mrf.mxu0 }
 0x368   :  { %v1948_v11 = vmul.f32 %v4651_v43, %v4651_v43  ;;  %v1823_v53 = vadd.f32 %v1822_v46, %v4525_v7  ;;  %v1909_v21 = vadd.f32 %v4651_v43, %v4649_v38  ;;  %v4661_v0 = vmax.f32 %v1821_v35, 0.0 }
 0x36a   :  { %v4663_v25 = vmax.f32 %v1823_v53, 0.0  ;;  %1910 = vadd.xlane.f32.xlu0 %v1909_v21  ;;  %v1989_v58 = vadd.f32 %v1948_v11, %v1947_v62  ;;  %v1949_v1 = vmul.f32 %v4661_v0, %v4661_v0 }
 0x36c   :  { %v1950_v63 = vmul.f32 %v4663_v25, %v4663_v25  ;;  %v1912_v2 = vadd.f32 %v4663_v25, %v4661_v0 }
 0x36e   :  { %1913 = vadd.xlane.f32.xlu1 %v1912_v2  ;;  %1990 = vadd.xlane.f32.xlu0 %v1989_v58  ;;  %v1992_v29 = vadd.f32 %v1950_v63, %v1949_v1 }
 0x371   :  { %v1826_v42 = vpop.f32.mrf.mxu0 }
 0x372   :  { %v1827_v44 = vadd.f32 %v1826_v42, %v4522_v51  ;;  %1993 = vadd.xlane.f32.xlu1 %v1992_v29 }
 0x373   :  { %v1828_v20 = vpop.f32.mrf.mxu0 }
 0x374   :  { %v1829_v18 = vadd.f32 %v1828_v20, %v4525_v7  ;;  %v4673_v28 = vmax.f32 %v1827_v44, 0.0 }
 0x375   :  { %v1830_v13 = vpop.f32.mrf.mxu0 }
 0x376   :  { %v4675_v36 = vmax.f32 %v1829_v18, 0.0  ;;  %v1831_v26 = vadd.f32 %v1830_v13, %v4522_v51  ;;  %v1951_v15 = vmul.f32 %v4673_v28, %v4673_v28 }
 0x377   :  { %v1832_v16 = vpop.f32.mrf.mxu0 }
 0x378   :  { %v1952_v4 = vmul.f32 %v4675_v36, %v4675_v36  ;;  %v1833_v27 = vadd.f32 %v1832_v16, %v4525_v7  ;;  %v1915_v8 = vadd.f32 %v4675_v36, %v4673_v28  ;;  %v4685_v19 = vmax.f32 %v1831_v26, 0.0 }
 0x37a   :  { %v4687_v23 = vmax.f32 %v1833_v27, 0.0  ;;  %1916 = vadd.xlane.f32.xlu0 %v1915_v8  ;;  %v1995_v48 = vadd.f32 %v1952_v4, %v1951_v15  ;;  %v1953_v60 = vmul.f32 %v4685_v19, %v4685_v19 }
 0x37c   :  { %v1954_v30 = vmul.f32 %v4687_v23, %v4687_v23  ;;  %v1918_v50 = vadd.f32 %v4687_v23, %v4685_v19 }
 0x37e   :  { %1919 = vadd.xlane.f32.xlu1 %v1918_v50  ;;  %1996 = vadd.xlane.f32.xlu0 %v1995_v48  ;;  %v1998_v31 = vadd.f32 %v1954_v30, %v1953_v60 }
 0x381   :  { %v1836_v22 = vpop.f32.mrf.mxu0 }
 0x382   :  { %v1837_v56 = vadd.f32 %v1836_v22, %v4522_v51  ;;  %1999 = vadd.xlane.f32.xlu1 %v1998_v31 }
 0x383   :  { %v1838_v32 = vpop.f32.mrf.mxu0 }
 0x384   :  { %v1839_v49 = vadd.f32 %v1838_v32, %v4525_v7  ;;  %v4697_v35 = vmax.f32 %v1837_v56, 0.0 }
 0x385   :  { %v1840_v57 = vpop.f32.mrf.mxu0 }
 0x386   :  { %v4699_v46 = vmax.f32 %v1839_v49, 0.0  ;;  %v1841_v11 = vadd.f32 %v1840_v57, %v4522_v51  ;;  %v1955_v2 = vmul.f32 %v4697_v35, %v4697_v35 }
 0x387   :  { %v1842_v53 = vpop.f32.mrf.mxu0 }
 0x388   :  { %v1956_v21 = vmul.f32 %v4699_v46, %v4699_v46  ;;  %v1843_v62 = vadd.f32 %v1842_v53, %v4525_v7  ;;  %v1921_v63 = vadd.f32 %v4699_v46, %v4697_v35  ;;  %v4709_v58 = vmax.f32 %v1841_v11, 0.0 }
 0x38a   :  { %v4711_v1 = vmax.f32 %v1843_v62, 0.0  ;;  %1922 = vadd.xlane.f32.xlu0 %v1921_v63  ;;  %v2001_v42 = vadd.f32 %v1956_v21, %v1955_v2  ;;  %v1957_v7 = vmul.f32 %v4709_v58, %v4709_v58  ;;  %v3225_v2 = vld [vmem:[%s5123_s17 + $0x78] sm:$0xff]  }
 0x38b   :  { %3041 = vmatprep.subr.bf16.mxu0 %v3225_v2  ;;  %3105 = vmatprep.subr.bf16.mxu1 %v3225_v2 }
 0x38c   :  { %v1958_v51 = vmul.f32 %v4711_v1, %v4711_v1  ;;  %v1924_v29 = vadd.f32 %v4711_v1, %v4709_v58 }
 0x38e   :  { %1925 = vadd.xlane.f32.xlu1 %v1924_v29  ;;  %2002 = vadd.xlane.f32.xlu0 %v2001_v42  ;;  %v2004_v44 = vadd.f32 %v1958_v51, %v1957_v7  ;;  %v4731_v51 = vld [vmem:[%s5123_s17 + $0x38] sm:$0xff]   ;;  %v4736_v29 = vld [vmem:[%s5123_s17 + $0x70] sm:$0xff]   ;;  %v1877_v7 = vld [vmem:[%s5119_s13] sm:$0x3] }
 0x38f   :  { %3042 = vmatpush3.bf16.msra.mxu0 %v4731_v51 }
 0x390   :  { %3043 = vmatprep.subr.bf16.mxu0 %v4736_v29 }
 0x392   :  { %2005 = vadd.xlane.f32.xlu1 %v2004_v44 }
 0x3a3   :  { %v1881_v20 = vpop.xlane.xlu0 %1880 }
 0x3a4   :  { %v2007_v18 = vmul.f32 0.00390625, %v1881_v20 }
 0x3a6   :  { %v2039_v4 = vmul.f32 %v2007_v18, %v2007_v18  ;;  %v2088_v44 = vsub.f32 %v4531_v33, %v2007_v18  ;;  %v1878_v33 = vld [vmem:[%s5120_s14] sm:$0x3] }
 0x3a7   :  { %v1884_v13 = vpop.xlane.xlu1 %1883  ;;  %v1961_v26 = vpop.xlane.xlu0 %1960  ;;  %v4783_v2 = vrot.slane %v1878_v33, %v4037_v3 }
 0x3a8   :  { %v2008_v16 = vmul.f32 0.00390625, %v1884_v13  ;;  %v2023_v27 = vmul.f32 0.00390625, %v1961_v26 }
 0x3aa   :  { %v2055_v8 = vsub.f32 %v2023_v27, %v2039_v4  ;;  %v2040_v50 = vmul.f32 %v2008_v16, %v2008_v16  ;;  %v2087_v27 = vsub.f32 %v4529_v47, %v2007_v18  ;;  %v4761_v47 = vld [vmem:[%s5123_s17 + $0x68] sm:$0xff]   ;;  %v4764_v18 = vrot.slane %v1877_v7, %v4037_v3 }
 0x3ab   :  { %v1964_v15 = vpop.xlane.xlu1 %1963 }
 0x3ac   :  { %v2071_v30 = vmax.f32 %v2055_v8, 0.0  ;;  %v2024_v48 = vmul.f32 0.00390625, %v1964_v15  ;;  %v4749_v8 = vld [vmem:[%s5123_s17 + $0x30] sm:$0xff]  }
 0x3ad   :  { %3044 = vmatpush3.bf16.msra.mxu0 %v4749_v8 }
 0x3ae   :  { %v2119_v60 = vadd.f32 1e-05, %v2071_v30  ;;  %v2056_v22 = vsub.f32 %v2024_v48, %v2040_v50  ;;  %v4755_v48 = vrot.slane %v1877_v7, %v4042_v6  ;;  %3045 = vmatprep.subr.bf16.mxu0 %v4761_v47 }
 0x3b0   :  { %3305 = vrsqrt.f32 %v2119_v60  ;;  %v2072_v31 = vmax.f32 %v2056_v22, 0.0  ;;  %v2089_v22 = vsub.f32 %v4541_v37, %v2008_v16 }
 0x3b2   :  { %v2120_v56 = vadd.f32 1e-05, %v2072_v31  ;;  %v2090_v31 = vsub.f32 %v4543_v40, %v2008_v16  ;;  %v3231_v40 = vld [vmem:[%s5123_s17 + $0x60] sm:$0xff]  }
 0x3b3   :  { %v1887_v32 = vpop.xlane.xlu0 %1886 }
 0x3b4   :  { %3307 = vrsqrt.f32 %v2120_v56  ;;  %v4719_v49 = vmul.f32 0.00390625, %v1887_v32 }
 0x3b6   :  { %v2041_v21 = vmul.f32 %v4719_v49, %v4719_v49 }
 0x3b7   :  { %v1890_v57 = vpop.xlane.xlu1 %1889  ;;  %v1967_v11 = vpop.xlane.xlu0 %1966 }
 0x3b8   :  { %v4721_v53 = vmul.f32 0.00390625, %v1890_v57  ;;  %v2025_v62 = vmul.f32 0.00390625, %v1967_v11  ;;  %v4769_v57 = vrot.slane %v1878_v33, %v4042_v6  ;;  %v4775_v11 = vld [vmem:[%s5123_s17 + $0x28] sm:$0xff]  }
 0x3b9   :  { %3046 = vmatpush3.bf16.msra.mxu0 %v4775_v11 }
 0x3ba   :  { %v2057_v63 = vsub.f32 %v2025_v62, %v2041_v21  ;;  %v2042_v13 = vmul.f32 %v4721_v53, %v4721_v53  ;;  %3047 = vmatprep.subr.bf16.mxu0 %v3231_v40 }
 0x3bb   :  { %v1970_v42 = vpop.xlane.xlu1 %1969 }
 0x3bc   :  { %v2073_v20 = vmax.f32 %v2057_v63, 0.0  ;;  %v2026_v26 = vmul.f32 0.00390625, %v1970_v42 }
 0x3bd   :  { %v3306_v4 = vpop.eup %3305 }
 0x3be   :  { %v2121_v15 = vadd.f32 1e-05, %v2073_v20  ;;  %v2058_v30 = vsub.f32 %v2026_v26, %v2042_v13  ;;  %v2152_v50 = vmul.f32 %v3306_v4, %v2088_v44  ;;  %v2151_v60 = vmul.f32 %v3306_v4, %v2087_v27  ;;  %v4794_v13 = vld [vmem:[%s5123_s17 + $0x20] sm:$0xff]  }
 0x3bf   :  { %3048 = vmatpush3.bf16.msra.mxu0 %v4794_v13 }
 0x3c0   :  { %3309 = vrsqrt.f32 %v2121_v15  ;;  %v2074_v56 = vmax.f32 %v2058_v30, 0.0  ;;  %v2195_v63 = vmul.f32 %v4755_v48, %v2152_v50  ;;  %v2194_v42 = vmul.f32 %v4764_v18, %v2151_v60  ;;  %v3233_v50 = vld [vmem:[%s5123_s17 + $0x58] sm:$0xff]  }
 0x3c1   :  { %v3308_v32 = vpop.eup %3307  ;;  %3049 = vmatprep.subr.bf16.mxu0 %v3233_v50 }
 0x3c2   :  { %v2122_v21 = vadd.f32 1e-05, %v2074_v56  ;;  %v2154_v62 = vmul.f32 %v3308_v32, %v2090_v31  ;;  %v2153_v37 = vmul.f32 %v3308_v32, %v2089_v22  ;;  %v2238_v26 = vadd.f32 %v4769_v57, %v2195_v63 }
 0x3c3   :  { %v1893_v16 = vpop.xlane.xlu0 %1892  ;;  %v2237_v30 = vadd.f32 %v4783_v2, %v2194_v42 }
 0x3c4   :  { %3311 = vrsqrt.f32 %v2122_v21  ;;  %v4786_v7 = vmul.f32 0.00390625, %v1893_v16  ;;  %v2197_v44 = vmul.f32 %v4755_v48, %v2154_v62  ;;  %v2196_v20 = vmul.f32 %v4764_v18, %v2153_v37  ;;  %v3234_v21 = vld [vmem:[%s5123_s17 + $0x18] sm:$0xff]  }
 0x3c5   :  { %v2092_v37 = vsub.f32 %v4555_v45, %v4719_v49  ;;  %3050 = vmatpush3.bf16.msra.mxu0 %v3234_v21  ;;  %v2093_v45 = vsub.f32 %v4565_v54, %v4721_v53 }
 0x3c6   :  { %v2240_v4 = vadd.f32 %v4769_v57, %v2197_v44  ;;  %v2239_v33 = vadd.f32 %v4783_v2, %v2196_v20  ;;  %v2043_v22 = vmul.f32 %v4786_v7, %v4786_v7 }
 0x3c7   :  { %v1896_v27 = vpop.xlane.xlu1 %1895  ;;  %v1973_v15 = vpop.xlane.xlu0 %1972 }
 0x3c8   :  { %v4803_v60 = vmul.f32 0.00390625, %v1896_v27  ;;  %v2027_v31 = vmul.f32 0.00390625, %v1973_v15  ;;  %v2270_v56 = vpack.c.bf16 %v2240_v4, %v2238_v26  ;;  %v2269_v32 = vpack.c.bf16 %v2239_v33, %v2237_v30 }
 0x3c9   :  { %v2091_v26 = vsub.f32 %v4553_v61, %v4719_v49  ;;  %v2094_v33 = vsub.f32 %v4567_v9, %v4721_v53 }
 0x3ca   :  { %v2059_v62 = vsub.f32 %v2027_v31, %v2043_v22  ;;  %2521 = vmatprep.mubr.bf16.mxu1 %v2270_v56  ;;  %v2044_v42 = vmul.f32 %v4803_v60, %v4803_v60 }
 0x3cb   :  { %v1976_v63 = vpop.xlane.xlu1 %1975  ;;  %2522 = vmatmul.mubr.bf16.vlgmr.msra.gmra.mxu1 %v2269_v32 }
 0x3cc   :  { %v2075_v16 = vmax.f32 %v2059_v62, 0.0  ;;  %v2028_v44 = vmul.f32 0.00390625, %v1976_v63  ;;  %3113 = vmatpush3.bf16.msra.mxu1 %v4731_v51 }
 0x3cd   :  { %v3310_v20 = vpop.eup %3309  ;;  %3106 = vmatprep.subr.bf16.mxu1 %v4736_v29 }
 0x3ce   :  { %v2123_v4 = vadd.f32 1e-05, %v2075_v16  ;;  %v2060_v27 = vsub.f32 %v2028_v44, %v2044_v42  ;;  %v2156_v15 = vmul.f32 %v3310_v20, %v2092_v37  ;;  %v2155_v30 = vmul.f32 %v3310_v20, %v2091_v26 }
 0x3d0   :  { %3313 = vrsqrt.f32 %v2123_v4  ;;  %v2076_v22 = vmax.f32 %v2060_v27, 0.0  ;;  %3114 = vmatpush3.bf16.msra.mxu1 %v4749_v8  ;;  %v2199_v29 = vmul.f32 %v4755_v48, %v2156_v15  ;;  %v2198_v32 = vmul.f32 %v4764_v18, %v2155_v30 }
 0x3d1   :  { %v3312_v51 = vpop.eup %3311  ;;  %3107 = vmatprep.subr.bf16.mxu1 %v4761_v47  ;;  %v2096_v27 = vsub.f32 %v4579_v52, %v4786_v7  ;;  %v2098_v52 = vsub.f32 %v4591_v10, %v4803_v60 }
 0x3d2   :  { %v2124_v61 = vadd.f32 1e-05, %v2076_v22  ;;  %v2158_v49 = vmul.f32 %v3312_v51, %v2094_v33  ;;  %v2157_v31 = vmul.f32 %v3312_v51, %v2093_v45  ;;  %v2242_v8 = vadd.f32 %v4769_v57, %v2199_v29 }
 0x3d3   :  { %v1899_v56 = vpop.xlane.xlu0 %1898  ;;  %v2241_v37 = vadd.f32 %v4783_v2, %v2198_v32  ;;  %v2095_v22 = vsub.f32 %v4577_v17, %v4786_v7 }
 0x3d4   :  { %3315 = vrsqrt.f32 %v2124_v61  ;;  %v4827_v54 = vmul.f32 0.00390625, %v1899_v56  ;;  %v2201_v9 = vmul.f32 %v4755_v48, %v2158_v49  ;;  %v2200_v53 = vmul.f32 %v4764_v18, %v2157_v31  ;;  %3115 = vmatpush3.bf16.msra.mxu1 %v4775_v11 }
 0x3d5   :  { %3108 = vmatprep.subr.bf16.mxu1 %v3231_v40  ;;  %v2097_v49 = vsub.f32 %v4589_v14, %v4803_v60 }
 0x3d6   :  { %v2244_v47 = vadd.f32 %v4769_v57, %v2201_v9  ;;  %v2243_v16 = vadd.f32 %v4783_v2, %v2200_v53  ;;  %v2045_v44 = vmul.f32 %v4827_v54, %v4827_v54 }
 0x3d7   :  { %v1902_v62 = vpop.xlane.xlu1 %1901  ;;  %v1979_v63 = vpop.xlane.xlu0 %1978 }
 0x3d8   :  { %v4836_v42 = vmul.f32 0.00390625, %v1902_v62  ;;  %v2029_v20 = vmul.f32 0.00390625, %v1979_v63  ;;  %v2272_v26 = vpack.c.bf16 %v2244_v47, %v2242_v8  ;;  %3116 = vmatpush3.bf16.msra.mxu1 %v4794_v13  ;;  %v2271_v11 = vpack.c.bf16 %v2243_v16, %v2241_v37 }
 0x3d9   :  { %3109 = vmatprep.subr.bf16.mxu1 %v3233_v50 }
 0x3da   :  { %v2061_v40 = vsub.f32 %v2029_v20, %v2045_v44  ;;  %2531 = vmatprep.mubr.bf16.mxu1 %v2272_v26  ;;  %v2046_v30 = vmul.f32 %v4836_v42, %v4836_v42 }
 0x3db   :  { %v1982_v4 = vpop.xlane.xlu1 %1981  ;;  %2532 = vmatmul.mubr.bf16.gmra.mxu1 %v2271_v11 }
 0x3dc   :  { %v2077_v15 = vmax.f32 %v2061_v40, 0.0  ;;  %v2030_v45 = vmul.f32 0.00390625, %v1982_v4  ;;  %3117 = vmatpush3.bf16.msra.mxu1 %v3234_v21 }
 0x3dd   :  { %v3314_v33 = vpop.eup %3313 }
 0x3de   :  { %v2125_v13 = vadd.f32 1e-05, %v2077_v15  ;;  %v2062_v51 = vsub.f32 %v2030_v45, %v2046_v30  ;;  %v2160_v50 = vmul.f32 %v3314_v33, %v2096_v27  ;;  %v2159_v61 = vmul.f32 %v3314_v33, %v2095_v22 }
 0x3df   :  { %v2100_v27 = vsub.f32 %v4603_v5, %v4827_v54  ;;  %v2099_v22 = vsub.f32 %v4601_v24, %v4827_v54 }
 0x3e0   :  { %3317 = vrsqrt.f32 %v2125_v13  ;;  %v2078_v29 = vmax.f32 %v2062_v51, 0.0  ;;  %v2203_v21 = vmul.f32 %v4755_v48, %v2160_v50  ;;  %v2202_v17 = vmul.f32 %v4764_v18, %v2159_v61 }
 0x3e1   :  { %v3316_v31 = vpop.eup %3315 }
 0x3e2   :  { %v2126_v56 = vadd.f32 1e-05, %v2078_v29  ;;  %v2162_v32 = vmul.f32 %v3316_v31, %v2098_v52  ;;  %v2161_v9 = vmul.f32 %v3316_v31, %v2097_v49  ;;  %v2246_v10 = vadd.f32 %v4769_v57, %v2203_v21 }
 0x3e3   :  { %v1905_v53 = vpop.xlane.xlu0 %1904  ;;  %v2245_v63 = vadd.f32 %v4783_v2, %v2202_v17  ;;  %v2101_v49 = vsub.f32 %v4613_v34, %v4836_v42  ;;  %v2102_v52 = vsub.f32 %v4615_v41, %v4836_v42 }
 0x3e4   :  { %3319 = vrsqrt.f32 %v2126_v56  ;;  %v4853_v7 = vmul.f32 0.00390625, %v1905_v53  ;;  %v2205_v8 = vmul.f32 %v4755_v48, %v2162_v32  ;;  %v2204_v14 = vmul.f32 %v4764_v18, %v2161_v9 }
 0x3e6   :  { %v2248_v60 = vadd.f32 %v4769_v57, %v2205_v8  ;;  %v2247_v37 = vadd.f32 %v4783_v2, %v2204_v14  ;;  %v2047_v44 = vmul.f32 %v4853_v7, %v4853_v7 }
 0x3e7   :  { %v1908_v47 = vpop.xlane.xlu1 %1907  ;;  %v1985_v62 = vpop.xlane.xlu0 %1984 }
 0x3e8   :  { %v4861_v16 = vmul.f32 0.00390625, %v1908_v47  ;;  %v2031_v20 = vmul.f32 0.00390625, %v1985_v62  ;;  %v2274_v26 = vpack.c.bf16 %v2248_v60, %v2246_v10  ;;  %v2273_v11 = vpack.c.bf16 %v2247_v37, %v2245_v63 }
 0x3ea   :  { %v2063_v40 = vsub.f32 %v2031_v20, %v2047_v44  ;;  %2541 = vmatprep.mubr.bf16.mxu1 %v2274_v26  ;;  %v2048_v30 = vmul.f32 %v4861_v16, %v4861_v16  ;;  %v2104_v26 = vsub.f32 %v4627_v39, %v4853_v7 }
 0x3eb   :  { %v1988_v4 = vpop.xlane.xlu1 %1987  ;;  %2542 = vmatmul.mubr.bf16.gmra.mxu1 %v2273_v11 }
 0x3ec   :  { %v2079_v15 = vmax.f32 %v2063_v40, 0.0  ;;  %v2032_v45 = vmul.f32 0.00390625, %v1988_v4 }
 0x3ed   :  { %v3318_v33 = vpop.eup %3317 }
 0x3ee   :  { %v2127_v13 = vadd.f32 1e-05, %v2079_v15  ;;  %v2064_v51 = vsub.f32 %v2032_v45, %v2048_v30  ;;  %v2164_v50 = vmul.f32 %v3318_v33, %v2100_v27  ;;  %v2163_v61 = vmul.f32 %v3318_v33, %v2099_v22 }
 0x3ef   :  { %v2103_v15 = vsub.f32 %v4625_v59, %v4853_v7 }
 0x3f0   :  { %3321 = vrsqrt.f32 %v2127_v13  ;;  %v2080_v5 = vmax.f32 %v2064_v51, 0.0  ;;  %v2207_v32 = vmul.f32 %v4755_v48, %v2164_v50  ;;  %v2206_v24 = vmul.f32 %v4764_v18, %v2163_v61 }
 0x3f1   :  { %v3320_v29 = vpop.eup %3319  ;;  %v2105_v13 = vsub.f32 %v4637_v55, %v4861_v16  ;;  %v2106_v51 = vsub.f32 %v4639_v12, %v4861_v16 }
 0x3f2   :  { %v2128_v31 = vadd.f32 1e-05, %v2080_v5  ;;  %v2166_v56 = vmul.f32 %v3320_v29, %v2102_v52  ;;  %v2165_v21 = vmul.f32 %v3320_v29, %v2101_v49  ;;  %v2250_v41 = vadd.f32 %v4769_v57, %v2207_v32 }
 0x3f3   :  { %v1911_v9 = vpop.xlane.xlu0 %1910  ;;  %v2249_v14 = vadd.f32 %v4783_v2, %v2206_v24 }
 0x3f4   :  { %3323 = vrsqrt.f32 %v2128_v31  ;;  %v4877_v54 = vmul.f32 0.00390625, %v1911_v9  ;;  %v2209_v53 = vmul.f32 %v4755_v48, %v2166_v56  ;;  %v2208_v34 = vmul.f32 %v4764_v18, %v2165_v21 }
 0x3f6   :  { %v2252_v42 = vadd.f32 %v4769_v57, %v2209_v53  ;;  %v2251_v10 = vadd.f32 %v4783_v2, %v2208_v34  ;;  %v2049_v47 = vmul.f32 %v4877_v54, %v4877_v54 }
 0x3f7   :  { %v1914_v17 = vpop.xlane.xlu1 %1913  ;;  %v1991_v8 = vpop.xlane.xlu0 %1990 }
 0x3f8   :  { %v4885_v60 = vmul.f32 0.00390625, %v1914_v17  ;;  %v2033_v62 = vmul.f32 0.00390625, %v1991_v8  ;;  %v2276_v63 = vpack.c.bf16 %v2252_v42, %v2250_v41  ;;  %v2275_v37 = vpack.c.bf16 %v2251_v10, %v2249_v14 }
 0x3f9   :  { %v2107_v8 = vsub.f32 %v4649_v38, %v4877_v54  ;;  %v2108_v10 = vsub.f32 %v4651_v43, %v4877_v54 }
 0x3fa   :  { %v2065_v44 = vsub.f32 %v2033_v62, %v2049_v47  ;;  %2551 = vmatprep.mubr.bf16.mxu1 %v2276_v63  ;;  %v2050_v40 = vmul.f32 %v4885_v60, %v4885_v60  ;;  %v2109_v43 = vsub.f32 %v4661_v0, %v4885_v60  ;;  %v2110_v54 = vsub.f32 %v4663_v25, %v4885_v60 }
 0x3fb   :  { %v1994_v20 = vpop.xlane.xlu1 %1993  ;;  %2552 = vmatmul.mubr.bf16.gmra.mxu1 %v2275_v37  ;;  %v3235_v37 = vld [vmem:[%s5123_s17 + $0x50] sm:$0xff]  }
 0x3fc   :  { %v2081_v11 = vmax.f32 %v2065_v44, 0.0  ;;  %v2034_v4 = vmul.f32 0.00390625, %v1994_v20  ;;  %v3236_v20 = vld [vmem:[%s5123_s17 + $0x10] sm:$0xff]   ;;  %3051 = vmatprep.subr.bf16.mxu0 %v3235_v37  ;;  %3110 = vmatprep.subr.bf16.mxu1 %v3235_v37 }
 0x3fd   :  { %v3322_v27 = vpop.eup %3321  ;;  %3052 = vmatpush3.bf16.msra.mxu0 %v3236_v20  ;;  %3118 = vmatpush3.bf16.msra.mxu1 %v3236_v20 }
 0x3fe   :  { %v2129_v30 = vadd.f32 1e-05, %v2081_v11  ;;  %v2066_v45 = vsub.f32 %v2034_v4, %v2050_v40  ;;  %v2168_v33 = vmul.f32 %v3322_v27, %v2104_v26  ;;  %v2167_v22 = vmul.f32 %v3322_v27, %v2103_v15  ;;  %v3237_v27 = vld [vmem:[%s5123_s17 + $0x48] sm:$0xff]  }
 0x3ff   :  { %3053 = vmatprep.subr.bf16.mxu0 %v3237_v27  ;;  %3111 = vmatprep.subr.bf16.mxu1 %v3237_v27 }
 0x400   :  { %3325 = vrsqrt.f32 %v2129_v30  ;;  %v2082_v39 = vmax.f32 %v2066_v45, 0.0  ;;  %v2211_v52 = vmul.f32 %v4755_v48, %v2168_v33  ;;  %v2210_v59 = vmul.f32 %v4764_v18, %v2167_v22  ;;  %v3238_v45 = vld [vmem:[%s5123_s17 + $0x8] sm:$0xff]  }
 0x401   :  { %v3324_v50 = vpop.eup %3323  ;;  %3054 = vmatpush3.bf16.msra.mxu0 %v3238_v45  ;;  %3119 = vmatpush3.bf16.msra.mxu1 %v3238_v45 }
 0x402   :  { %v2130_v61 = vadd.f32 1e-05, %v2082_v39  ;;  %v2170_v49 = vmul.f32 %v3324_v50, %v2106_v51  ;;  %v2169_v5 = vmul.f32 %v3324_v50, %v2105_v13  ;;  %v2254_v12 = vadd.f32 %v4769_v57, %v2211_v52  ;;  %v3239_v50 = vld [vmem:[%s5123_s17 + $0x40] sm:$0xff]  }
 0x403   :  { %v1917_v29 = vpop.xlane.xlu0 %1916  ;;  %v2253_v21 = vadd.f32 %v4783_v2, %v2210_v59  ;;  %3055 = vmatprep.subr.bf16.mxu0 %v3239_v50  ;;  %3112 = vmatprep.subr.bf16.mxu1 %v3239_v50 }
 0x404   :  { %3327 = vrsqrt.f32 %v2130_v61  ;;  %v4901_v7 = vmul.f32 0.00390625, %v1917_v29  ;;  %v2213_v31 = vmul.f32 %v4755_v48, %v2170_v49  ;;  %v2212_v55 = vmul.f32 %v4764_v18, %v2169_v5  ;;  %v3240_v49 = vld [vmem:[%s5123_s17] sm:$0xff]  }
 0x405   :  { %3056 = vmatpush3.bf16.msra.mxu0 %v3240_v49  ;;  %3120 = vmatpush3.bf16.msra.mxu1 %v3240_v49 }
 0x406   :  { %v2256_v16 = vadd.f32 %v4769_v57, %v2213_v31  ;;  %v2255_v9 = vadd.f32 %v4783_v2, %v2212_v55  ;;  %v2051_v53 = vmul.f32 %v4901_v7, %v4901_v7 }
 0x407   :  { %v1920_v56 = vpop.xlane.xlu1 %1919  ;;  %v1997_v32 = vpop.xlane.xlu0 %1996 }
 0x408   :  { %v4909_v24 = vmul.f32 0.00390625, %v1920_v56  ;;  %v2035_v34 = vmul.f32 0.00390625, %v1997_v32  ;;  %v2278_v41 = vpack.c.bf16 %v2256_v16, %v2254_v12  ;;  %v2277_v42 = vpack.c.bf16 %v2255_v9, %v2253_v21 }
 0x40a   :  { %v2067_v17 = vsub.f32 %v2035_v34, %v2051_v53  ;;  %2561 = vmatprep.mubr.bf16.mxu1 %v2278_v41  ;;  %v2052_v62 = vmul.f32 %v4909_v24, %v4909_v24  ;;  %v2113_v37 = vsub.f32 %v4685_v19, %v4909_v24 }
 0x40b   :  { %v2000_v14 = vpop.xlane.xlu1 %1999  ;;  %2562 = vmatmul.mubr.bf16.gmra.mxu1 %v2277_v42  ;;  %v2111_v42 = vsub.f32 %v4673_v28, %v4901_v7 }
 0x40c   :  { %v2083_v47 = vmax.f32 %v2067_v17, 0.0  ;;  %v2036_v63 = vmul.f32 0.00390625, %v2000_v14  ;;  %v2112_v17 = vsub.f32 %v4675_v36, %v4901_v7 }
 0x40d   :  { %v3326_v44 = vpop.eup %3325 }
 0x40e   :  { %v2131_v38 = vadd.f32 1e-05, %v2083_v47  ;;  %v2068_v26 = vsub.f32 %v2036_v63, %v2052_v62  ;;  %v2172_v11 = vmul.f32 %v3326_v44, %v2108_v10  ;;  %v2171_v40 = vmul.f32 %v3326_v44, %v2107_v8 }
 0x40f   :  { %v2114_v44 = vsub.f32 %v4687_v23, %v4909_v24 }
 0x410   :  { %3329 = vrsqrt.f32 %v2131_v38  ;;  %v2084_v4 = vmax.f32 %v2068_v26, 0.0  ;;  %v2215_v30 = vmul.f32 %v4755_v48, %v2172_v11  ;;  %v2214_v51 = vmul.f32 %v4764_v18, %v2171_v40 }
 0x411   :  { %v3328_v15 = vpop.eup %3327 }
 0x412   :  { %v2132_v33 = vadd.f32 1e-05, %v2084_v4  ;;  %v2174_v13 = vmul.f32 %v3328_v15, %v2110_v54  ;;  %v2173_v0 = vmul.f32 %v3328_v15, %v2109_v43  ;;  %v2258_v61 = vadd.f32 %v4769_v57, %v2215_v30 }
 0x413   :  { %v1923_v22 = vpop.xlane.xlu0 %1922  ;;  %v2257_v59 = vadd.f32 %v4783_v2, %v2214_v51 }
 0x414   :  { %v4937_v25 = vmul.f32 0.00390625, %v1923_v22  ;;  %3331 = vrsqrt.f32 %v2132_v33  ;;  %v2217_v60 = vmul.f32 %v4755_v48, %v2174_v13  ;;  %v2216_v39 = vmul.f32 %v4764_v18, %v2173_v0 }
 0x416   :  { %v2260_v29 = vadd.f32 %v4769_v57, %v2217_v60  ;;  %v2259_v31 = vadd.f32 %v4783_v2, %v2216_v39  ;;  %v2053_v12 = vmul.f32 %v4937_v25, %v4937_v25  ;;  %v2115_v27 = vsub.f32 %v4697_v35, %v4937_v25 }
 0x417   :  { %v1926_v52 = vpop.xlane.xlu1 %1925  ;;  %v2003_v5 = vpop.xlane.xlu0 %2002  ;;  %v2116_v15 = vsub.f32 %v4699_v46, %v4937_v25 }
 0x418   :  { %v2022_v55 = vmul.f32 0.00390625, %v1926_v52  ;;  %v2037_v16 = vmul.f32 0.00390625, %v2003_v5  ;;  %v2280_v56 = vpack.c.bf16 %v2260_v29, %v2258_v61  ;;  %v2279_v32 = vpack.c.bf16 %v2259_v31, %v2257_v59  ;;  %v2317_v5 = vld [vmem:[%s5122_s16] sm:$0x3] }
 0x41a   :  { %v2069_v21 = vsub.f32 %v2037_v16, %v2053_v12  ;;  %2571 = vmatprep.mubr.bf16.mxu1 %v2280_v56  ;;  %v2054_v34 = vmul.f32 %v2022_v55, %v2022_v55  ;;  %v2117_v22 = vsub.f32 %v4709_v58, %v2022_v55  ;;  %v2118_v13 = vsub.f32 %v4711_v1, %v2022_v55 }
 0x41b   :  { %v2006_v9 = vpop.xlane.xlu1 %2005  ;;  %2572 = vmatmul.mubr.bf16.gmra.mxu1 %v2279_v32 }
 0x41c   :  { %v2085_v53 = vmax.f32 %v2069_v21, 0.0  ;;  %v2038_v41 = vmul.f32 0.00390625, %v2006_v9 }
 0x41d   :  { %v3330_v8 = vpop.eup %3329 }
 0x41e   :  { %v2133_v14 = vadd.f32 1e-05, %v2085_v53  ;;  %v2070_v10 = vsub.f32 %v2038_v41, %v2054_v34  ;;  %v2176_v47 = vmul.f32 %v3330_v8, %v2112_v17  ;;  %v2175_v62 = vmul.f32 %v3330_v8, %v2111_v42 }
 0x420   :  { %3333 = vrsqrt.f32 %v2133_v14  ;;  %v2086_v63 = vmax.f32 %v2070_v10, 0.0  ;;  %v2219_v28 = vmul.f32 %v4755_v48, %v2176_v47  ;;  %v2218_v36 = vmul.f32 %v4764_v18, %v2175_v62 }
 0x421   :  { %v3332_v20 = vpop.eup %3331 }
 0x422   :  { %v2134_v38 = vadd.f32 1e-05, %v2086_v63  ;;  %v2178_v26 = vmul.f32 %v3332_v20, %v2114_v44  ;;  %v2177_v11 = vmul.f32 %v3332_v20, %v2113_v37  ;;  %v2262_v43 = vadd.f32 %v4769_v57, %v2219_v28 }
 0x423   :  { %v2261_v54 = vadd.f32 %v4783_v2, %v2218_v36 }
 0x424   :  { %3335 = vrsqrt.f32 %v2134_v38  ;;  %v2221_v7 = vmul.f32 %v4755_v48, %v2178_v26  ;;  %v2220_v40 = vmul.f32 %v4764_v18, %v2177_v11 }
 0x426   :  { %v2264_v19 = vadd.f32 %v4769_v57, %v2221_v7  ;;  %v2263_v23 = vadd.f32 %v4783_v2, %v2220_v40 }
 0x428   :  { %v2282_v24 = vpack.c.bf16 %v2264_v19, %v2262_v43  ;;  %v2281_v4 = vpack.c.bf16 %v2263_v23, %v2261_v54 }
 0x42a   :  { %2581 = vmatprep.mubr.bf16.mxu1 %v2282_v24 }
 0x42b   :  { %2582 = vmatmul.mubr.bf16.gmra.mxu1 %v2281_v4 }
 0x42d   :  { %v3334_v30 = vpop.eup %3333 }
 0x42e   :  { %v2180_v45 = vmul.f32 %v3334_v30, %v2116_v15  ;;  %v2179_v33 = vmul.f32 %v3334_v30, %v2115_v27 }
 0x430   :  { %v2223_v60 = vmul.f32 %v4755_v48, %v2180_v45  ;;  %v2222_v50 = vmul.f32 %v4764_v18, %v2179_v33 }
 0x431   :  { %v3336_v0 = vpop.eup %3335 }
 0x432   :  { %v2182_v51 = vmul.f32 %v3336_v0, %v2118_v13  ;;  %v2181_v39 = vmul.f32 %v3336_v0, %v2117_v22  ;;  %v2266_v46 = vadd.f32 %v4769_v57, %v2223_v60  ;;  %v2265_v49 = vadd.f32 %v4783_v2, %v2222_v50 }
 0x434   :  { %v2225_v35 = vmul.f32 %v4755_v48, %v2182_v51  ;;  %v2224_v61 = vmul.f32 %v4764_v18, %v2181_v39  ;;  %v4987_v48 = vrot.slane %v2317_v5, %v4042_v6  ;;  %v4990_v18 = vrot.slane %v2317_v5, %v4037_v3 }
 0x436   :  { %v2268_v25 = vadd.f32 %v4769_v57, %v2225_v35  ;;  %v2267_v58 = vadd.f32 %v4783_v2, %v2224_v61 }
 0x438   :  { %v2284_v1 = vpack.c.bf16 %v2268_v25, %v2266_v46  ;;  %v2283_v52 = vpack.c.bf16 %v2267_v58, %v2265_v49 }
 0x43a   :  { %2591 = vmatprep.mubr.bf16.mxu1 %v2284_v1 }
 0x43b   :  { %2592 = vmatmul.mubr.bf16.gmra.mxu1 %v2283_v52 }
 0x48b   :  { %v2523_v29 = vpop.f32.mrf.mxu1 }
 0x48c   :  { %v2524_v55 = vadd.f32 %v2523_v29, %v4990_v18 }
 0x48d   :  { %v2525_v57 = vpop.f32.mrf.mxu1 }
 0x48e   :  { %v2526_v31 = vadd.f32 %v2525_v57, %v4987_v48  ;;  %v2602_v9 = vmax.f32 %v2524_v55, 0.0 }
 0x48f   :  { %v2527_v59 = vpop.f32.mrf.mxu1 }
 0x490   :  { %v2528_v2 = vadd.f32 %v2527_v59, %v4990_v18  ;;  %v2603_v32 = vmax.f32 %v2526_v31, 0.0 }
 0x491   :  { %v2529_v12 = vpop.f32.mrf.mxu1 }
 0x492   :  { %v2530_v16 = vadd.f32 %v2529_v12, %v4987_v48  ;;  %v2604_v56 = vmax.f32 %v2528_v2, 0.0 }
 0x494   :  { %v2605_v21 = vmax.f32 %v2530_v16, 0.0  ;;  %v2634_v53 = vpack.c.bf16 %v2604_v56, %v2602_v9 }
 0x496   :  { %v2635_v6 = vpack.c.bf16 %v2605_v21, %v2603_v32 }
 0x498   :  { %2817 = vmatprep.mubr.bf16.mxu0 %v2635_v6 }
 0x499   :  { %2818 = vmatmul.mubr.bf16.vlgmr.msra.gmra.mxu0 %v2634_v53 }
 0x49b   :  { %v2533_v3 = vpop.f32.mrf.mxu1 }
 0x49c   :  { %v2534_v8 = vadd.f32 %v2533_v3, %v4990_v18 }
 0x49d   :  { %v2535_v34 = vpop.f32.mrf.mxu1 }
 0x49e   :  { %v2536_v42 = vadd.f32 %v2535_v34, %v4987_v48  ;;  %v2606_v37 = vmax.f32 %v2534_v8, 0.0 }
 0x49f   :  { %v2537_v41 = vpop.f32.mrf.mxu1 }
 0x4a0   :  { %v2538_v17 = vadd.f32 %v2537_v41, %v4990_v18  ;;  %v2607_v62 = vmax.f32 %v2536_v42, 0.0 }
 0x4a1   :  { %v2539_v14 = vpop.f32.mrf.mxu1 }
 0x4a2   :  { %v2540_v10 = vadd.f32 %v2539_v14, %v4987_v48  ;;  %v2608_v47 = vmax.f32 %v2538_v17, 0.0 }
 0x4a4   :  { %v2609_v63 = vmax.f32 %v2540_v10, 0.0  ;;  %v2636_v20 = vpack.c.bf16 %v2608_v47, %v2606_v37 }
 0x4a6   :  { %v2637_v44 = vpack.c.bf16 %v2609_v63, %v2607_v62 }
 0x4a8   :  { %2825 = vmatprep.mubr.bf16.mxu0 %v2637_v44 }
 0x4a9   :  { %2826 = vmatmul.mubr.bf16.gmra.mxu0 %v2636_v20 }
 0x4ab   :  { %v2543_v38 = vpop.f32.mrf.mxu1 }
 0x4ac   :  { %v2544_v7 = vadd.f32 %v2543_v38, %v4990_v18 }
 0x4ad   :  { %v2545_v26 = vpop.f32.mrf.mxu1 }
 0x4ae   :  { %v2546_v11 = vadd.f32 %v2545_v26, %v4987_v48  ;;  %v2610_v24 = vmax.f32 %v2544_v7, 0.0 }
 0x4af   :  { %v2547_v28 = vpop.f32.mrf.mxu1 }
 0x4b0   :  { %v2548_v36 = vadd.f32 %v2547_v28, %v4990_v18  ;;  %v2611_v54 = vmax.f32 %v2546_v11, 0.0 }
 0x4b1   :  { %v2549_v40 = vpop.f32.mrf.mxu1 }
 0x4b2   :  { %v2550_v43 = vadd.f32 %v2549_v40, %v4987_v48  ;;  %v2612_v19 = vmax.f32 %v2548_v36, 0.0 }
 0x4b4   :  { %v2613_v23 = vmax.f32 %v2550_v43, 0.0  ;;  %v2638_v27 = vpack.c.bf16 %v2612_v19, %v2610_v24 }
 0x4b6   :  { %v2639_v4 = vpack.c.bf16 %v2613_v23, %v2611_v54 }
 0x4b8   :  { %2833 = vmatprep.mubr.bf16.mxu0 %v2639_v4 }
 0x4b9   :  { %2834 = vmatmul.mubr.bf16.gmra.mxu0 %v2638_v27 }
 0x4bb   :  { %v2553_v15 = vpop.f32.mrf.mxu1 }
 0x4bc   :  { %v2554_v13 = vadd.f32 %v2553_v15, %v4990_v18 }
 0x4bd   :  { %v2555_v30 = vpop.f32.mrf.mxu1 }
 0x4be   :  { %v2556_v33 = vadd.f32 %v2555_v30, %v4987_v48  ;;  %v2614_v35 = vmax.f32 %v2554_v13, 0.0 }
 0x4bf   :  { %v2557_v45 = vpop.f32.mrf.mxu1 }
 0x4c0   :  { %v2558_v22 = vadd.f32 %v2557_v45, %v4990_v18  ;;  %v2615_v39 = vmax.f32 %v2556_v33, 0.0 }
 0x4c1   :  { %v2559_v0 = vpop.f32.mrf.mxu1 }
 0x4c2   :  { %v2560_v51 = vadd.f32 %v2559_v0, %v4987_v48  ;;  %v2616_v60 = vmax.f32 %v2558_v22, 0.0 }
 0x4c4   :  { %v2617_v50 = vmax.f32 %v2560_v51, 0.0  ;;  %v2640_v46 = vpack.c.bf16 %v2616_v60, %v2614_v35 }
 0x4c6   :  { %v2641_v61 = vpack.c.bf16 %v2617_v50, %v2615_v39  ;;  %v5024_v39 = vld [vmem:[#allocation2] ss:$0 sm:$0xff] }
 0x4c8   :  { %2841 = vmatprep.mubr.bf16.mxu0 %v2641_v61 }
 0x4c9   :  { %2842 = vmatmul.mubr.bf16.gmra.mxu0 %v2640_v46 }
 0x4cb   :  { %v2563_v25 = vpop.f32.mrf.mxu1 }
 0x4cc   :  { %v2564_v5 = vadd.f32 %v2563_v25, %v4990_v18 }
 0x4cd   :  { %v2565_v49 = vpop.f32.mrf.mxu1 }
 0x4ce   :  { %v2566_v1 = vadd.f32 %v2565_v49, %v4987_v48  ;;  %v2618_v55 = vmax.f32 %v2564_v5, 0.0 }
 0x4cf   :  { %v2567_v58 = vpop.f32.mrf.mxu1 }
 0x4d0   :  { %v2568_v52 = vadd.f32 %v2567_v58, %v4990_v18  ;;  %v2619_v31 = vmax.f32 %v2566_v1, 0.0 }
 0x4d1   :  { %v2569_v29 = vpop.f32.mrf.mxu1 }
 0x4d2   :  { %v2570_v57 = vadd.f32 %v2569_v29, %v4987_v48  ;;  %v2620_v59 = vmax.f32 %v2568_v52, 0.0 }
 0x4d4   :  { %v2621_v2 = vmax.f32 %v2570_v57, 0.0  ;;  %v2642_v16 = vpack.c.bf16 %v2620_v59, %v2618_v55 }
 0x4d6   :  { %v2643_v12 = vpack.c.bf16 %v2621_v2, %v2619_v31 }
 0x4d8   :  { %2849 = vmatprep.mubr.bf16.mxu1 %v2643_v12 }
 0x4d9   :  { %2850 = vmatmul.mubr.bf16.vlgmr.msra.gmra.mxu1 %v2642_v16 }
 0x4db   :  { %v2573_v56 = vpop.f32.mrf.mxu1 }
 0x4dc   :  { %v2574_v53 = vadd.f32 %v2573_v56, %v4990_v18 }
 0x4dd   :  { %v2575_v32 = vpop.f32.mrf.mxu1 }
 0x4de   :  { %v2576_v9 = vadd.f32 %v2575_v32, %v4987_v48  ;;  %v2622_v8 = vmax.f32 %v2574_v53, 0.0 }
 0x4df   :  { %v2577_v21 = vpop.f32.mrf.mxu1 }
 0x4e0   :  { %v2578_v6 = vadd.f32 %v2577_v21, %v4990_v18  ;;  %v2623_v42 = vmax.f32 %v2576_v9, 0.0 }
 0x4e1   :  { %v2579_v3 = vpop.f32.mrf.mxu1 }
 0x4e2   :  { %v2580_v34 = vadd.f32 %v2579_v3, %v4987_v48  ;;  %v2624_v41 = vmax.f32 %v2578_v6, 0.0 }
 0x4e4   :  { %v2625_v17 = vmax.f32 %v2580_v34, 0.0  ;;  %v2644_v10 = vpack.c.bf16 %v2624_v41, %v2622_v8 }
 0x4e6   :  { %v2645_v14 = vpack.c.bf16 %v2625_v17, %v2623_v42 }
 0x4e8   :  { %2857 = vmatprep.mubr.bf16.mxu1 %v2645_v14 }
 0x4e9   :  { %2858 = vmatmul.mubr.bf16.gmra.mxu1 %v2644_v10 }
 0x4eb   :  { %v2583_v47 = vpop.f32.mrf.mxu1 }
 0x4ec   :  { %v2584_v20 = vadd.f32 %v2583_v47, %v4990_v18 }
 0x4ed   :  { %v2585_v62 = vpop.f32.mrf.mxu1 }
 0x4ee   :  { %v2586_v37 = vadd.f32 %v2585_v62, %v4987_v48  ;;  %v2626_v7 = vmax.f32 %v2584_v20, 0.0 }
 0x4ef   :  { %v2587_v63 = vpop.f32.mrf.mxu1 }
 0x4f0   :  { %v2588_v44 = vadd.f32 %v2587_v63, %v4990_v18  ;;  %v2627_v11 = vmax.f32 %v2586_v37, 0.0 }
 0x4f1   :  { %v2589_v38 = vpop.f32.mrf.mxu1 }
 0x4f2   :  { %v2590_v26 = vadd.f32 %v2589_v38, %v4987_v48  ;;  %v2628_v28 = vmax.f32 %v2588_v44, 0.0 }
 0x4f4   :  { %v2629_v36 = vmax.f32 %v2590_v26, 0.0  ;;  %v2646_v43 = vpack.c.bf16 %v2628_v28, %v2626_v7 }
 0x4f6   :  { %v2647_v40 = vpack.c.bf16 %v2629_v36, %v2627_v11 }
 0x4f8   :  { %2865 = vmatprep.mubr.bf16.mxu1 %v2647_v40 }
 0x4f9   :  { %2866 = vmatmul.mubr.bf16.gmra.mxu1 %v2646_v43 }
 0x4fb   :  { %v2593_v19 = vpop.f32.mrf.mxu1 }
 0x4fc   :  { %v2594_v27 = vadd.f32 %v2593_v19, %v4990_v18 }
 0x4fd   :  { %v2595_v54 = vpop.f32.mrf.mxu1 }
 0x4fe   :  { %v2596_v24 = vadd.f32 %v2595_v54, %v4987_v48  ;;  %v2630_v13 = vmax.f32 %v2594_v27, 0.0 }
 0x4ff   :  { %v2597_v23 = vpop.f32.mrf.mxu1 }
 0x500   :  { %v2598_v4 = vadd.f32 %v2597_v23, %v4990_v18  ;;  %v2631_v33 = vmax.f32 %v2596_v24, 0.0 }
 0x501   :  { %v2599_v15 = vpop.f32.mrf.mxu1 }
 0x502   :  { %v2600_v30 = vadd.f32 %v2599_v15, %v4987_v48  ;;  %v2632_v45 = vmax.f32 %v2598_v4, 0.0 }
 0x504   :  { %v2633_v22 = vmax.f32 %v2600_v30, 0.0  ;;  %v2648_v51 = vpack.c.bf16 %v2632_v45, %v2630_v13 }
 0x506   :  { %v2649_v0 = vpack.c.bf16 %v2633_v22, %v2631_v33 }
 0x508   :  { %2873 = vmatprep.mubr.bf16.mxu1 %v2649_v0 }
 0x509   :  { %2874 = vmatmul.mubr.bf16.gmra.mxu1 %v2648_v51 }
 0x559   :  { %v3057_v60 = vpop.f32.mrf.mxu0 }
 0x55b   :  { %v3058_v50 = vpop.f32.mrf.mxu0 }
 0x55c   :  { %v3059_v35 = vadd.f32 %v3058_v50, %v3057_v60 }
 0x55d   :  { %v3060_v61 = vpop.f32.mrf.mxu0 }
 0x55e   :  { %v2820_v18 = vadd.f32 %v3059_v35, %v5024_v39 }
 0x55f   :  { %v3061_v46 = vpop.f32.mrf.mxu0 }
 0x560   :  { %2883 = vst.msk [vmem:[%s5125_s19] sm:$0xff] %vm2882_vm5, %v2820_v18  ;;  %v3062_v48 = vadd.f32 %v3061_v46, %v3060_v61 }
 0x562   :  { %v2823_v25 = vadd.f32 %v3062_v48, %v5024_v39 }
 0x564   :  { %2884 = vst.msk [vmem:[%s5125_s19 + $0x8] sm:$0xff] %vm2882_vm5, %v2823_v25 }
 0x569   :  { %v3063_v49 = vpop.f32.mrf.mxu0 }
 0x56b   :  { %v3064_v58 = vpop.f32.mrf.mxu0 }
 0x56c   :  { %v3065_v1 = vadd.f32 %v3064_v58, %v3063_v49 }
 0x56d   :  { %v3066_v52 = vpop.f32.mrf.mxu0 }
 0x56e   :  { %v2828_v5 = vadd.f32 %v3065_v1, %v5024_v39 }
 0x56f   :  { %v3067_v29 = vpop.f32.mrf.mxu0 }
 0x570   :  { %2885 = vst.msk [vmem:[%s5125_s19 + $0x10] sm:$0xff] %vm2882_vm5, %v2828_v5  ;;  %v3068_v57 = vadd.f32 %v3067_v29, %v3066_v52 }
 0x572   :  { %v2831_v59 = vadd.f32 %v3068_v57, %v5024_v39 }
 0x574   :  { %2886 = vst.msk [vmem:[%s5125_s19 + $0x18] sm:$0xff] %vm2882_vm5, %v2831_v59 }
 0x579   :  { %v3069_v31 = vpop.f32.mrf.mxu0 }
 0x57b   :  { %v3070_v2 = vpop.f32.mrf.mxu0 }
 0x57c   :  { %v3071_v55 = vadd.f32 %v3070_v2, %v3069_v31 }
 0x57d   :  { %v3072_v12 = vpop.f32.mrf.mxu0 }
 0x57e   :  { %v2836_v16 = vadd.f32 %v3071_v55, %v5024_v39 }
 0x57f   :  { %v3073_v56 = vpop.f32.mrf.mxu0 }
 0x580   :  { %2887 = vst.msk [vmem:[%s5125_s19 + $0x20] sm:$0xff] %vm2882_vm5, %v2836_v16  ;;  %v3074_v32 = vadd.f32 %v3073_v56, %v3072_v12 }
 0x582   :  { %v2839_v21 = vadd.f32 %v3074_v32, %v5024_v39 }
 0x584   :  { %2888 = vst.msk [vmem:[%s5125_s19 + $0x28] sm:$0xff] %vm2882_vm5, %v2839_v21 }
 0x589   :  { %v3075_v9 = vpop.f32.mrf.mxu0 }
 0x58b   :  { %v3076_v6 = vpop.f32.mrf.mxu0 }
 0x58c   :  { %v3077_v53 = vadd.f32 %v3076_v6, %v3075_v9 }
 0x58d   :  { %v3078_v3 = vpop.f32.mrf.mxu0 }
 0x58e   :  { %v2844_v34 = vadd.f32 %v3077_v53, %v5024_v39 }
 0x58f   :  { %v3079_v41 = vpop.f32.mrf.mxu0 }
 0x590   :  { %2889 = vst.msk [vmem:[%s5125_s19 + $0x30] sm:$0xff] %vm2882_vm5, %v2844_v34  ;;  %v3080_v42 = vadd.f32 %v3079_v41, %v3078_v3 }
 0x592   :  { %v2847_v17 = vadd.f32 %v3080_v42, %v5024_v39 }
 0x594   :  { %2890 = vst.msk [vmem:[%s5125_s19 + $0x38] sm:$0xff] %vm2882_vm5, %v2847_v17 }
 0x599   :  { %v3081_v8 = vpop.f32.mrf.mxu1 }
 0x59b   :  { %v3082_v14 = vpop.f32.mrf.mxu1 }
 0x59c   :  { %v3083_v10 = vadd.f32 %v3082_v14, %v3081_v8 }
 0x59d   :  { %v3084_v47 = vpop.f32.mrf.mxu1 }
 0x59e   :  { %v2852_v62 = vadd.f32 %v3083_v10, %v5024_v39 }
 0x59f   :  { %v3085_v63 = vpop.f32.mrf.mxu1 }
 0x5a0   :  { %2891 = vst.msk [vmem:[%s5125_s19 + $0x40] sm:$0xff] %vm2882_vm5, %v2852_v62  ;;  %v3086_v37 = vadd.f32 %v3085_v63, %v3084_v47 }
 0x5a2   :  { %v2855_v44 = vadd.f32 %v3086_v37, %v5024_v39 }
 0x5a4   :  { %2892 = vst.msk [vmem:[%s5125_s19 + $0x48] sm:$0xff] %vm2882_vm5, %v2855_v44 }
 0x5a9   :  { %v3087_v20 = vpop.f32.mrf.mxu1 }
 0x5ab   :  { %v3088_v38 = vpop.f32.mrf.mxu1 }
 0x5ac   :  { %v3089_v26 = vadd.f32 %v3088_v38, %v3087_v20 }
 0x5ad   :  { %v3090_v28 = vpop.f32.mrf.mxu1 }
 0x5ae   :  { %v2860_v11 = vadd.f32 %v3089_v26, %v5024_v39 }
 0x5af   :  { %v3091_v36 = vpop.f32.mrf.mxu1 }
 0x5b0   :  { %2893 = vst.msk [vmem:[%s5125_s19 + $0x50] sm:$0xff] %vm2882_vm5, %v2860_v11  ;;  %v3092_v7 = vadd.f32 %v3091_v36, %v3090_v28 }
 0x5b2   :  { %v2863_v40 = vadd.f32 %v3092_v7, %v5024_v39 }
 0x5b4   :  { %2894 = vst.msk [vmem:[%s5125_s19 + $0x58] sm:$0xff] %vm2882_vm5, %v2863_v40 }
 0x5b9   :  { %v3093_v43 = vpop.f32.mrf.mxu1 }
 0x5bb   :  { %v3094_v19 = vpop.f32.mrf.mxu1 }
 0x5bc   :  { %v3095_v54 = vadd.f32 %v3094_v19, %v3093_v43 }
 0x5bd   :  { %v3096_v23 = vpop.f32.mrf.mxu1 }
 0x5be   :  { %v2868_v24 = vadd.f32 %v3095_v54, %v5024_v39 }
 0x5bf   :  { %v3097_v4 = vpop.f32.mrf.mxu1 }
 0x5c0   :  { %2895 = vst.msk [vmem:[%s5125_s19 + $0x60] sm:$0xff] %vm2882_vm5, %v2868_v24  ;;  %v3098_v27 = vadd.f32 %v3097_v4, %v3096_v23 }
 0x5c2   :  { %v2871_v15 = vadd.f32 %v3098_v27, %v5024_v39 }
 0x5c4   :  { %2896 = vst.msk [vmem:[%s5125_s19 + $0x68] sm:$0xff] %vm2882_vm5, %v2871_v15 }
 0x5c9   :  { %v3099_v30 = vpop.f32.mrf.mxu1 }
 0x5cb   :  { %v3100_v45 = vpop.f32.mrf.mxu1 }
 0x5cc   :  { %v3101_v33 = vadd.f32 %v3100_v45, %v3099_v30 }
 0x5cd   :  { %v3102_v22 = vpop.f32.mrf.mxu1 }
 0x5ce   :  { %v2876_v13 = vadd.f32 %v3101_v33, %v5024_v39 }
 0x5cf   :  { %v3103_v0 = vpop.f32.mrf.mxu1 }
 0x5d0   :  { %2897 = vst.msk [vmem:[%s5125_s19 + $0x70] sm:$0xff] %vm2882_vm5, %v2876_v13  ;;  %v3104_v51 = vadd.f32 %v3103_v0, %v3102_v22 }
 0x5d2   :  { %v2879_v60 = vadd.f32 %v3104_v51, %v5024_v39 }
 0x5d4   :  { %2898 = vst.msk [vmem:[%s5125_s19 + $0x78] sm:$0xff] %vm2882_vm5, %v2879_v60 }
 0x5d5   :  { %2903 = vsyncpa [#allocation4], 1 }

</bundles_post_ra>
